<compile_context>
chip_gen: v7x
topology: tpu7x:2x2x1
jax: 0.10.0
libtpu: 0.0.40
codegen_flags: <defaults>
</compile_context>

<pallas_src>
import jax
import jax.numpy as jnp
from jax import lax
from jax.experimental import pallas as pl
from jax.experimental.pallas import tpu as pltpu

KERNEL_SIZE = 3            # odd kernel -> symmetric 'same' padding (as PyTorch)
HIDDEN_CHANNELS = (8, 8)   # hidden_channels
IN_CHANNELS = 1            # forward() unsqueezes -> input channels must be 1
OUT_CHANNELS = 1           # residual + squeeze(dim=1) implies out_channels == 1
MAX_BATCH_TILE = 256       # max batch rows per grid step (sublane axis)


def _elu(x):
    # F.elu with alpha = 1.0.  The where() discards the dead branch, so the
    # exp of positive lanes (possibly inf) is harmless; no extra minimum().
    return jnp.where(x > 0, x, jnp.exp(x) - 1.0)


def make_cnn_kernel(channels, K):
    """channels: e.g. [1, 8, 8, 1]; K: odd kernel size."""
    pad = (K - 1) // 2
    n_layers = len(channels) - 1

    def kernel(x_ref, *refs):
        # x_ref / o_ref: (TB, L) tile -> batch rows on sublanes, L on lanes.
        # refs[2*i], refs[2*i+1]: flattened layer-i weight / bias in SMEM.
        o_ref = refs[-1]
        x = x_ref[...]
        TB, L = x.shape

        # Hoisted boundary masks: depend only on lane index and the static tap
        # offset, so compute once per kernel body (center tap needs no mask).
        lane = lax.broadcasted_iota(jnp.int32, (TB, L), 1)
        masks = []
        for k in range(K):
            off = k - pad
            if off == 0:
                masks.append(None)
            else:
                masks.append((lane + off >= 0) & (lane + off < L))

        chans = [x]
        for layer in range(n_layers):
            w_ref = refs[2 * layer]        # SMEM, (C_out*C_in*K,) f32
            b_ref = refs[2 * layer + 1]    # SMEM, (C_out,) f32
            c_in, c_out = channels[layer], channels[layer + 1]

            # Restructured MAC loop: one shifted/masked tap tile live at a
            # time, fanned out into all c_out accumulators, then discarded.
            accs = [None] * c_out
            for ci in range(c_in):
                t = chans[ci]
                for k in range(K):
                    off = k - pad
                    if off == 0:
                        tile = t                               # center: free
                    else:
                        s = pltpu.roll(t, (-off) % L, axis=1)  # XLU lane rot
                        tile = jnp.where(masks[k], s, 0.0)
                    for co in range(c_out):
                        w = w_ref[(co * c_in + ci) * K + k]    # scalar (SMEM)
                        term = w * tile                        # VPU splat-mul
                        accs[co] = term if accs[co] is None else accs[co] + term
            chans = [_elu(accs[co] + b_ref[co]) for co in range(c_out)]

        o_ref[...] = chans[0] + x          # residual connection

    return kernel


def cnn_forward(x, params):
    """x: (B, L).  params: list of (w:(C_out,C_in,K), b:(C_out,)) per layer."""
    B, L = x.shape
    K = params[0][0].shape[2]
    channels = [params[0][0].shape[1]] + [w.shape[0] for (w, _) in params]
    assert channels[0] == 1 and channels[-1] == 1, "residual needs 1 channel"

    # Pick the batch tile: as big as possible (fewer, fatter grid steps) but
    # capped so ~2*(c_in+c_out)+4 live f32 channel tiles stay well inside
    # VMEM even on v7x (64 MiB).  Sublane axis must be a multiple of 8.
    B8 = -(-B // 8) * 8
    if B8 > MAX_BATCH_TILE:
        TB = MAX_BATCH_TILE
        B_pad = -(-B // TB) * TB
    else:
        TB = B8
        B_pad = B8

    xb = x.astype(jnp.float32)
    if B_pad != B:
        xb = jnp.pad(xb, ((0, B_pad - B), (0, 0)))

    smem_spec = pl.BlockSpec(memory_space=pltpu.MemorySpace.SMEM)
    in_specs = [pl.BlockSpec((TB, L), lambda i: (i, 0))]
    args = [xb]
    for (w, b) in params:
        in_specs += [smem_spec, smem_spec]
        args += [w.reshape(-1).astype(jnp.float32),
                 b.reshape(-1).astype(jnp.float32)]

    out = pl.pallas_call(
        make_cnn_kernel(channels, K),
        out_shape=jax.ShapeDtypeStruct((B_pad, L), jnp.float32),
        grid=(B_pad // TB,),
        in_specs=in_specs,
        out_specs=pl.BlockSpec((TB, L), lambda i: (i, 0)),
        compiler_params=pltpu.CompilerParams(
            dimension_semantics=("parallel",)),   # batch tiles are independent
    )(*args)
    return out[:B]


def init_params(key):
    """PyTorch-like uniform init; weights in (C_out, C_in, K) (OIH) layout."""
    channels = [IN_CHANNELS] + list(HIDDEN_CHANNELS) + [OUT_CHANNELS]
    params = []
    for i in range(len(channels) - 1):
        c_in, c_out = channels[i], channels[i + 1]
        key, kw, kb = jax.random.split(key, 3)
        bound = 1.0 / jnp.sqrt(c_in * KERNEL_SIZE)
        w = jax.random.uniform(kw, (c_out, c_in, KERNEL_SIZE),
                               jnp.float32, -bound, bound)
        b = jax.random.uniform(kb, (c_out,), jnp.float32, -bound, bound)
        params.append((w, b))
    return params


def ref_forward(x, params):
    """Pure-JAX reference mirroring the PyTorch forward (NCL, 'same', ELU)."""
    B, L = x.shape
    x0 = x.reshape(B, 1, L)
    t = x0
    for (w, b) in params:
        t = lax.conv_general_dilated(t, w, (1,), 'SAME',
                                     dimension_numbers=('NCH', 'OIH', 'NCH'))
        t = t + b.reshape(1, -1, 1)
        t = jax.nn.elu(t)
    return (t + x0).reshape(B, L)


if __name__ == "__main__":
    key = jax.random.PRNGKey(0)
    key, kx = jax.random.split(key)
    B, L = 4, 256
    x = jax.random.normal(kx, (B, L), jnp.float32)
    params = init_params(key)

    out = jax.block_until_ready(cnn_forward(x, params))
    ref = ref_forward(x, params)
    assert out.shape == (B, L)
    assert jnp.allclose(out, ref, rtol=1e-5, atol=1e-5), \
        f"max err {jnp.max(jnp.abs(out - ref))}"
    print("KERNEL_OK")
</pallas_src>

<mosaic_0001>
module attributes {stable_mosaic.version = 11 : i64} {
  func.func @kernel(%arg0: i32, %arg1: memref<8x256xf32, #tpu.memory_space<vmem>>, %arg2: memref<24xf32, #tpu.memory_space<smem>>, %arg3: memref<8xf32, #tpu.memory_space<smem>>, %arg4: memref<192xf32, #tpu.memory_space<smem>>, %arg5: memref<8xf32, #tpu.memory_space<smem>>, %arg6: memref<24xf32, #tpu.memory_space<smem>>, %arg7: memref<1xf32, #tpu.memory_space<smem>>, %arg8: memref<8x256xf32, #tpu.memory_space<vmem>>) attributes {dimension_semantics = [#tpu.dimension_semantics<parallel>], iteration_bounds = array<i64: 1>, scalar_prefetch = 0 : i64, scratch_operands = 0 : i64, tpu.core_type = #tpu.core_type<tc>, window_params = [{transform_indices = @transform_0, window_bounds = array<i64: 8, 256>}, {transform_indices = @transform_1, window_bounds = array<i64: 24>}, {transform_indices = @transform_2, window_bounds = array<i64: 8>}, {transform_indices = @transform_3, window_bounds = array<i64: 192>}, {transform_indices = @transform_4, window_bounds = array<i64: 8>}, {transform_indices = @transform_5, window_bounds = array<i64: 24>}, {transform_indices = @transform_6, window_bounds = array<i64: 1>}, {transform_indices = @transform_7, window_bounds = array<i64: 8, 256>}]} {
    %c0 = arith.constant 0 : index
    %c0_0 = arith.constant 0 : index
    %0 = vector.load %arg1[%c0, %c0_0] : memref<8x256xf32, #tpu.memory_space<vmem>>, vector<8x256xf32>
    %1 = tpu.iota {dimensions = array<i32: 1>} : vector<8x256xi32>
    %c-1_i32 = arith.constant -1 : i32
    %2 = vector.broadcast %c-1_i32 : i32 to vector<8x256xi32>
    %3 = arith.addi %1, %2 : vector<8x256xi32>
    %c0_i32 = arith.constant 0 : i32
    %4 = vector.broadcast %c0_i32 : i32 to vector<8x256xi32>
    %5 = arith.cmpi sge, %3, %4 : vector<8x256xi32>
    %c-1_i32_1 = arith.constant -1 : i32
    %6 = vector.broadcast %c-1_i32_1 : i32 to vector<8x256xi32>
    %7 = arith.addi %1, %6 : vector<8x256xi32>
    %c256_i32 = arith.constant 256 : i32
    %8 = vector.broadcast %c256_i32 : i32 to vector<8x256xi32>
    %9 = arith.cmpi slt, %7, %8 : vector<8x256xi32>
    %10 = arith.andi %5, %9 : vector<8x256xi1>
    %c1_i32 = arith.constant 1 : i32
    %11 = vector.broadcast %c1_i32 : i32 to vector<8x256xi32>
    %12 = arith.addi %1, %11 : vector<8x256xi32>
    %c0_i32_2 = arith.constant 0 : i32
    %13 = vector.broadcast %c0_i32_2 : i32 to vector<8x256xi32>
    %14 = arith.cmpi sge, %12, %13 : vector<8x256xi32>
    %c1_i32_3 = arith.constant 1 : i32
    %15 = vector.broadcast %c1_i32_3 : i32 to vector<8x256xi32>
    %16 = arith.addi %1, %15 : vector<8x256xi32>
    %c256_i32_4 = arith.constant 256 : i32
    %17 = vector.broadcast %c256_i32_4 : i32 to vector<8x256xi32>
    %18 = arith.cmpi slt, %16, %17 : vector<8x256xi32>
    %19 = arith.andi %14, %18 : vector<8x256xi1>
    %c1_i32_5 = arith.constant 1 : i32
    %20 = tpu.dynamic_rotate %0 by %c1_i32_5 dim 1 : vector<8x256xf32>, i32 -> vector<8x256xf32>
    %cst = arith.constant 0.000000e+00 : f32
    %21 = vector.broadcast %cst : f32 to vector<8x256xf32>
    %22 = arith.select %10, %20, %21 : vector<8x256xi1>, vector<8x256xf32>
    %c0_6 = arith.constant 0 : index
    %23 = memref.load %arg2[%c0_6] : memref<24xf32, #tpu.memory_space<smem>>
    %24 = vector.broadcast %23 : f32 to vector<8x256xf32>
    %25 = arith.mulf %24, %22 : vector<8x256xf32>
    %c3 = arith.constant 3 : index
    %26 = memref.load %arg2[%c3] : memref<24xf32, #tpu.memory_space<smem>>
    %27 = vector.broadcast %26 : f32 to vector<8x256xf32>
    %28 = arith.mulf %27, %22 : vector<8x256xf32>
    %c6 = arith.constant 6 : index
    %29 = memref.load %arg2[%c6] : memref<24xf32, #tpu.memory_space<smem>>
    %30 = vector.broadcast %29 : f32 to vector<8x256xf32>
    %31 = arith.mulf %30, %22 : vector<8x256xf32>
    %c9 = arith.constant 9 : index
    %32 = memref.load %arg2[%c9] : memref<24xf32, #tpu.memory_space<smem>>
    %33 = vector.broadcast %32 : f32 to vector<8x256xf32>
    %34 = arith.mulf %33, %22 : vector<8x256xf32>
    %c12 = arith.constant 12 : index
    %35 = memref.load %arg2[%c12] : memref<24xf32, #tpu.memory_space<smem>>
    %36 = vector.broadcast %35 : f32 to vector<8x256xf32>
    %37 = arith.mulf %36, %22 : vector<8x256xf32>
    %c15 = arith.constant 15 : index
    %38 = memref.load %arg2[%c15] : memref<24xf32, #tpu.memory_space<smem>>
    %39 = vector.broadcast %38 : f32 to vector<8x256xf32>
    %40 = arith.mulf %39, %22 : vector<8x256xf32>
    %c18 = arith.constant 18 : index
    %41 = memref.load %arg2[%c18] : memref<24xf32, #tpu.memory_space<smem>>
    %42 = vector.broadcast %41 : f32 to vector<8x256xf32>
    %43 = arith.mulf %42, %22 : vector<8x256xf32>
    %c21 = arith.constant 21 : index
    %44 = memref.load %arg2[%c21] : memref<24xf32, #tpu.memory_space<smem>>
    %45 = vector.broadcast %44 : f32 to vector<8x256xf32>
    %46 = arith.mulf %45, %22 : vector<8x256xf32>
    %c1 = arith.constant 1 : index
    %47 = memref.load %arg2[%c1] : memref<24xf32, #tpu.memory_space<smem>>
    %48 = vector.broadcast %47 : f32 to vector<8x256xf32>
    %49 = arith.mulf %48, %0 : vector<8x256xf32>
    %50 = arith.addf %25, %49 : vector<8x256xf32>
    %c4 = arith.constant 4 : index
    %51 = memref.load %arg2[%c4] : memref<24xf32, #tpu.memory_space<smem>>
    %52 = vector.broadcast %51 : f32 to vector<8x256xf32>
    %53 = arith.mulf %52, %0 : vector<8x256xf32>
    %54 = arith.addf %28, %53 : vector<8x256xf32>
    %c7 = arith.constant 7 : index
    %55 = memref.load %arg2[%c7] : memref<24xf32, #tpu.memory_space<smem>>
    %56 = vector.broadcast %55 : f32 to vector<8x256xf32>
    %57 = arith.mulf %56, %0 : vector<8x256xf32>
    %58 = arith.addf %31, %57 : vector<8x256xf32>
    %c10 = arith.constant 10 : index
    %59 = memref.load %arg2[%c10] : memref<24xf32, #tpu.memory_space<smem>>
    %60 = vector.broadcast %59 : f32 to vector<8x256xf32>
    %61 = arith.mulf %60, %0 : vector<8x256xf32>
    %62 = arith.addf %34, %61 : vector<8x256xf32>
    %c13 = arith.constant 13 : index
    %63 = memref.load %arg2[%c13] : memref<24xf32, #tpu.memory_space<smem>>
    %64 = vector.broadcast %63 : f32 to vector<8x256xf32>
    %65 = arith.mulf %64, %0 : vector<8x256xf32>
    %66 = arith.addf %37, %65 : vector<8x256xf32>
    %c16 = arith.constant 16 : index
    %67 = memref.load %arg2[%c16] : memref<24xf32, #tpu.memory_space<smem>>
    %68 = vector.broadcast %67 : f32 to vector<8x256xf32>
    %69 = arith.mulf %68, %0 : vector<8x256xf32>
    %70 = arith.addf %40, %69 : vector<8x256xf32>
    %c19 = arith.constant 19 : index
    %71 = memref.load %arg2[%c19] : memref<24xf32, #tpu.memory_space<smem>>
    %72 = vector.broadcast %71 : f32 to vector<8x256xf32>
    %73 = arith.mulf %72, %0 : vector<8x256xf32>
    %74 = arith.addf %43, %73 : vector<8x256xf32>
    %c22 = arith.constant 22 : index
    %75 = memref.load %arg2[%c22] : memref<24xf32, #tpu.memory_space<smem>>
    %76 = vector.broadcast %75 : f32 to vector<8x256xf32>
    %77 = arith.mulf %76, %0 : vector<8x256xf32>
    %78 = arith.addf %46, %77 : vector<8x256xf32>
    %c255_i32 = arith.constant 255 : i32
    %79 = tpu.dynamic_rotate %0 by %c255_i32 dim 1 : vector<8x256xf32>, i32 -> vector<8x256xf32>
    %cst_7 = arith.constant 0.000000e+00 : f32
    %80 = vector.broadcast %cst_7 : f32 to vector<8x256xf32>
    %81 = arith.select %19, %79, %80 : vector<8x256xi1>, vector<8x256xf32>
    %c2 = arith.constant 2 : index
    %82 = memref.load %arg2[%c2] : memref<24xf32, #tpu.memory_space<smem>>
    %83 = vector.broadcast %82 : f32 to vector<8x256xf32>
    %84 = arith.mulf %83, %81 : vector<8x256xf32>
    %85 = arith.addf %50, %84 : vector<8x256xf32>
    %c5 = arith.constant 5 : index
    %86 = memref.load %arg2[%c5] : memref<24xf32, #tpu.memory_space<smem>>
    %87 = vector.broadcast %86 : f32 to vector<8x256xf32>
    %88 = arith.mulf %87, %81 : vector<8x256xf32>
    %89 = arith.addf %54, %88 : vector<8x256xf32>
    %c8 = arith.constant 8 : index
    %90 = memref.load %arg2[%c8] : memref<24xf32, #tpu.memory_space<smem>>
    %91 = vector.broadcast %90 : f32 to vector<8x256xf32>
    %92 = arith.mulf %91, %81 : vector<8x256xf32>
    %93 = arith.addf %58, %92 : vector<8x256xf32>
    %c11 = arith.constant 11 : index
    %94 = memref.load %arg2[%c11] : memref<24xf32, #tpu.memory_space<smem>>
    %95 = vector.broadcast %94 : f32 to vector<8x256xf32>
    %96 = arith.mulf %95, %81 : vector<8x256xf32>
    %97 = arith.addf %62, %96 : vector<8x256xf32>
    %c14 = arith.constant 14 : index
    %98 = memref.load %arg2[%c14] : memref<24xf32, #tpu.memory_space<smem>>
    %99 = vector.broadcast %98 : f32 to vector<8x256xf32>
    %100 = arith.mulf %99, %81 : vector<8x256xf32>
    %101 = arith.addf %66, %100 : vector<8x256xf32>
    %c17 = arith.constant 17 : index
    %102 = memref.load %arg2[%c17] : memref<24xf32, #tpu.memory_space<smem>>
    %103 = vector.broadcast %102 : f32 to vector<8x256xf32>
    %104 = arith.mulf %103, %81 : vector<8x256xf32>
    %105 = arith.addf %70, %104 : vector<8x256xf32>
    %c20 = arith.constant 20 : index
    %106 = memref.load %arg2[%c20] : memref<24xf32, #tpu.memory_space<smem>>
    %107 = vector.broadcast %106 : f32 to vector<8x256xf32>
    %108 = arith.mulf %107, %81 : vector<8x256xf32>
    %109 = arith.addf %74, %108 : vector<8x256xf32>
    %c23 = arith.constant 23 : index
    %110 = memref.load %arg2[%c23] : memref<24xf32, #tpu.memory_space<smem>>
    %111 = vector.broadcast %110 : f32 to vector<8x256xf32>
    %112 = arith.mulf %111, %81 : vector<8x256xf32>
    %113 = arith.addf %78, %112 : vector<8x256xf32>
    %c0_8 = arith.constant 0 : index
    %114 = memref.load %arg3[%c0_8] : memref<8xf32, #tpu.memory_space<smem>>
    %115 = vector.broadcast %114 : f32 to vector<8x256xf32>
    %116 = arith.addf %85, %115 : vector<8x256xf32>
    %cst_9 = arith.constant 0.000000e+00 : f32
    %117 = vector.broadcast %cst_9 : f32 to vector<8x256xf32>
    %118 = arith.cmpf ogt, %116, %117 : vector<8x256xf32>
    %119 = math.exp %116 : vector<8x256xf32>
    %cst_10 = arith.constant 1.000000e+00 : f32
    %120 = vector.broadcast %cst_10 : f32 to vector<8x256xf32>
    %121 = arith.subf %119, %120 : vector<8x256xf32>
    %122 = arith.select %118, %116, %121 : vector<8x256xi1>, vector<8x256xf32>
    %c1_11 = arith.constant 1 : index
    %123 = memref.load %arg3[%c1_11] : memref<8xf32, #tpu.memory_space<smem>>
    %124 = vector.broadcast %123 : f32 to vector<8x256xf32>
    %125 = arith.addf %89, %124 : vector<8x256xf32>
    %cst_12 = arith.constant 0.000000e+00 : f32
    %126 = vector.broadcast %cst_12 : f32 to vector<8x256xf32>
    %127 = arith.cmpf ogt, %125, %126 : vector<8x256xf32>
    %128 = math.exp %125 : vector<8x256xf32>
    %cst_13 = arith.constant 1.000000e+00 : f32
    %129 = vector.broadcast %cst_13 : f32 to vector<8x256xf32>
    %130 = arith.subf %128, %129 : vector<8x256xf32>
    %131 = arith.select %127, %125, %130 : vector<8x256xi1>, vector<8x256xf32>
    %c2_14 = arith.constant 2 : index
    %132 = memref.load %arg3[%c2_14] : memref<8xf32, #tpu.memory_space<smem>>
    %133 = vector.broadcast %132 : f32 to vector<8x256xf32>
    %134 = arith.addf %93, %133 : vector<8x256xf32>
    %cst_15 = arith.constant 0.000000e+00 : f32
    %135 = vector.broadcast %cst_15 : f32 to vector<8x256xf32>
    %136 = arith.cmpf ogt, %134, %135 : vector<8x256xf32>
    %137 = math.exp %134 : vector<8x256xf32>
    %cst_16 = arith.constant 1.000000e+00 : f32
    %138 = vector.broadcast %cst_16 : f32 to vector<8x256xf32>
    %139 = arith.subf %137, %138 : vector<8x256xf32>
    %140 = arith.select %136, %134, %139 : vector<8x256xi1>, vector<8x256xf32>
    %c3_17 = arith.constant 3 : index
    %141 = memref.load %arg3[%c3_17] : memref<8xf32, #tpu.memory_space<smem>>
    %142 = vector.broadcast %141 : f32 to vector<8x256xf32>
    %143 = arith.addf %97, %142 : vector<8x256xf32>
    %cst_18 = arith.constant 0.000000e+00 : f32
    %144 = vector.broadcast %cst_18 : f32 to vector<8x256xf32>
    %145 = arith.cmpf ogt, %143, %144 : vector<8x256xf32>
    %146 = math.exp %143 : vector<8x256xf32>
    %cst_19 = arith.constant 1.000000e+00 : f32
    %147 = vector.broadcast %cst_19 : f32 to vector<8x256xf32>
    %148 = arith.subf %146, %147 : vector<8x256xf32>
    %149 = arith.select %145, %143, %148 : vector<8x256xi1>, vector<8x256xf32>
    %c4_20 = arith.constant 4 : index
    %150 = memref.load %arg3[%c4_20] : memref<8xf32, #tpu.memory_space<smem>>
    %151 = vector.broadcast %150 : f32 to vector<8x256xf32>
    %152 = arith.addf %101, %151 : vector<8x256xf32>
    %cst_21 = arith.constant 0.000000e+00 : f32
    %153 = vector.broadcast %cst_21 : f32 to vector<8x256xf32>
    %154 = arith.cmpf ogt, %152, %153 : vector<8x256xf32>
    %155 = math.exp %152 : vector<8x256xf32>
    %cst_22 = arith.constant 1.000000e+00 : f32
    %156 = vector.broadcast %cst_22 : f32 to vector<8x256xf32>
    %157 = arith.subf %155, %156 : vector<8x256xf32>
    %158 = arith.select %154, %152, %157 : vector<8x256xi1>, vector<8x256xf32>
    %c5_23 = arith.constant 5 : index
    %159 = memref.load %arg3[%c5_23] : memref<8xf32, #tpu.memory_space<smem>>
    %160 = vector.broadcast %159 : f32 to vector<8x256xf32>
    %161 = arith.addf %105, %160 : vector<8x256xf32>
    %cst_24 = arith.constant 0.000000e+00 : f32
    %162 = vector.broadcast %cst_24 : f32 to vector<8x256xf32>
    %163 = arith.cmpf ogt, %161, %162 : vector<8x256xf32>
    %164 = math.exp %161 : vector<8x256xf32>
    %cst_25 = arith.constant 1.000000e+00 : f32
    %165 = vector.broadcast %cst_25 : f32 to vector<8x256xf32>
    %166 = arith.subf %164, %165 : vector<8x256xf32>
    %167 = arith.select %163, %161, %166 : vector<8x256xi1>, vector<8x256xf32>
    %c6_26 = arith.constant 6 : index
    %168 = memref.load %arg3[%c6_26] : memref<8xf32, #tpu.memory_space<smem>>
    %169 = vector.broadcast %168 : f32 to vector<8x256xf32>
    %170 = arith.addf %109, %169 : vector<8x256xf32>
    %cst_27 = arith.constant 0.000000e+00 : f32
    %171 = vector.broadcast %cst_27 : f32 to vector<8x256xf32>
    %172 = arith.cmpf ogt, %170, %171 : vector<8x256xf32>
    %173 = math.exp %170 : vector<8x256xf32>
    %cst_28 = arith.constant 1.000000e+00 : f32
    %174 = vector.broadcast %cst_28 : f32 to vector<8x256xf32>
    %175 = arith.subf %173, %174 : vector<8x256xf32>
    %176 = arith.select %172, %170, %175 : vector<8x256xi1>, vector<8x256xf32>
    %c7_29 = arith.constant 7 : index
    %177 = memref.load %arg3[%c7_29] : memref<8xf32, #tpu.memory_space<smem>>
    %178 = vector.broadcast %177 : f32 to vector<8x256xf32>
    %179 = arith.addf %113, %178 : vector<8x256xf32>
    %cst_30 = arith.constant 0.000000e+00 : f32
    %180 = vector.broadcast %cst_30 : f32 to vector<8x256xf32>
    %181 = arith.cmpf ogt, %179, %180 : vector<8x256xf32>
    %182 = math.exp %179 : vector<8x256xf32>
    %cst_31 = arith.constant 1.000000e+00 : f32
    %183 = vector.broadcast %cst_31 : f32 to vector<8x256xf32>
    %184 = arith.subf %182, %183 : vector<8x256xf32>
    %185 = arith.select %181, %179, %184 : vector<8x256xi1>, vector<8x256xf32>
    %c1_i32_32 = arith.constant 1 : i32
    %186 = tpu.dynamic_rotate %122 by %c1_i32_32 dim 1 : vector<8x256xf32>, i32 -> vector<8x256xf32>
    %cst_33 = arith.constant 0.000000e+00 : f32
    %187 = vector.broadcast %cst_33 : f32 to vector<8x256xf32>
    %188 = arith.select %10, %186, %187 : vector<8x256xi1>, vector<8x256xf32>
    %c0_34 = arith.constant 0 : index
    %189 = memref.load %arg4[%c0_34] : memref<192xf32, #tpu.memory_space<smem>>
    %190 = vector.broadcast %189 : f32 to vector<8x256xf32>
    %191 = arith.mulf %190, %188 : vector<8x256xf32>
    %c24 = arith.constant 24 : index
    %192 = memref.load %arg4[%c24] : memref<192xf32, #tpu.memory_space<smem>>
    %193 = vector.broadcast %192 : f32 to vector<8x256xf32>
    %194 = arith.mulf %193, %188 : vector<8x256xf32>
    %c48 = arith.constant 48 : index
    %195 = memref.load %arg4[%c48] : memref<192xf32, #tpu.memory_space<smem>>
    %196 = vector.broadcast %195 : f32 to vector<8x256xf32>
    %197 = arith.mulf %196, %188 : vector<8x256xf32>
    %c72 = arith.constant 72 : index
    %198 = memref.load %arg4[%c72] : memref<192xf32, #tpu.memory_space<smem>>
    %199 = vector.broadcast %198 : f32 to vector<8x256xf32>
    %200 = arith.mulf %199, %188 : vector<8x256xf32>
    %c96 = arith.constant 96 : index
    %201 = memref.load %arg4[%c96] : memref<192xf32, #tpu.memory_space<smem>>
    %202 = vector.broadcast %201 : f32 to vector<8x256xf32>
    %203 = arith.mulf %202, %188 : vector<8x256xf32>
    %c120 = arith.constant 120 : index
    %204 = memref.load %arg4[%c120] : memref<192xf32, #tpu.memory_space<smem>>
    %205 = vector.broadcast %204 : f32 to vector<8x256xf32>
    %206 = arith.mulf %205, %188 : vector<8x256xf32>
    %c144 = arith.constant 144 : index
    %207 = memref.load %arg4[%c144] : memref<192xf32, #tpu.memory_space<smem>>
    %208 = vector.broadcast %207 : f32 to vector<8x256xf32>
    %209 = arith.mulf %208, %188 : vector<8x256xf32>
    %c168 = arith.constant 168 : index
    %210 = memref.load %arg4[%c168] : memref<192xf32, #tpu.memory_space<smem>>
    %211 = vector.broadcast %210 : f32 to vector<8x256xf32>
    %212 = arith.mulf %211, %188 : vector<8x256xf32>
    %c1_35 = arith.constant 1 : index
    %213 = memref.load %arg4[%c1_35] : memref<192xf32, #tpu.memory_space<smem>>
    %214 = vector.broadcast %213 : f32 to vector<8x256xf32>
    %215 = arith.mulf %214, %122 : vector<8x256xf32>
    %216 = arith.addf %191, %215 : vector<8x256xf32>
    %c25 = arith.constant 25 : index
    %217 = memref.load %arg4[%c25] : memref<192xf32, #tpu.memory_space<smem>>
    %218 = vector.broadcast %217 : f32 to vector<8x256xf32>
    %219 = arith.mulf %218, %122 : vector<8x256xf32>
    %220 = arith.addf %194, %219 : vector<8x256xf32>
    %c49 = arith.constant 49 : index
    %221 = memref.load %arg4[%c49] : memref<192xf32, #tpu.memory_space<smem>>
    %222 = vector.broadcast %221 : f32 to vector<8x256xf32>
    %223 = arith.mulf %222, %122 : vector<8x256xf32>
    %224 = arith.addf %197, %223 : vector<8x256xf32>
    %c73 = arith.constant 73 : index
    %225 = memref.load %arg4[%c73] : memref<192xf32, #tpu.memory_space<smem>>
    %226 = vector.broadcast %225 : f32 to vector<8x256xf32>
    %227 = arith.mulf %226, %122 : vector<8x256xf32>
    %228 = arith.addf %200, %227 : vector<8x256xf32>
    %c97 = arith.constant 97 : index
    %229 = memref.load %arg4[%c97] : memref<192xf32, #tpu.memory_space<smem>>
    %230 = vector.broadcast %229 : f32 to vector<8x256xf32>
    %231 = arith.mulf %230, %122 : vector<8x256xf32>
    %232 = arith.addf %203, %231 : vector<8x256xf32>
    %c121 = arith.constant 121 : index
    %233 = memref.load %arg4[%c121] : memref<192xf32, #tpu.memory_space<smem>>
    %234 = vector.broadcast %233 : f32 to vector<8x256xf32>
    %235 = arith.mulf %234, %122 : vector<8x256xf32>
    %236 = arith.addf %206, %235 : vector<8x256xf32>
    %c145 = arith.constant 145 : index
    %237 = memref.load %arg4[%c145] : memref<192xf32, #tpu.memory_space<smem>>
    %238 = vector.broadcast %237 : f32 to vector<8x256xf32>
    %239 = arith.mulf %238, %122 : vector<8x256xf32>
    %240 = arith.addf %209, %239 : vector<8x256xf32>
    %c169 = arith.constant 169 : index
    %241 = memref.load %arg4[%c169] : memref<192xf32, #tpu.memory_space<smem>>
    %242 = vector.broadcast %241 : f32 to vector<8x256xf32>
    %243 = arith.mulf %242, %122 : vector<8x256xf32>
    %244 = arith.addf %212, %243 : vector<8x256xf32>
    %c255_i32_36 = arith.constant 255 : i32
    %245 = tpu.dynamic_rotate %122 by %c255_i32_36 dim 1 : vector<8x256xf32>, i32 -> vector<8x256xf32>
    %cst_37 = arith.constant 0.000000e+00 : f32
    %246 = vector.broadcast %cst_37 : f32 to vector<8x256xf32>
    %247 = arith.select %19, %245, %246 : vector<8x256xi1>, vector<8x256xf32>
    %c2_38 = arith.constant 2 : index
    %248 = memref.load %arg4[%c2_38] : memref<192xf32, #tpu.memory_space<smem>>
    %249 = vector.broadcast %248 : f32 to vector<8x256xf32>
    %250 = arith.mulf %249, %247 : vector<8x256xf32>
    %251 = arith.addf %216, %250 : vector<8x256xf32>
    %c26 = arith.constant 26 : index
    %252 = memref.load %arg4[%c26] : memref<192xf32, #tpu.memory_space<smem>>
    %253 = vector.broadcast %252 : f32 to vector<8x256xf32>
    %254 = arith.mulf %253, %247 : vector<8x256xf32>
    %255 = arith.addf %220, %254 : vector<8x256xf32>
    %c50 = arith.constant 50 : index
    %256 = memref.load %arg4[%c50] : memref<192xf32, #tpu.memory_space<smem>>
    %257 = vector.broadcast %256 : f32 to vector<8x256xf32>
    %258 = arith.mulf %257, %247 : vector<8x256xf32>
    %259 = arith.addf %224, %258 : vector<8x256xf32>
    %c74 = arith.constant 74 : index
    %260 = memref.load %arg4[%c74] : memref<192xf32, #tpu.memory_space<smem>>
    %261 = vector.broadcast %260 : f32 to vector<8x256xf32>
    %262 = arith.mulf %261, %247 : vector<8x256xf32>
    %263 = arith.addf %228, %262 : vector<8x256xf32>
    %c98 = arith.constant 98 : index
    %264 = memref.load %arg4[%c98] : memref<192xf32, #tpu.memory_space<smem>>
    %265 = vector.broadcast %264 : f32 to vector<8x256xf32>
    %266 = arith.mulf %265, %247 : vector<8x256xf32>
    %267 = arith.addf %232, %266 : vector<8x256xf32>
    %c122 = arith.constant 122 : index
    %268 = memref.load %arg4[%c122] : memref<192xf32, #tpu.memory_space<smem>>
    %269 = vector.broadcast %268 : f32 to vector<8x256xf32>
    %270 = arith.mulf %269, %247 : vector<8x256xf32>
    %271 = arith.addf %236, %270 : vector<8x256xf32>
    %c146 = arith.constant 146 : index
    %272 = memref.load %arg4[%c146] : memref<192xf32, #tpu.memory_space<smem>>
    %273 = vector.broadcast %272 : f32 to vector<8x256xf32>
    %274 = arith.mulf %273, %247 : vector<8x256xf32>
    %275 = arith.addf %240, %274 : vector<8x256xf32>
    %c170 = arith.constant 170 : index
    %276 = memref.load %arg4[%c170] : memref<192xf32, #tpu.memory_space<smem>>
    %277 = vector.broadcast %276 : f32 to vector<8x256xf32>
    %278 = arith.mulf %277, %247 : vector<8x256xf32>
    %279 = arith.addf %244, %278 : vector<8x256xf32>
    %c1_i32_39 = arith.constant 1 : i32
    %280 = tpu.dynamic_rotate %131 by %c1_i32_39 dim 1 : vector<8x256xf32>, i32 -> vector<8x256xf32>
    %cst_40 = arith.constant 0.000000e+00 : f32
    %281 = vector.broadcast %cst_40 : f32 to vector<8x256xf32>
    %282 = arith.select %10, %280, %281 : vector<8x256xi1>, vector<8x256xf32>
    %c3_41 = arith.constant 3 : index
    %283 = memref.load %arg4[%c3_41] : memref<192xf32, #tpu.memory_space<smem>>
    %284 = vector.broadcast %283 : f32 to vector<8x256xf32>
    %285 = arith.mulf %284, %282 : vector<8x256xf32>
    %286 = arith.addf %251, %285 : vector<8x256xf32>
    %c27 = arith.constant 27 : index
    %287 = memref.load %arg4[%c27] : memref<192xf32, #tpu.memory_space<smem>>
    %288 = vector.broadcast %287 : f32 to vector<8x256xf32>
    %289 = arith.mulf %288, %282 : vector<8x256xf32>
    %290 = arith.addf %255, %289 : vector<8x256xf32>
    %c51 = arith.constant 51 : index
    %291 = memref.load %arg4[%c51] : memref<192xf32, #tpu.memory_space<smem>>
    %292 = vector.broadcast %291 : f32 to vector<8x256xf32>
    %293 = arith.mulf %292, %282 : vector<8x256xf32>
    %294 = arith.addf %259, %293 : vector<8x256xf32>
    %c75 = arith.constant 75 : index
    %295 = memref.load %arg4[%c75] : memref<192xf32, #tpu.memory_space<smem>>
    %296 = vector.broadcast %295 : f32 to vector<8x256xf32>
    %297 = arith.mulf %296, %282 : vector<8x256xf32>
    %298 = arith.addf %263, %297 : vector<8x256xf32>
    %c99 = arith.constant 99 : index
    %299 = memref.load %arg4[%c99] : memref<192xf32, #tpu.memory_space<smem>>
    %300 = vector.broadcast %299 : f32 to vector<8x256xf32>
    %301 = arith.mulf %300, %282 : vector<8x256xf32>
    %302 = arith.addf %267, %301 : vector<8x256xf32>
    %c123 = arith.constant 123 : index
    %303 = memref.load %arg4[%c123] : memref<192xf32, #tpu.memory_space<smem>>
    %304 = vector.broadcast %303 : f32 to vector<8x256xf32>
    %305 = arith.mulf %304, %282 : vector<8x256xf32>
    %306 = arith.addf %271, %305 : vector<8x256xf32>
    %c147 = arith.constant 147 : index
    %307 = memref.load %arg4[%c147] : memref<192xf32, #tpu.memory_space<smem>>
    %308 = vector.broadcast %307 : f32 to vector<8x256xf32>
    %309 = arith.mulf %308, %282 : vector<8x256xf32>
    %310 = arith.addf %275, %309 : vector<8x256xf32>
    %c171 = arith.constant 171 : index
    %311 = memref.load %arg4[%c171] : memref<192xf32, #tpu.memory_space<smem>>
    %312 = vector.broadcast %311 : f32 to vector<8x256xf32>
    %313 = arith.mulf %312, %282 : vector<8x256xf32>
    %314 = arith.addf %279, %313 : vector<8x256xf32>
    %c4_42 = arith.constant 4 : index
    %315 = memref.load %arg4[%c4_42] : memref<192xf32, #tpu.memory_space<smem>>
    %316 = vector.broadcast %315 : f32 to vector<8x256xf32>
    %317 = arith.mulf %316, %131 : vector<8x256xf32>
    %318 = arith.addf %286, %317 : vector<8x256xf32>
    %c28 = arith.constant 28 : index
    %319 = memref.load %arg4[%c28] : memref<192xf32, #tpu.memory_space<smem>>
    %320 = vector.broadcast %319 : f32 to vector<8x256xf32>
    %321 = arith.mulf %320, %131 : vector<8x256xf32>
    %322 = arith.addf %290, %321 : vector<8x256xf32>
    %c52 = arith.constant 52 : index
    %323 = memref.load %arg4[%c52] : memref<192xf32, #tpu.memory_space<smem>>
    %324 = vector.broadcast %323 : f32 to vector<8x256xf32>
    %325 = arith.mulf %324, %131 : vector<8x256xf32>
    %326 = arith.addf %294, %325 : vector<8x256xf32>
    %c76 = arith.constant 76 : index
    %327 = memref.load %arg4[%c76] : memref<192xf32, #tpu.memory_space<smem>>
    %328 = vector.broadcast %327 : f32 to vector<8x256xf32>
    %329 = arith.mulf %328, %131 : vector<8x256xf32>
    %330 = arith.addf %298, %329 : vector<8x256xf32>
    %c100 = arith.constant 100 : index
    %331 = memref.load %arg4[%c100] : memref<192xf32, #tpu.memory_space<smem>>
    %332 = vector.broadcast %331 : f32 to vector<8x256xf32>
    %333 = arith.mulf %332, %131 : vector<8x256xf32>
    %334 = arith.addf %302, %333 : vector<8x256xf32>
    %c124 = arith.constant 124 : index
    %335 = memref.load %arg4[%c124] : memref<192xf32, #tpu.memory_space<smem>>
    %336 = vector.broadcast %335 : f32 to vector<8x256xf32>
    %337 = arith.mulf %336, %131 : vector<8x256xf32>
    %338 = arith.addf %306, %337 : vector<8x256xf32>
    %c148 = arith.constant 148 : index
    %339 = memref.load %arg4[%c148] : memref<192xf32, #tpu.memory_space<smem>>
    %340 = vector.broadcast %339 : f32 to vector<8x256xf32>
    %341 = arith.mulf %340, %131 : vector<8x256xf32>
    %342 = arith.addf %310, %341 : vector<8x256xf32>
    %c172 = arith.constant 172 : index
    %343 = memref.load %arg4[%c172] : memref<192xf32, #tpu.memory_space<smem>>
    %344 = vector.broadcast %343 : f32 to vector<8x256xf32>
    %345 = arith.mulf %344, %131 : vector<8x256xf32>
    %346 = arith.addf %314, %345 : vector<8x256xf32>
    %c255_i32_43 = arith.constant 255 : i32
    %347 = tpu.dynamic_rotate %131 by %c255_i32_43 dim 1 : vector<8x256xf32>, i32 -> vector<8x256xf32>
    %cst_44 = arith.constant 0.000000e+00 : f32
    %348 = vector.broadcast %cst_44 : f32 to vector<8x256xf32>
    %349 = arith.select %19, %347, %348 : vector<8x256xi1>, vector<8x256xf32>
    %c5_45 = arith.constant 5 : index
    %350 = memref.load %arg4[%c5_45] : memref<192xf32, #tpu.memory_space<smem>>
    %351 = vector.broadcast %350 : f32 to vector<8x256xf32>
    %352 = arith.mulf %351, %349 : vector<8x256xf32>
    %353 = arith.addf %318, %352 : vector<8x256xf32>
    %c29 = arith.constant 29 : index
    %354 = memref.load %arg4[%c29] : memref<192xf32, #tpu.memory_space<smem>>
    %355 = vector.broadcast %354 : f32 to vector<8x256xf32>
    %356 = arith.mulf %355, %349 : vector<8x256xf32>
    %357 = arith.addf %322, %356 : vector<8x256xf32>
    %c53 = arith.constant 53 : index
    %358 = memref.load %arg4[%c53] : memref<192xf32, #tpu.memory_space<smem>>
    %359 = vector.broadcast %358 : f32 to vector<8x256xf32>
    %360 = arith.mulf %359, %349 : vector<8x256xf32>
    %361 = arith.addf %326, %360 : vector<8x256xf32>
    %c77 = arith.constant 77 : index
    %362 = memref.load %arg4[%c77] : memref<192xf32, #tpu.memory_space<smem>>
    %363 = vector.broadcast %362 : f32 to vector<8x256xf32>
    %364 = arith.mulf %363, %349 : vector<8x256xf32>
    %365 = arith.addf %330, %364 : vector<8x256xf32>
    %c101 = arith.constant 101 : index
    %366 = memref.load %arg4[%c101] : memref<192xf32, #tpu.memory_space<smem>>
    %367 = vector.broadcast %366 : f32 to vector<8x256xf32>
    %368 = arith.mulf %367, %349 : vector<8x256xf32>
    %369 = arith.addf %334, %368 : vector<8x256xf32>
    %c125 = arith.constant 125 : index
    %370 = memref.load %arg4[%c125] : memref<192xf32, #tpu.memory_space<smem>>
    %371 = vector.broadcast %370 : f32 to vector<8x256xf32>
    %372 = arith.mulf %371, %349 : vector<8x256xf32>
    %373 = arith.addf %338, %372 : vector<8x256xf32>
    %c149 = arith.constant 149 : index
    %374 = memref.load %arg4[%c149] : memref<192xf32, #tpu.memory_space<smem>>
    %375 = vector.broadcast %374 : f32 to vector<8x256xf32>
    %376 = arith.mulf %375, %349 : vector<8x256xf32>
    %377 = arith.addf %342, %376 : vector<8x256xf32>
    %c173 = arith.constant 173 : index
    %378 = memref.load %arg4[%c173] : memref<192xf32, #tpu.memory_space<smem>>
    %379 = vector.broadcast %378 : f32 to vector<8x256xf32>
    %380 = arith.mulf %379, %349 : vector<8x256xf32>
    %381 = arith.addf %346, %380 : vector<8x256xf32>
    %c1_i32_46 = arith.constant 1 : i32
    %382 = tpu.dynamic_rotate %140 by %c1_i32_46 dim 1 : vector<8x256xf32>, i32 -> vector<8x256xf32>
    %cst_47 = arith.constant 0.000000e+00 : f32
    %383 = vector.broadcast %cst_47 : f32 to vector<8x256xf32>
    %384 = arith.select %10, %382, %383 : vector<8x256xi1>, vector<8x256xf32>
    %c6_48 = arith.constant 6 : index
    %385 = memref.load %arg4[%c6_48] : memref<192xf32, #tpu.memory_space<smem>>
    %386 = vector.broadcast %385 : f32 to vector<8x256xf32>
    %387 = arith.mulf %386, %384 : vector<8x256xf32>
    %388 = arith.addf %353, %387 : vector<8x256xf32>
    %c30 = arith.constant 30 : index
    %389 = memref.load %arg4[%c30] : memref<192xf32, #tpu.memory_space<smem>>
    %390 = vector.broadcast %389 : f32 to vector<8x256xf32>
    %391 = arith.mulf %390, %384 : vector<8x256xf32>
    %392 = arith.addf %357, %391 : vector<8x256xf32>
    %c54 = arith.constant 54 : index
    %393 = memref.load %arg4[%c54] : memref<192xf32, #tpu.memory_space<smem>>
    %394 = vector.broadcast %393 : f32 to vector<8x256xf32>
    %395 = arith.mulf %394, %384 : vector<8x256xf32>
    %396 = arith.addf %361, %395 : vector<8x256xf32>
    %c78 = arith.constant 78 : index
    %397 = memref.load %arg4[%c78] : memref<192xf32, #tpu.memory_space<smem>>
    %398 = vector.broadcast %397 : f32 to vector<8x256xf32>
    %399 = arith.mulf %398, %384 : vector<8x256xf32>
    %400 = arith.addf %365, %399 : vector<8x256xf32>
    %c102 = arith.constant 102 : index
    %401 = memref.load %arg4[%c102] : memref<192xf32, #tpu.memory_space<smem>>
    %402 = vector.broadcast %401 : f32 to vector<8x256xf32>
    %403 = arith.mulf %402, %384 : vector<8x256xf32>
    %404 = arith.addf %369, %403 : vector<8x256xf32>
    %c126 = arith.constant 126 : index
    %405 = memref.load %arg4[%c126] : memref<192xf32, #tpu.memory_space<smem>>
    %406 = vector.broadcast %405 : f32 to vector<8x256xf32>
    %407 = arith.mulf %406, %384 : vector<8x256xf32>
    %408 = arith.addf %373, %407 : vector<8x256xf32>
    %c150 = arith.constant 150 : index
    %409 = memref.load %arg4[%c150] : memref<192xf32, #tpu.memory_space<smem>>
    %410 = vector.broadcast %409 : f32 to vector<8x256xf32>
    %411 = arith.mulf %410, %384 : vector<8x256xf32>
    %412 = arith.addf %377, %411 : vector<8x256xf32>
    %c174 = arith.constant 174 : index
    %413 = memref.load %arg4[%c174] : memref<192xf32, #tpu.memory_space<smem>>
    %414 = vector.broadcast %413 : f32 to vector<8x256xf32>
    %415 = arith.mulf %414, %384 : vector<8x256xf32>
    %416 = arith.addf %381, %415 : vector<8x256xf32>
    %c7_49 = arith.constant 7 : index
    %417 = memref.load %arg4[%c7_49] : memref<192xf32, #tpu.memory_space<smem>>
    %418 = vector.broadcast %417 : f32 to vector<8x256xf32>
    %419 = arith.mulf %418, %140 : vector<8x256xf32>
    %420 = arith.addf %388, %419 : vector<8x256xf32>
    %c31 = arith.constant 31 : index
    %421 = memref.load %arg4[%c31] : memref<192xf32, #tpu.memory_space<smem>>
    %422 = vector.broadcast %421 : f32 to vector<8x256xf32>
    %423 = arith.mulf %422, %140 : vector<8x256xf32>
    %424 = arith.addf %392, %423 : vector<8x256xf32>
    %c55 = arith.constant 55 : index
    %425 = memref.load %arg4[%c55] : memref<192xf32, #tpu.memory_space<smem>>
    %426 = vector.broadcast %425 : f32 to vector<8x256xf32>
    %427 = arith.mulf %426, %140 : vector<8x256xf32>
    %428 = arith.addf %396, %427 : vector<8x256xf32>
    %c79 = arith.constant 79 : index
    %429 = memref.load %arg4[%c79] : memref<192xf32, #tpu.memory_space<smem>>
    %430 = vector.broadcast %429 : f32 to vector<8x256xf32>
    %431 = arith.mulf %430, %140 : vector<8x256xf32>
    %432 = arith.addf %400, %431 : vector<8x256xf32>
    %c103 = arith.constant 103 : index
    %433 = memref.load %arg4[%c103] : memref<192xf32, #tpu.memory_space<smem>>
    %434 = vector.broadcast %433 : f32 to vector<8x256xf32>
    %435 = arith.mulf %434, %140 : vector<8x256xf32>
    %436 = arith.addf %404, %435 : vector<8x256xf32>
    %c127 = arith.constant 127 : index
    %437 = memref.load %arg4[%c127] : memref<192xf32, #tpu.memory_space<smem>>
    %438 = vector.broadcast %437 : f32 to vector<8x256xf32>
    %439 = arith.mulf %438, %140 : vector<8x256xf32>
    %440 = arith.addf %408, %439 : vector<8x256xf32>
    %c151 = arith.constant 151 : index
    %441 = memref.load %arg4[%c151] : memref<192xf32, #tpu.memory_space<smem>>
    %442 = vector.broadcast %441 : f32 to vector<8x256xf32>
    %443 = arith.mulf %442, %140 : vector<8x256xf32>
    %444 = arith.addf %412, %443 : vector<8x256xf32>
    %c175 = arith.constant 175 : index
    %445 = memref.load %arg4[%c175] : memref<192xf32, #tpu.memory_space<smem>>
    %446 = vector.broadcast %445 : f32 to vector<8x256xf32>
    %447 = arith.mulf %446, %140 : vector<8x256xf32>
    %448 = arith.addf %416, %447 : vector<8x256xf32>
    %c255_i32_50 = arith.constant 255 : i32
    %449 = tpu.dynamic_rotate %140 by %c255_i32_50 dim 1 : vector<8x256xf32>, i32 -> vector<8x256xf32>
    %cst_51 = arith.constant 0.000000e+00 : f32
    %450 = vector.broadcast %cst_51 : f32 to vector<8x256xf32>
    %451 = arith.select %19, %449, %450 : vector<8x256xi1>, vector<8x256xf32>
    %c8_52 = arith.constant 8 : index
    %452 = memref.load %arg4[%c8_52] : memref<192xf32, #tpu.memory_space<smem>>
    %453 = vector.broadcast %452 : f32 to vector<8x256xf32>
    %454 = arith.mulf %453, %451 : vector<8x256xf32>
    %455 = arith.addf %420, %454 : vector<8x256xf32>
    %c32 = arith.constant 32 : index
    %456 = memref.load %arg4[%c32] : memref<192xf32, #tpu.memory_space<smem>>
    %457 = vector.broadcast %456 : f32 to vector<8x256xf32>
    %458 = arith.mulf %457, %451 : vector<8x256xf32>
    %459 = arith.addf %424, %458 : vector<8x256xf32>
    %c56 = arith.constant 56 : index
    %460 = memref.load %arg4[%c56] : memref<192xf32, #tpu.memory_space<smem>>
    %461 = vector.broadcast %460 : f32 to vector<8x256xf32>
    %462 = arith.mulf %461, %451 : vector<8x256xf32>
    %463 = arith.addf %428, %462 : vector<8x256xf32>
    %c80 = arith.constant 80 : index
    %464 = memref.load %arg4[%c80] : memref<192xf32, #tpu.memory_space<smem>>
    %465 = vector.broadcast %464 : f32 to vector<8x256xf32>
    %466 = arith.mulf %465, %451 : vector<8x256xf32>
    %467 = arith.addf %432, %466 : vector<8x256xf32>
    %c104 = arith.constant 104 : index
    %468 = memref.load %arg4[%c104] : memref<192xf32, #tpu.memory_space<smem>>
    %469 = vector.broadcast %468 : f32 to vector<8x256xf32>
    %470 = arith.mulf %469, %451 : vector<8x256xf32>
    %471 = arith.addf %436, %470 : vector<8x256xf32>
    %c128 = arith.constant 128 : index
    %472 = memref.load %arg4[%c128] : memref<192xf32, #tpu.memory_space<smem>>
    %473 = vector.broadcast %472 : f32 to vector<8x256xf32>
    %474 = arith.mulf %473, %451 : vector<8x256xf32>
    %475 = arith.addf %440, %474 : vector<8x256xf32>
    %c152 = arith.constant 152 : index
    %476 = memref.load %arg4[%c152] : memref<192xf32, #tpu.memory_space<smem>>
    %477 = vector.broadcast %476 : f32 to vector<8x256xf32>
    %478 = arith.mulf %477, %451 : vector<8x256xf32>
    %479 = arith.addf %444, %478 : vector<8x256xf32>
    %c176 = arith.constant 176 : index
    %480 = memref.load %arg4[%c176] : memref<192xf32, #tpu.memory_space<smem>>
    %481 = vector.broadcast %480 : f32 to vector<8x256xf32>
    %482 = arith.mulf %481, %451 : vector<8x256xf32>
    %483 = arith.addf %448, %482 : vector<8x256xf32>
    %c1_i32_53 = arith.constant 1 : i32
    %484 = tpu.dynamic_rotate %149 by %c1_i32_53 dim 1 : vector<8x256xf32>, i32 -> vector<8x256xf32>
    %cst_54 = arith.constant 0.000000e+00 : f32
    %485 = vector.broadcast %cst_54 : f32 to vector<8x256xf32>
    %486 = arith.select %10, %484, %485 : vector<8x256xi1>, vector<8x256xf32>
    %c9_55 = arith.constant 9 : index
    %487 = memref.load %arg4[%c9_55] : memref<192xf32, #tpu.memory_space<smem>>
    %488 = vector.broadcast %487 : f32 to vector<8x256xf32>
    %489 = arith.mulf %488, %486 : vector<8x256xf32>
    %490 = arith.addf %455, %489 : vector<8x256xf32>
    %c33 = arith.constant 33 : index
    %491 = memref.load %arg4[%c33] : memref<192xf32, #tpu.memory_space<smem>>
    %492 = vector.broadcast %491 : f32 to vector<8x256xf32>
    %493 = arith.mulf %492, %486 : vector<8x256xf32>
    %494 = arith.addf %459, %493 : vector<8x256xf32>
    %c57 = arith.constant 57 : index
    %495 = memref.load %arg4[%c57] : memref<192xf32, #tpu.memory_space<smem>>
    %496 = vector.broadcast %495 : f32 to vector<8x256xf32>
    %497 = arith.mulf %496, %486 : vector<8x256xf32>
    %498 = arith.addf %463, %497 : vector<8x256xf32>
    %c81 = arith.constant 81 : index
    %499 = memref.load %arg4[%c81] : memref<192xf32, #tpu.memory_space<smem>>
    %500 = vector.broadcast %499 : f32 to vector<8x256xf32>
    %501 = arith.mulf %500, %486 : vector<8x256xf32>
    %502 = arith.addf %467, %501 : vector<8x256xf32>
    %c105 = arith.constant 105 : index
    %503 = memref.load %arg4[%c105] : memref<192xf32, #tpu.memory_space<smem>>
    %504 = vector.broadcast %503 : f32 to vector<8x256xf32>
    %505 = arith.mulf %504, %486 : vector<8x256xf32>
    %506 = arith.addf %471, %505 : vector<8x256xf32>
    %c129 = arith.constant 129 : index
    %507 = memref.load %arg4[%c129] : memref<192xf32, #tpu.memory_space<smem>>
    %508 = vector.broadcast %507 : f32 to vector<8x256xf32>
    %509 = arith.mulf %508, %486 : vector<8x256xf32>
    %510 = arith.addf %475, %509 : vector<8x256xf32>
    %c153 = arith.constant 153 : index
    %511 = memref.load %arg4[%c153] : memref<192xf32, #tpu.memory_space<smem>>
    %512 = vector.broadcast %511 : f32 to vector<8x256xf32>
    %513 = arith.mulf %512, %486 : vector<8x256xf32>
    %514 = arith.addf %479, %513 : vector<8x256xf32>
    %c177 = arith.constant 177 : index
    %515 = memref.load %arg4[%c177] : memref<192xf32, #tpu.memory_space<smem>>
    %516 = vector.broadcast %515 : f32 to vector<8x256xf32>
    %517 = arith.mulf %516, %486 : vector<8x256xf32>
    %518 = arith.addf %483, %517 : vector<8x256xf32>
    %c10_56 = arith.constant 10 : index
    %519 = memref.load %arg4[%c10_56] : memref<192xf32, #tpu.memory_space<smem>>
    %520 = vector.broadcast %519 : f32 to vector<8x256xf32>
    %521 = arith.mulf %520, %149 : vector<8x256xf32>
    %522 = arith.addf %490, %521 : vector<8x256xf32>
    %c34 = arith.constant 34 : index
    %523 = memref.load %arg4[%c34] : memref<192xf32, #tpu.memory_space<smem>>
    %524 = vector.broadcast %523 : f32 to vector<8x256xf32>
    %525 = arith.mulf %524, %149 : vector<8x256xf32>
    %526 = arith.addf %494, %525 : vector<8x256xf32>
    %c58 = arith.constant 58 : index
    %527 = memref.load %arg4[%c58] : memref<192xf32, #tpu.memory_space<smem>>
    %528 = vector.broadcast %527 : f32 to vector<8x256xf32>
    %529 = arith.mulf %528, %149 : vector<8x256xf32>
    %530 = arith.addf %498, %529 : vector<8x256xf32>
    %c82 = arith.constant 82 : index
    %531 = memref.load %arg4[%c82] : memref<192xf32, #tpu.memory_space<smem>>
    %532 = vector.broadcast %531 : f32 to vector<8x256xf32>
    %533 = arith.mulf %532, %149 : vector<8x256xf32>
    %534 = arith.addf %502, %533 : vector<8x256xf32>
    %c106 = arith.constant 106 : index
    %535 = memref.load %arg4[%c106] : memref<192xf32, #tpu.memory_space<smem>>
    %536 = vector.broadcast %535 : f32 to vector<8x256xf32>
    %537 = arith.mulf %536, %149 : vector<8x256xf32>
    %538 = arith.addf %506, %537 : vector<8x256xf32>
    %c130 = arith.constant 130 : index
    %539 = memref.load %arg4[%c130] : memref<192xf32, #tpu.memory_space<smem>>
    %540 = vector.broadcast %539 : f32 to vector<8x256xf32>
    %541 = arith.mulf %540, %149 : vector<8x256xf32>
    %542 = arith.addf %510, %541 : vector<8x256xf32>
    %c154 = arith.constant 154 : index
    %543 = memref.load %arg4[%c154] : memref<192xf32, #tpu.memory_space<smem>>
    %544 = vector.broadcast %543 : f32 to vector<8x256xf32>
    %545 = arith.mulf %544, %149 : vector<8x256xf32>
    %546 = arith.addf %514, %545 : vector<8x256xf32>
    %c178 = arith.constant 178 : index
    %547 = memref.load %arg4[%c178] : memref<192xf32, #tpu.memory_space<smem>>
    %548 = vector.broadcast %547 : f32 to vector<8x256xf32>
    %549 = arith.mulf %548, %149 : vector<8x256xf32>
    %550 = arith.addf %518, %549 : vector<8x256xf32>
    %c255_i32_57 = arith.constant 255 : i32
    %551 = tpu.dynamic_rotate %149 by %c255_i32_57 dim 1 : vector<8x256xf32>, i32 -> vector<8x256xf32>
    %cst_58 = arith.constant 0.000000e+00 : f32
    %552 = vector.broadcast %cst_58 : f32 to vector<8x256xf32>
    %553 = arith.select %19, %551, %552 : vector<8x256xi1>, vector<8x256xf32>
    %c11_59 = arith.constant 11 : index
    %554 = memref.load %arg4[%c11_59] : memref<192xf32, #tpu.memory_space<smem>>
    %555 = vector.broadcast %554 : f32 to vector<8x256xf32>
    %556 = arith.mulf %555, %553 : vector<8x256xf32>
    %557 = arith.addf %522, %556 : vector<8x256xf32>
    %c35 = arith.constant 35 : index
    %558 = memref.load %arg4[%c35] : memref<192xf32, #tpu.memory_space<smem>>
    %559 = vector.broadcast %558 : f32 to vector<8x256xf32>
    %560 = arith.mulf %559, %553 : vector<8x256xf32>
    %561 = arith.addf %526, %560 : vector<8x256xf32>
    %c59 = arith.constant 59 : index
    %562 = memref.load %arg4[%c59] : memref<192xf32, #tpu.memory_space<smem>>
    %563 = vector.broadcast %562 : f32 to vector<8x256xf32>
    %564 = arith.mulf %563, %553 : vector<8x256xf32>
    %565 = arith.addf %530, %564 : vector<8x256xf32>
    %c83 = arith.constant 83 : index
    %566 = memref.load %arg4[%c83] : memref<192xf32, #tpu.memory_space<smem>>
    %567 = vector.broadcast %566 : f32 to vector<8x256xf32>
    %568 = arith.mulf %567, %553 : vector<8x256xf32>
    %569 = arith.addf %534, %568 : vector<8x256xf32>
    %c107 = arith.constant 107 : index
    %570 = memref.load %arg4[%c107] : memref<192xf32, #tpu.memory_space<smem>>
    %571 = vector.broadcast %570 : f32 to vector<8x256xf32>
    %572 = arith.mulf %571, %553 : vector<8x256xf32>
    %573 = arith.addf %538, %572 : vector<8x256xf32>
    %c131 = arith.constant 131 : index
    %574 = memref.load %arg4[%c131] : memref<192xf32, #tpu.memory_space<smem>>
    %575 = vector.broadcast %574 : f32 to vector<8x256xf32>
    %576 = arith.mulf %575, %553 : vector<8x256xf32>
    %577 = arith.addf %542, %576 : vector<8x256xf32>
    %c155 = arith.constant 155 : index
    %578 = memref.load %arg4[%c155] : memref<192xf32, #tpu.memory_space<smem>>
    %579 = vector.broadcast %578 : f32 to vector<8x256xf32>
    %580 = arith.mulf %579, %553 : vector<8x256xf32>
    %581 = arith.addf %546, %580 : vector<8x256xf32>
    %c179 = arith.constant 179 : index
    %582 = memref.load %arg4[%c179] : memref<192xf32, #tpu.memory_space<smem>>
    %583 = vector.broadcast %582 : f32 to vector<8x256xf32>
    %584 = arith.mulf %583, %553 : vector<8x256xf32>
    %585 = arith.addf %550, %584 : vector<8x256xf32>
    %c1_i32_60 = arith.constant 1 : i32
    %586 = tpu.dynamic_rotate %158 by %c1_i32_60 dim 1 : vector<8x256xf32>, i32 -> vector<8x256xf32>
    %cst_61 = arith.constant 0.000000e+00 : f32
    %587 = vector.broadcast %cst_61 : f32 to vector<8x256xf32>
    %588 = arith.select %10, %586, %587 : vector<8x256xi1>, vector<8x256xf32>
    %c12_62 = arith.constant 12 : index
    %589 = memref.load %arg4[%c12_62] : memref<192xf32, #tpu.memory_space<smem>>
    %590 = vector.broadcast %589 : f32 to vector<8x256xf32>
    %591 = arith.mulf %590, %588 : vector<8x256xf32>
    %592 = arith.addf %557, %591 : vector<8x256xf32>
    %c36 = arith.constant 36 : index
    %593 = memref.load %arg4[%c36] : memref<192xf32, #tpu.memory_space<smem>>
    %594 = vector.broadcast %593 : f32 to vector<8x256xf32>
    %595 = arith.mulf %594, %588 : vector<8x256xf32>
    %596 = arith.addf %561, %595 : vector<8x256xf32>
    %c60 = arith.constant 60 : index
    %597 = memref.load %arg4[%c60] : memref<192xf32, #tpu.memory_space<smem>>
    %598 = vector.broadcast %597 : f32 to vector<8x256xf32>
    %599 = arith.mulf %598, %588 : vector<8x256xf32>
    %600 = arith.addf %565, %599 : vector<8x256xf32>
    %c84 = arith.constant 84 : index
    %601 = memref.load %arg4[%c84] : memref<192xf32, #tpu.memory_space<smem>>
    %602 = vector.broadcast %601 : f32 to vector<8x256xf32>
    %603 = arith.mulf %602, %588 : vector<8x256xf32>
    %604 = arith.addf %569, %603 : vector<8x256xf32>
    %c108 = arith.constant 108 : index
    %605 = memref.load %arg4[%c108] : memref<192xf32, #tpu.memory_space<smem>>
    %606 = vector.broadcast %605 : f32 to vector<8x256xf32>
    %607 = arith.mulf %606, %588 : vector<8x256xf32>
    %608 = arith.addf %573, %607 : vector<8x256xf32>
    %c132 = arith.constant 132 : index
    %609 = memref.load %arg4[%c132] : memref<192xf32, #tpu.memory_space<smem>>
    %610 = vector.broadcast %609 : f32 to vector<8x256xf32>
    %611 = arith.mulf %610, %588 : vector<8x256xf32>
    %612 = arith.addf %577, %611 : vector<8x256xf32>
    %c156 = arith.constant 156 : index
    %613 = memref.load %arg4[%c156] : memref<192xf32, #tpu.memory_space<smem>>
    %614 = vector.broadcast %613 : f32 to vector<8x256xf32>
    %615 = arith.mulf %614, %588 : vector<8x256xf32>
    %616 = arith.addf %581, %615 : vector<8x256xf32>
    %c180 = arith.constant 180 : index
    %617 = memref.load %arg4[%c180] : memref<192xf32, #tpu.memory_space<smem>>
    %618 = vector.broadcast %617 : f32 to vector<8x256xf32>
    %619 = arith.mulf %618, %588 : vector<8x256xf32>
    %620 = arith.addf %585, %619 : vector<8x256xf32>
    %c13_63 = arith.constant 13 : index
    %621 = memref.load %arg4[%c13_63] : memref<192xf32, #tpu.memory_space<smem>>
    %622 = vector.broadcast %621 : f32 to vector<8x256xf32>
    %623 = arith.mulf %622, %158 : vector<8x256xf32>
    %624 = arith.addf %592, %623 : vector<8x256xf32>
    %c37 = arith.constant 37 : index
    %625 = memref.load %arg4[%c37] : memref<192xf32, #tpu.memory_space<smem>>
    %626 = vector.broadcast %625 : f32 to vector<8x256xf32>
    %627 = arith.mulf %626, %158 : vector<8x256xf32>
    %628 = arith.addf %596, %627 : vector<8x256xf32>
    %c61 = arith.constant 61 : index
    %629 = memref.load %arg4[%c61] : memref<192xf32, #tpu.memory_space<smem>>
    %630 = vector.broadcast %629 : f32 to vector<8x256xf32>
    %631 = arith.mulf %630, %158 : vector<8x256xf32>
    %632 = arith.addf %600, %631 : vector<8x256xf32>
    %c85 = arith.constant 85 : index
    %633 = memref.load %arg4[%c85] : memref<192xf32, #tpu.memory_space<smem>>
    %634 = vector.broadcast %633 : f32 to vector<8x256xf32>
    %635 = arith.mulf %634, %158 : vector<8x256xf32>
    %636 = arith.addf %604, %635 : vector<8x256xf32>
    %c109 = arith.constant 109 : index
    %637 = memref.load %arg4[%c109] : memref<192xf32, #tpu.memory_space<smem>>
    %638 = vector.broadcast %637 : f32 to vector<8x256xf32>
    %639 = arith.mulf %638, %158 : vector<8x256xf32>
    %640 = arith.addf %608, %639 : vector<8x256xf32>
    %c133 = arith.constant 133 : index
    %641 = memref.load %arg4[%c133] : memref<192xf32, #tpu.memory_space<smem>>
    %642 = vector.broadcast %641 : f32 to vector<8x256xf32>
    %643 = arith.mulf %642, %158 : vector<8x256xf32>
    %644 = arith.addf %612, %643 : vector<8x256xf32>
    %c157 = arith.constant 157 : index
    %645 = memref.load %arg4[%c157] : memref<192xf32, #tpu.memory_space<smem>>
    %646 = vector.broadcast %645 : f32 to vector<8x256xf32>
    %647 = arith.mulf %646, %158 : vector<8x256xf32>
    %648 = arith.addf %616, %647 : vector<8x256xf32>
    %c181 = arith.constant 181 : index
    %649 = memref.load %arg4[%c181] : memref<192xf32, #tpu.memory_space<smem>>
    %650 = vector.broadcast %649 : f32 to vector<8x256xf32>
    %651 = arith.mulf %650, %158 : vector<8x256xf32>
    %652 = arith.addf %620, %651 : vector<8x256xf32>
    %c255_i32_64 = arith.constant 255 : i32
    %653 = tpu.dynamic_rotate %158 by %c255_i32_64 dim 1 : vector<8x256xf32>, i32 -> vector<8x256xf32>
    %cst_65 = arith.constant 0.000000e+00 : f32
    %654 = vector.broadcast %cst_65 : f32 to vector<8x256xf32>
    %655 = arith.select %19, %653, %654 : vector<8x256xi1>, vector<8x256xf32>
    %c14_66 = arith.constant 14 : index
    %656 = memref.load %arg4[%c14_66] : memref<192xf32, #tpu.memory_space<smem>>
    %657 = vector.broadcast %656 : f32 to vector<8x256xf32>
    %658 = arith.mulf %657, %655 : vector<8x256xf32>
    %659 = arith.addf %624, %658 : vector<8x256xf32>
    %c38 = arith.constant 38 : index
    %660 = memref.load %arg4[%c38] : memref<192xf32, #tpu.memory_space<smem>>
    %661 = vector.broadcast %660 : f32 to vector<8x256xf32>
    %662 = arith.mulf %661, %655 : vector<8x256xf32>
    %663 = arith.addf %628, %662 : vector<8x256xf32>
    %c62 = arith.constant 62 : index
    %664 = memref.load %arg4[%c62] : memref<192xf32, #tpu.memory_space<smem>>
    %665 = vector.broadcast %664 : f32 to vector<8x256xf32>
    %666 = arith.mulf %665, %655 : vector<8x256xf32>
    %667 = arith.addf %632, %666 : vector<8x256xf32>
    %c86 = arith.constant 86 : index
    %668 = memref.load %arg4[%c86] : memref<192xf32, #tpu.memory_space<smem>>
    %669 = vector.broadcast %668 : f32 to vector<8x256xf32>
    %670 = arith.mulf %669, %655 : vector<8x256xf32>
    %671 = arith.addf %636, %670 : vector<8x256xf32>
    %c110 = arith.constant 110 : index
    %672 = memref.load %arg4[%c110] : memref<192xf32, #tpu.memory_space<smem>>
    %673 = vector.broadcast %672 : f32 to vector<8x256xf32>
    %674 = arith.mulf %673, %655 : vector<8x256xf32>
    %675 = arith.addf %640, %674 : vector<8x256xf32>
    %c134 = arith.constant 134 : index
    %676 = memref.load %arg4[%c134] : memref<192xf32, #tpu.memory_space<smem>>
    %677 = vector.broadcast %676 : f32 to vector<8x256xf32>
    %678 = arith.mulf %677, %655 : vector<8x256xf32>
    %679 = arith.addf %644, %678 : vector<8x256xf32>
    %c158 = arith.constant 158 : index
    %680 = memref.load %arg4[%c158] : memref<192xf32, #tpu.memory_space<smem>>
    %681 = vector.broadcast %680 : f32 to vector<8x256xf32>
    %682 = arith.mulf %681, %655 : vector<8x256xf32>
    %683 = arith.addf %648, %682 : vector<8x256xf32>
    %c182 = arith.constant 182 : index
    %684 = memref.load %arg4[%c182] : memref<192xf32, #tpu.memory_space<smem>>
    %685 = vector.broadcast %684 : f32 to vector<8x256xf32>
    %686 = arith.mulf %685, %655 : vector<8x256xf32>
    %687 = arith.addf %652, %686 : vector<8x256xf32>
    %c1_i32_67 = arith.constant 1 : i32
    %688 = tpu.dynamic_rotate %167 by %c1_i32_67 dim 1 : vector<8x256xf32>, i32 -> vector<8x256xf32>
    %cst_68 = arith.constant 0.000000e+00 : f32
    %689 = vector.broadcast %cst_68 : f32 to vector<8x256xf32>
    %690 = arith.select %10, %688, %689 : vector<8x256xi1>, vector<8x256xf32>
    %c15_69 = arith.constant 15 : index
    %691 = memref.load %arg4[%c15_69] : memref<192xf32, #tpu.memory_space<smem>>
    %692 = vector.broadcast %691 : f32 to vector<8x256xf32>
    %693 = arith.mulf %692, %690 : vector<8x256xf32>
    %694 = arith.addf %659, %693 : vector<8x256xf32>
    %c39 = arith.constant 39 : index
    %695 = memref.load %arg4[%c39] : memref<192xf32, #tpu.memory_space<smem>>
    %696 = vector.broadcast %695 : f32 to vector<8x256xf32>
    %697 = arith.mulf %696, %690 : vector<8x256xf32>
    %698 = arith.addf %663, %697 : vector<8x256xf32>
    %c63 = arith.constant 63 : index
    %699 = memref.load %arg4[%c63] : memref<192xf32, #tpu.memory_space<smem>>
    %700 = vector.broadcast %699 : f32 to vector<8x256xf32>
    %701 = arith.mulf %700, %690 : vector<8x256xf32>
    %702 = arith.addf %667, %701 : vector<8x256xf32>
    %c87 = arith.constant 87 : index
    %703 = memref.load %arg4[%c87] : memref<192xf32, #tpu.memory_space<smem>>
    %704 = vector.broadcast %703 : f32 to vector<8x256xf32>
    %705 = arith.mulf %704, %690 : vector<8x256xf32>
    %706 = arith.addf %671, %705 : vector<8x256xf32>
    %c111 = arith.constant 111 : index
    %707 = memref.load %arg4[%c111] : memref<192xf32, #tpu.memory_space<smem>>
    %708 = vector.broadcast %707 : f32 to vector<8x256xf32>
    %709 = arith.mulf %708, %690 : vector<8x256xf32>
    %710 = arith.addf %675, %709 : vector<8x256xf32>
    %c135 = arith.constant 135 : index
    %711 = memref.load %arg4[%c135] : memref<192xf32, #tpu.memory_space<smem>>
    %712 = vector.broadcast %711 : f32 to vector<8x256xf32>
    %713 = arith.mulf %712, %690 : vector<8x256xf32>
    %714 = arith.addf %679, %713 : vector<8x256xf32>
    %c159 = arith.constant 159 : index
    %715 = memref.load %arg4[%c159] : memref<192xf32, #tpu.memory_space<smem>>
    %716 = vector.broadcast %715 : f32 to vector<8x256xf32>
    %717 = arith.mulf %716, %690 : vector<8x256xf32>
    %718 = arith.addf %683, %717 : vector<8x256xf32>
    %c183 = arith.constant 183 : index
    %719 = memref.load %arg4[%c183] : memref<192xf32, #tpu.memory_space<smem>>
    %720 = vector.broadcast %719 : f32 to vector<8x256xf32>
    %721 = arith.mulf %720, %690 : vector<8x256xf32>
    %722 = arith.addf %687, %721 : vector<8x256xf32>
    %c16_70 = arith.constant 16 : index
    %723 = memref.load %arg4[%c16_70] : memref<192xf32, #tpu.memory_space<smem>>
    %724 = vector.broadcast %723 : f32 to vector<8x256xf32>
    %725 = arith.mulf %724, %167 : vector<8x256xf32>
    %726 = arith.addf %694, %725 : vector<8x256xf32>
    %c40 = arith.constant 40 : index
    %727 = memref.load %arg4[%c40] : memref<192xf32, #tpu.memory_space<smem>>
    %728 = vector.broadcast %727 : f32 to vector<8x256xf32>
    %729 = arith.mulf %728, %167 : vector<8x256xf32>
    %730 = arith.addf %698, %729 : vector<8x256xf32>
    %c64 = arith.constant 64 : index
    %731 = memref.load %arg4[%c64] : memref<192xf32, #tpu.memory_space<smem>>
    %732 = vector.broadcast %731 : f32 to vector<8x256xf32>
    %733 = arith.mulf %732, %167 : vector<8x256xf32>
    %734 = arith.addf %702, %733 : vector<8x256xf32>
    %c88 = arith.constant 88 : index
    %735 = memref.load %arg4[%c88] : memref<192xf32, #tpu.memory_space<smem>>
    %736 = vector.broadcast %735 : f32 to vector<8x256xf32>
    %737 = arith.mulf %736, %167 : vector<8x256xf32>
    %738 = arith.addf %706, %737 : vector<8x256xf32>
    %c112 = arith.constant 112 : index
    %739 = memref.load %arg4[%c112] : memref<192xf32, #tpu.memory_space<smem>>
    %740 = vector.broadcast %739 : f32 to vector<8x256xf32>
    %741 = arith.mulf %740, %167 : vector<8x256xf32>
    %742 = arith.addf %710, %741 : vector<8x256xf32>
    %c136 = arith.constant 136 : index
    %743 = memref.load %arg4[%c136] : memref<192xf32, #tpu.memory_space<smem>>
    %744 = vector.broadcast %743 : f32 to vector<8x256xf32>
    %745 = arith.mulf %744, %167 : vector<8x256xf32>
    %746 = arith.addf %714, %745 : vector<8x256xf32>
    %c160 = arith.constant 160 : index
    %747 = memref.load %arg4[%c160] : memref<192xf32, #tpu.memory_space<smem>>
    %748 = vector.broadcast %747 : f32 to vector<8x256xf32>
    %749 = arith.mulf %748, %167 : vector<8x256xf32>
    %750 = arith.addf %718, %749 : vector<8x256xf32>
    %c184 = arith.constant 184 : index
    %751 = memref.load %arg4[%c184] : memref<192xf32, #tpu.memory_space<smem>>
    %752 = vector.broadcast %751 : f32 to vector<8x256xf32>
    %753 = arith.mulf %752, %167 : vector<8x256xf32>
    %754 = arith.addf %722, %753 : vector<8x256xf32>
    %c255_i32_71 = arith.constant 255 : i32
    %755 = tpu.dynamic_rotate %167 by %c255_i32_71 dim 1 : vector<8x256xf32>, i32 -> vector<8x256xf32>
    %cst_72 = arith.constant 0.000000e+00 : f32
    %756 = vector.broadcast %cst_72 : f32 to vector<8x256xf32>
    %757 = arith.select %19, %755, %756 : vector<8x256xi1>, vector<8x256xf32>
    %c17_73 = arith.constant 17 : index
    %758 = memref.load %arg4[%c17_73] : memref<192xf32, #tpu.memory_space<smem>>
    %759 = vector.broadcast %758 : f32 to vector<8x256xf32>
    %760 = arith.mulf %759, %757 : vector<8x256xf32>
    %761 = arith.addf %726, %760 : vector<8x256xf32>
    %c41 = arith.constant 41 : index
    %762 = memref.load %arg4[%c41] : memref<192xf32, #tpu.memory_space<smem>>
    %763 = vector.broadcast %762 : f32 to vector<8x256xf32>
    %764 = arith.mulf %763, %757 : vector<8x256xf32>
    %765 = arith.addf %730, %764 : vector<8x256xf32>
    %c65 = arith.constant 65 : index
    %766 = memref.load %arg4[%c65] : memref<192xf32, #tpu.memory_space<smem>>
    %767 = vector.broadcast %766 : f32 to vector<8x256xf32>
    %768 = arith.mulf %767, %757 : vector<8x256xf32>
    %769 = arith.addf %734, %768 : vector<8x256xf32>
    %c89 = arith.constant 89 : index
    %770 = memref.load %arg4[%c89] : memref<192xf32, #tpu.memory_space<smem>>
    %771 = vector.broadcast %770 : f32 to vector<8x256xf32>
    %772 = arith.mulf %771, %757 : vector<8x256xf32>
    %773 = arith.addf %738, %772 : vector<8x256xf32>
    %c113 = arith.constant 113 : index
    %774 = memref.load %arg4[%c113] : memref<192xf32, #tpu.memory_space<smem>>
    %775 = vector.broadcast %774 : f32 to vector<8x256xf32>
    %776 = arith.mulf %775, %757 : vector<8x256xf32>
    %777 = arith.addf %742, %776 : vector<8x256xf32>
    %c137 = arith.constant 137 : index
    %778 = memref.load %arg4[%c137] : memref<192xf32, #tpu.memory_space<smem>>
    %779 = vector.broadcast %778 : f32 to vector<8x256xf32>
    %780 = arith.mulf %779, %757 : vector<8x256xf32>
    %781 = arith.addf %746, %780 : vector<8x256xf32>
    %c161 = arith.constant 161 : index
    %782 = memref.load %arg4[%c161] : memref<192xf32, #tpu.memory_space<smem>>
    %783 = vector.broadcast %782 : f32 to vector<8x256xf32>
    %784 = arith.mulf %783, %757 : vector<8x256xf32>
    %785 = arith.addf %750, %784 : vector<8x256xf32>
    %c185 = arith.constant 185 : index
    %786 = memref.load %arg4[%c185] : memref<192xf32, #tpu.memory_space<smem>>
    %787 = vector.broadcast %786 : f32 to vector<8x256xf32>
    %788 = arith.mulf %787, %757 : vector<8x256xf32>
    %789 = arith.addf %754, %788 : vector<8x256xf32>
    %c1_i32_74 = arith.constant 1 : i32
    %790 = tpu.dynamic_rotate %176 by %c1_i32_74 dim 1 : vector<8x256xf32>, i32 -> vector<8x256xf32>
    %cst_75 = arith.constant 0.000000e+00 : f32
    %791 = vector.broadcast %cst_75 : f32 to vector<8x256xf32>
    %792 = arith.select %10, %790, %791 : vector<8x256xi1>, vector<8x256xf32>
    %c18_76 = arith.constant 18 : index
    %793 = memref.load %arg4[%c18_76] : memref<192xf32, #tpu.memory_space<smem>>
    %794 = vector.broadcast %793 : f32 to vector<8x256xf32>
    %795 = arith.mulf %794, %792 : vector<8x256xf32>
    %796 = arith.addf %761, %795 : vector<8x256xf32>
    %c42 = arith.constant 42 : index
    %797 = memref.load %arg4[%c42] : memref<192xf32, #tpu.memory_space<smem>>
    %798 = vector.broadcast %797 : f32 to vector<8x256xf32>
    %799 = arith.mulf %798, %792 : vector<8x256xf32>
    %800 = arith.addf %765, %799 : vector<8x256xf32>
    %c66 = arith.constant 66 : index
    %801 = memref.load %arg4[%c66] : memref<192xf32, #tpu.memory_space<smem>>
    %802 = vector.broadcast %801 : f32 to vector<8x256xf32>
    %803 = arith.mulf %802, %792 : vector<8x256xf32>
    %804 = arith.addf %769, %803 : vector<8x256xf32>
    %c90 = arith.constant 90 : index
    %805 = memref.load %arg4[%c90] : memref<192xf32, #tpu.memory_space<smem>>
    %806 = vector.broadcast %805 : f32 to vector<8x256xf32>
    %807 = arith.mulf %806, %792 : vector<8x256xf32>
    %808 = arith.addf %773, %807 : vector<8x256xf32>
    %c114 = arith.constant 114 : index
    %809 = memref.load %arg4[%c114] : memref<192xf32, #tpu.memory_space<smem>>
    %810 = vector.broadcast %809 : f32 to vector<8x256xf32>
    %811 = arith.mulf %810, %792 : vector<8x256xf32>
    %812 = arith.addf %777, %811 : vector<8x256xf32>
    %c138 = arith.constant 138 : index
    %813 = memref.load %arg4[%c138] : memref<192xf32, #tpu.memory_space<smem>>
    %814 = vector.broadcast %813 : f32 to vector<8x256xf32>
    %815 = arith.mulf %814, %792 : vector<8x256xf32>
    %816 = arith.addf %781, %815 : vector<8x256xf32>
    %c162 = arith.constant 162 : index
    %817 = memref.load %arg4[%c162] : memref<192xf32, #tpu.memory_space<smem>>
    %818 = vector.broadcast %817 : f32 to vector<8x256xf32>
    %819 = arith.mulf %818, %792 : vector<8x256xf32>
    %820 = arith.addf %785, %819 : vector<8x256xf32>
    %c186 = arith.constant 186 : index
    %821 = memref.load %arg4[%c186] : memref<192xf32, #tpu.memory_space<smem>>
    %822 = vector.broadcast %821 : f32 to vector<8x256xf32>
    %823 = arith.mulf %822, %792 : vector<8x256xf32>
    %824 = arith.addf %789, %823 : vector<8x256xf32>
    %c19_77 = arith.constant 19 : index
    %825 = memref.load %arg4[%c19_77] : memref<192xf32, #tpu.memory_space<smem>>
    %826 = vector.broadcast %825 : f32 to vector<8x256xf32>
    %827 = arith.mulf %826, %176 : vector<8x256xf32>
    %828 = arith.addf %796, %827 : vector<8x256xf32>
    %c43 = arith.constant 43 : index
    %829 = memref.load %arg4[%c43] : memref<192xf32, #tpu.memory_space<smem>>
    %830 = vector.broadcast %829 : f32 to vector<8x256xf32>
    %831 = arith.mulf %830, %176 : vector<8x256xf32>
    %832 = arith.addf %800, %831 : vector<8x256xf32>
    %c67 = arith.constant 67 : index
    %833 = memref.load %arg4[%c67] : memref<192xf32, #tpu.memory_space<smem>>
    %834 = vector.broadcast %833 : f32 to vector<8x256xf32>
    %835 = arith.mulf %834, %176 : vector<8x256xf32>
    %836 = arith.addf %804, %835 : vector<8x256xf32>
    %c91 = arith.constant 91 : index
    %837 = memref.load %arg4[%c91] : memref<192xf32, #tpu.memory_space<smem>>
    %838 = vector.broadcast %837 : f32 to vector<8x256xf32>
    %839 = arith.mulf %838, %176 : vector<8x256xf32>
    %840 = arith.addf %808, %839 : vector<8x256xf32>
    %c115 = arith.constant 115 : index
    %841 = memref.load %arg4[%c115] : memref<192xf32, #tpu.memory_space<smem>>
    %842 = vector.broadcast %841 : f32 to vector<8x256xf32>
    %843 = arith.mulf %842, %176 : vector<8x256xf32>
    %844 = arith.addf %812, %843 : vector<8x256xf32>
    %c139 = arith.constant 139 : index
    %845 = memref.load %arg4[%c139] : memref<192xf32, #tpu.memory_space<smem>>
    %846 = vector.broadcast %845 : f32 to vector<8x256xf32>
    %847 = arith.mulf %846, %176 : vector<8x256xf32>
    %848 = arith.addf %816, %847 : vector<8x256xf32>
    %c163 = arith.constant 163 : index
    %849 = memref.load %arg4[%c163] : memref<192xf32, #tpu.memory_space<smem>>
    %850 = vector.broadcast %849 : f32 to vector<8x256xf32>
    %851 = arith.mulf %850, %176 : vector<8x256xf32>
    %852 = arith.addf %820, %851 : vector<8x256xf32>
    %c187 = arith.constant 187 : index
    %853 = memref.load %arg4[%c187] : memref<192xf32, #tpu.memory_space<smem>>
    %854 = vector.broadcast %853 : f32 to vector<8x256xf32>
    %855 = arith.mulf %854, %176 : vector<8x256xf32>
    %856 = arith.addf %824, %855 : vector<8x256xf32>
    %c255_i32_78 = arith.constant 255 : i32
    %857 = tpu.dynamic_rotate %176 by %c255_i32_78 dim 1 : vector<8x256xf32>, i32 -> vector<8x256xf32>
    %cst_79 = arith.constant 0.000000e+00 : f32
    %858 = vector.broadcast %cst_79 : f32 to vector<8x256xf32>
    %859 = arith.select %19, %857, %858 : vector<8x256xi1>, vector<8x256xf32>
    %c20_80 = arith.constant 20 : index
    %860 = memref.load %arg4[%c20_80] : memref<192xf32, #tpu.memory_space<smem>>
    %861 = vector.broadcast %860 : f32 to vector<8x256xf32>
    %862 = arith.mulf %861, %859 : vector<8x256xf32>
    %863 = arith.addf %828, %862 : vector<8x256xf32>
    %c44 = arith.constant 44 : index
    %864 = memref.load %arg4[%c44] : memref<192xf32, #tpu.memory_space<smem>>
    %865 = vector.broadcast %864 : f32 to vector<8x256xf32>
    %866 = arith.mulf %865, %859 : vector<8x256xf32>
    %867 = arith.addf %832, %866 : vector<8x256xf32>
    %c68 = arith.constant 68 : index
    %868 = memref.load %arg4[%c68] : memref<192xf32, #tpu.memory_space<smem>>
    %869 = vector.broadcast %868 : f32 to vector<8x256xf32>
    %870 = arith.mulf %869, %859 : vector<8x256xf32>
    %871 = arith.addf %836, %870 : vector<8x256xf32>
    %c92 = arith.constant 92 : index
    %872 = memref.load %arg4[%c92] : memref<192xf32, #tpu.memory_space<smem>>
    %873 = vector.broadcast %872 : f32 to vector<8x256xf32>
    %874 = arith.mulf %873, %859 : vector<8x256xf32>
    %875 = arith.addf %840, %874 : vector<8x256xf32>
    %c116 = arith.constant 116 : index
    %876 = memref.load %arg4[%c116] : memref<192xf32, #tpu.memory_space<smem>>
    %877 = vector.broadcast %876 : f32 to vector<8x256xf32>
    %878 = arith.mulf %877, %859 : vector<8x256xf32>
    %879 = arith.addf %844, %878 : vector<8x256xf32>
    %c140 = arith.constant 140 : index
    %880 = memref.load %arg4[%c140] : memref<192xf32, #tpu.memory_space<smem>>
    %881 = vector.broadcast %880 : f32 to vector<8x256xf32>
    %882 = arith.mulf %881, %859 : vector<8x256xf32>
    %883 = arith.addf %848, %882 : vector<8x256xf32>
    %c164 = arith.constant 164 : index
    %884 = memref.load %arg4[%c164] : memref<192xf32, #tpu.memory_space<smem>>
    %885 = vector.broadcast %884 : f32 to vector<8x256xf32>
    %886 = arith.mulf %885, %859 : vector<8x256xf32>
    %887 = arith.addf %852, %886 : vector<8x256xf32>
    %c188 = arith.constant 188 : index
    %888 = memref.load %arg4[%c188] : memref<192xf32, #tpu.memory_space<smem>>
    %889 = vector.broadcast %888 : f32 to vector<8x256xf32>
    %890 = arith.mulf %889, %859 : vector<8x256xf32>
    %891 = arith.addf %856, %890 : vector<8x256xf32>
    %c1_i32_81 = arith.constant 1 : i32
    %892 = tpu.dynamic_rotate %185 by %c1_i32_81 dim 1 : vector<8x256xf32>, i32 -> vector<8x256xf32>
    %cst_82 = arith.constant 0.000000e+00 : f32
    %893 = vector.broadcast %cst_82 : f32 to vector<8x256xf32>
    %894 = arith.select %10, %892, %893 : vector<8x256xi1>, vector<8x256xf32>
    %c21_83 = arith.constant 21 : index
    %895 = memref.load %arg4[%c21_83] : memref<192xf32, #tpu.memory_space<smem>>
    %896 = vector.broadcast %895 : f32 to vector<8x256xf32>
    %897 = arith.mulf %896, %894 : vector<8x256xf32>
    %898 = arith.addf %863, %897 : vector<8x256xf32>
    %c45 = arith.constant 45 : index
    %899 = memref.load %arg4[%c45] : memref<192xf32, #tpu.memory_space<smem>>
    %900 = vector.broadcast %899 : f32 to vector<8x256xf32>
    %901 = arith.mulf %900, %894 : vector<8x256xf32>
    %902 = arith.addf %867, %901 : vector<8x256xf32>
    %c69 = arith.constant 69 : index
    %903 = memref.load %arg4[%c69] : memref<192xf32, #tpu.memory_space<smem>>
    %904 = vector.broadcast %903 : f32 to vector<8x256xf32>
    %905 = arith.mulf %904, %894 : vector<8x256xf32>
    %906 = arith.addf %871, %905 : vector<8x256xf32>
    %c93 = arith.constant 93 : index
    %907 = memref.load %arg4[%c93] : memref<192xf32, #tpu.memory_space<smem>>
    %908 = vector.broadcast %907 : f32 to vector<8x256xf32>
    %909 = arith.mulf %908, %894 : vector<8x256xf32>
    %910 = arith.addf %875, %909 : vector<8x256xf32>
    %c117 = arith.constant 117 : index
    %911 = memref.load %arg4[%c117] : memref<192xf32, #tpu.memory_space<smem>>
    %912 = vector.broadcast %911 : f32 to vector<8x256xf32>
    %913 = arith.mulf %912, %894 : vector<8x256xf32>
    %914 = arith.addf %879, %913 : vector<8x256xf32>
    %c141 = arith.constant 141 : index
    %915 = memref.load %arg4[%c141] : memref<192xf32, #tpu.memory_space<smem>>
    %916 = vector.broadcast %915 : f32 to vector<8x256xf32>
    %917 = arith.mulf %916, %894 : vector<8x256xf32>
    %918 = arith.addf %883, %917 : vector<8x256xf32>
    %c165 = arith.constant 165 : index
    %919 = memref.load %arg4[%c165] : memref<192xf32, #tpu.memory_space<smem>>
    %920 = vector.broadcast %919 : f32 to vector<8x256xf32>
    %921 = arith.mulf %920, %894 : vector<8x256xf32>
    %922 = arith.addf %887, %921 : vector<8x256xf32>
    %c189 = arith.constant 189 : index
    %923 = memref.load %arg4[%c189] : memref<192xf32, #tpu.memory_space<smem>>
    %924 = vector.broadcast %923 : f32 to vector<8x256xf32>
    %925 = arith.mulf %924, %894 : vector<8x256xf32>
    %926 = arith.addf %891, %925 : vector<8x256xf32>
    %c22_84 = arith.constant 22 : index
    %927 = memref.load %arg4[%c22_84] : memref<192xf32, #tpu.memory_space<smem>>
    %928 = vector.broadcast %927 : f32 to vector<8x256xf32>
    %929 = arith.mulf %928, %185 : vector<8x256xf32>
    %930 = arith.addf %898, %929 : vector<8x256xf32>
    %c46 = arith.constant 46 : index
    %931 = memref.load %arg4[%c46] : memref<192xf32, #tpu.memory_space<smem>>
    %932 = vector.broadcast %931 : f32 to vector<8x256xf32>
    %933 = arith.mulf %932, %185 : vector<8x256xf32>
    %934 = arith.addf %902, %933 : vector<8x256xf32>
    %c70 = arith.constant 70 : index
    %935 = memref.load %arg4[%c70] : memref<192xf32, #tpu.memory_space<smem>>
    %936 = vector.broadcast %935 : f32 to vector<8x256xf32>
    %937 = arith.mulf %936, %185 : vector<8x256xf32>
    %938 = arith.addf %906, %937 : vector<8x256xf32>
    %c94 = arith.constant 94 : index
    %939 = memref.load %arg4[%c94] : memref<192xf32, #tpu.memory_space<smem>>
    %940 = vector.broadcast %939 : f32 to vector<8x256xf32>
    %941 = arith.mulf %940, %185 : vector<8x256xf32>
    %942 = arith.addf %910, %941 : vector<8x256xf32>
    %c118 = arith.constant 118 : index
    %943 = memref.load %arg4[%c118] : memref<192xf32, #tpu.memory_space<smem>>
    %944 = vector.broadcast %943 : f32 to vector<8x256xf32>
    %945 = arith.mulf %944, %185 : vector<8x256xf32>
    %946 = arith.addf %914, %945 : vector<8x256xf32>
    %c142 = arith.constant 142 : index
    %947 = memref.load %arg4[%c142] : memref<192xf32, #tpu.memory_space<smem>>
    %948 = vector.broadcast %947 : f32 to vector<8x256xf32>
    %949 = arith.mulf %948, %185 : vector<8x256xf32>
    %950 = arith.addf %918, %949 : vector<8x256xf32>
    %c166 = arith.constant 166 : index
    %951 = memref.load %arg4[%c166] : memref<192xf32, #tpu.memory_space<smem>>
    %952 = vector.broadcast %951 : f32 to vector<8x256xf32>
    %953 = arith.mulf %952, %185 : vector<8x256xf32>
    %954 = arith.addf %922, %953 : vector<8x256xf32>
    %c190 = arith.constant 190 : index
    %955 = memref.load %arg4[%c190] : memref<192xf32, #tpu.memory_space<smem>>
    %956 = vector.broadcast %955 : f32 to vector<8x256xf32>
    %957 = arith.mulf %956, %185 : vector<8x256xf32>
    %958 = arith.addf %926, %957 : vector<8x256xf32>
    %c255_i32_85 = arith.constant 255 : i32
    %959 = tpu.dynamic_rotate %185 by %c255_i32_85 dim 1 : vector<8x256xf32>, i32 -> vector<8x256xf32>
    %cst_86 = arith.constant 0.000000e+00 : f32
    %960 = vector.broadcast %cst_86 : f32 to vector<8x256xf32>
    %961 = arith.select %19, %959, %960 : vector<8x256xi1>, vector<8x256xf32>
    %c23_87 = arith.constant 23 : index
    %962 = memref.load %arg4[%c23_87] : memref<192xf32, #tpu.memory_space<smem>>
    %963 = vector.broadcast %962 : f32 to vector<8x256xf32>
    %964 = arith.mulf %963, %961 : vector<8x256xf32>
    %965 = arith.addf %930, %964 : vector<8x256xf32>
    %c47 = arith.constant 47 : index
    %966 = memref.load %arg4[%c47] : memref<192xf32, #tpu.memory_space<smem>>
    %967 = vector.broadcast %966 : f32 to vector<8x256xf32>
    %968 = arith.mulf %967, %961 : vector<8x256xf32>
    %969 = arith.addf %934, %968 : vector<8x256xf32>
    %c71 = arith.constant 71 : index
    %970 = memref.load %arg4[%c71] : memref<192xf32, #tpu.memory_space<smem>>
    %971 = vector.broadcast %970 : f32 to vector<8x256xf32>
    %972 = arith.mulf %971, %961 : vector<8x256xf32>
    %973 = arith.addf %938, %972 : vector<8x256xf32>
    %c95 = arith.constant 95 : index
    %974 = memref.load %arg4[%c95] : memref<192xf32, #tpu.memory_space<smem>>
    %975 = vector.broadcast %974 : f32 to vector<8x256xf32>
    %976 = arith.mulf %975, %961 : vector<8x256xf32>
    %977 = arith.addf %942, %976 : vector<8x256xf32>
    %c119 = arith.constant 119 : index
    %978 = memref.load %arg4[%c119] : memref<192xf32, #tpu.memory_space<smem>>
    %979 = vector.broadcast %978 : f32 to vector<8x256xf32>
    %980 = arith.mulf %979, %961 : vector<8x256xf32>
    %981 = arith.addf %946, %980 : vector<8x256xf32>
    %c143 = arith.constant 143 : index
    %982 = memref.load %arg4[%c143] : memref<192xf32, #tpu.memory_space<smem>>
    %983 = vector.broadcast %982 : f32 to vector<8x256xf32>
    %984 = arith.mulf %983, %961 : vector<8x256xf32>
    %985 = arith.addf %950, %984 : vector<8x256xf32>
    %c167 = arith.constant 167 : index
    %986 = memref.load %arg4[%c167] : memref<192xf32, #tpu.memory_space<smem>>
    %987 = vector.broadcast %986 : f32 to vector<8x256xf32>
    %988 = arith.mulf %987, %961 : vector<8x256xf32>
    %989 = arith.addf %954, %988 : vector<8x256xf32>
    %c191 = arith.constant 191 : index
    %990 = memref.load %arg4[%c191] : memref<192xf32, #tpu.memory_space<smem>>
    %991 = vector.broadcast %990 : f32 to vector<8x256xf32>
    %992 = arith.mulf %991, %961 : vector<8x256xf32>
    %993 = arith.addf %958, %992 : vector<8x256xf32>
    %c0_88 = arith.constant 0 : index
    %994 = memref.load %arg5[%c0_88] : memref<8xf32, #tpu.memory_space<smem>>
    %995 = vector.broadcast %994 : f32 to vector<8x256xf32>
    %996 = arith.addf %965, %995 : vector<8x256xf32>
    %cst_89 = arith.constant 0.000000e+00 : f32
    %997 = vector.broadcast %cst_89 : f32 to vector<8x256xf32>
    %998 = arith.cmpf ogt, %996, %997 : vector<8x256xf32>
    %999 = math.exp %996 : vector<8x256xf32>
    %cst_90 = arith.constant 1.000000e+00 : f32
    %1000 = vector.broadcast %cst_90 : f32 to vector<8x256xf32>
    %1001 = arith.subf %999, %1000 : vector<8x256xf32>
    %1002 = arith.select %998, %996, %1001 : vector<8x256xi1>, vector<8x256xf32>
    %c1_91 = arith.constant 1 : index
    %1003 = memref.load %arg5[%c1_91] : memref<8xf32, #tpu.memory_space<smem>>
    %1004 = vector.broadcast %1003 : f32 to vector<8x256xf32>
    %1005 = arith.addf %969, %1004 : vector<8x256xf32>
    %cst_92 = arith.constant 0.000000e+00 : f32
    %1006 = vector.broadcast %cst_92 : f32 to vector<8x256xf32>
    %1007 = arith.cmpf ogt, %1005, %1006 : vector<8x256xf32>
    %1008 = math.exp %1005 : vector<8x256xf32>
    %cst_93 = arith.constant 1.000000e+00 : f32
    %1009 = vector.broadcast %cst_93 : f32 to vector<8x256xf32>
    %1010 = arith.subf %1008, %1009 : vector<8x256xf32>
    %1011 = arith.select %1007, %1005, %1010 : vector<8x256xi1>, vector<8x256xf32>
    %c2_94 = arith.constant 2 : index
    %1012 = memref.load %arg5[%c2_94] : memref<8xf32, #tpu.memory_space<smem>>
    %1013 = vector.broadcast %1012 : f32 to vector<8x256xf32>
    %1014 = arith.addf %973, %1013 : vector<8x256xf32>
    %cst_95 = arith.constant 0.000000e+00 : f32
    %1015 = vector.broadcast %cst_95 : f32 to vector<8x256xf32>
    %1016 = arith.cmpf ogt, %1014, %1015 : vector<8x256xf32>
    %1017 = math.exp %1014 : vector<8x256xf32>
    %cst_96 = arith.constant 1.000000e+00 : f32
    %1018 = vector.broadcast %cst_96 : f32 to vector<8x256xf32>
    %1019 = arith.subf %1017, %1018 : vector<8x256xf32>
    %1020 = arith.select %1016, %1014, %1019 : vector<8x256xi1>, vector<8x256xf32>
    %c3_97 = arith.constant 3 : index
    %1021 = memref.load %arg5[%c3_97] : memref<8xf32, #tpu.memory_space<smem>>
    %1022 = vector.broadcast %1021 : f32 to vector<8x256xf32>
    %1023 = arith.addf %977, %1022 : vector<8x256xf32>
    %cst_98 = arith.constant 0.000000e+00 : f32
    %1024 = vector.broadcast %cst_98 : f32 to vector<8x256xf32>
    %1025 = arith.cmpf ogt, %1023, %1024 : vector<8x256xf32>
    %1026 = math.exp %1023 : vector<8x256xf32>
    %cst_99 = arith.constant 1.000000e+00 : f32
    %1027 = vector.broadcast %cst_99 : f32 to vector<8x256xf32>
    %1028 = arith.subf %1026, %1027 : vector<8x256xf32>
    %1029 = arith.select %1025, %1023, %1028 : vector<8x256xi1>, vector<8x256xf32>
    %c4_100 = arith.constant 4 : index
    %1030 = memref.load %arg5[%c4_100] : memref<8xf32, #tpu.memory_space<smem>>
    %1031 = vector.broadcast %1030 : f32 to vector<8x256xf32>
    %1032 = arith.addf %981, %1031 : vector<8x256xf32>
    %cst_101 = arith.constant 0.000000e+00 : f32
    %1033 = vector.broadcast %cst_101 : f32 to vector<8x256xf32>
    %1034 = arith.cmpf ogt, %1032, %1033 : vector<8x256xf32>
    %1035 = math.exp %1032 : vector<8x256xf32>
    %cst_102 = arith.constant 1.000000e+00 : f32
    %1036 = vector.broadcast %cst_102 : f32 to vector<8x256xf32>
    %1037 = arith.subf %1035, %1036 : vector<8x256xf32>
    %1038 = arith.select %1034, %1032, %1037 : vector<8x256xi1>, vector<8x256xf32>
    %c5_103 = arith.constant 5 : index
    %1039 = memref.load %arg5[%c5_103] : memref<8xf32, #tpu.memory_space<smem>>
    %1040 = vector.broadcast %1039 : f32 to vector<8x256xf32>
    %1041 = arith.addf %985, %1040 : vector<8x256xf32>
    %cst_104 = arith.constant 0.000000e+00 : f32
    %1042 = vector.broadcast %cst_104 : f32 to vector<8x256xf32>
    %1043 = arith.cmpf ogt, %1041, %1042 : vector<8x256xf32>
    %1044 = math.exp %1041 : vector<8x256xf32>
    %cst_105 = arith.constant 1.000000e+00 : f32
    %1045 = vector.broadcast %cst_105 : f32 to vector<8x256xf32>
    %1046 = arith.subf %1044, %1045 : vector<8x256xf32>
    %1047 = arith.select %1043, %1041, %1046 : vector<8x256xi1>, vector<8x256xf32>
    %c6_106 = arith.constant 6 : index
    %1048 = memref.load %arg5[%c6_106] : memref<8xf32, #tpu.memory_space<smem>>
    %1049 = vector.broadcast %1048 : f32 to vector<8x256xf32>
    %1050 = arith.addf %989, %1049 : vector<8x256xf32>
    %cst_107 = arith.constant 0.000000e+00 : f32
    %1051 = vector.broadcast %cst_107 : f32 to vector<8x256xf32>
    %1052 = arith.cmpf ogt, %1050, %1051 : vector<8x256xf32>
    %1053 = math.exp %1050 : vector<8x256xf32>
    %cst_108 = arith.constant 1.000000e+00 : f32
    %1054 = vector.broadcast %cst_108 : f32 to vector<8x256xf32>
    %1055 = arith.subf %1053, %1054 : vector<8x256xf32>
    %1056 = arith.select %1052, %1050, %1055 : vector<8x256xi1>, vector<8x256xf32>
    %c7_109 = arith.constant 7 : index
    %1057 = memref.load %arg5[%c7_109] : memref<8xf32, #tpu.memory_space<smem>>
    %1058 = vector.broadcast %1057 : f32 to vector<8x256xf32>
    %1059 = arith.addf %993, %1058 : vector<8x256xf32>
    %cst_110 = arith.constant 0.000000e+00 : f32
    %1060 = vector.broadcast %cst_110 : f32 to vector<8x256xf32>
    %1061 = arith.cmpf ogt, %1059, %1060 : vector<8x256xf32>
    %1062 = math.exp %1059 : vector<8x256xf32>
    %cst_111 = arith.constant 1.000000e+00 : f32
    %1063 = vector.broadcast %cst_111 : f32 to vector<8x256xf32>
    %1064 = arith.subf %1062, %1063 : vector<8x256xf32>
    %1065 = arith.select %1061, %1059, %1064 : vector<8x256xi1>, vector<8x256xf32>
    %c1_i32_112 = arith.constant 1 : i32
    %1066 = tpu.dynamic_rotate %1002 by %c1_i32_112 dim 1 : vector<8x256xf32>, i32 -> vector<8x256xf32>
    %cst_113 = arith.constant 0.000000e+00 : f32
    %1067 = vector.broadcast %cst_113 : f32 to vector<8x256xf32>
    %1068 = arith.select %10, %1066, %1067 : vector<8x256xi1>, vector<8x256xf32>
    %c0_114 = arith.constant 0 : index
    %1069 = memref.load %arg6[%c0_114] : memref<24xf32, #tpu.memory_space<smem>>
    %1070 = vector.broadcast %1069 : f32 to vector<8x256xf32>
    %1071 = arith.mulf %1070, %1068 : vector<8x256xf32>
    %c1_115 = arith.constant 1 : index
    %1072 = memref.load %arg6[%c1_115] : memref<24xf32, #tpu.memory_space<smem>>
    %1073 = vector.broadcast %1072 : f32 to vector<8x256xf32>
    %1074 = arith.mulf %1073, %1002 : vector<8x256xf32>
    %1075 = arith.addf %1071, %1074 : vector<8x256xf32>
    %c255_i32_116 = arith.constant 255 : i32
    %1076 = tpu.dynamic_rotate %1002 by %c255_i32_116 dim 1 : vector<8x256xf32>, i32 -> vector<8x256xf32>
    %cst_117 = arith.constant 0.000000e+00 : f32
    %1077 = vector.broadcast %cst_117 : f32 to vector<8x256xf32>
    %1078 = arith.select %19, %1076, %1077 : vector<8x256xi1>, vector<8x256xf32>
    %c2_118 = arith.constant 2 : index
    %1079 = memref.load %arg6[%c2_118] : memref<24xf32, #tpu.memory_space<smem>>
    %1080 = vector.broadcast %1079 : f32 to vector<8x256xf32>
    %1081 = arith.mulf %1080, %1078 : vector<8x256xf32>
    %1082 = arith.addf %1075, %1081 : vector<8x256xf32>
    %c1_i32_119 = arith.constant 1 : i32
    %1083 = tpu.dynamic_rotate %1011 by %c1_i32_119 dim 1 : vector<8x256xf32>, i32 -> vector<8x256xf32>
    %cst_120 = arith.constant 0.000000e+00 : f32
    %1084 = vector.broadcast %cst_120 : f32 to vector<8x256xf32>
    %1085 = arith.select %10, %1083, %1084 : vector<8x256xi1>, vector<8x256xf32>
    %c3_121 = arith.constant 3 : index
    %1086 = memref.load %arg6[%c3_121] : memref<24xf32, #tpu.memory_space<smem>>
    %1087 = vector.broadcast %1086 : f32 to vector<8x256xf32>
    %1088 = arith.mulf %1087, %1085 : vector<8x256xf32>
    %1089 = arith.addf %1082, %1088 : vector<8x256xf32>
    %c4_122 = arith.constant 4 : index
    %1090 = memref.load %arg6[%c4_122] : memref<24xf32, #tpu.memory_space<smem>>
    %1091 = vector.broadcast %1090 : f32 to vector<8x256xf32>
    %1092 = arith.mulf %1091, %1011 : vector<8x256xf32>
    %1093 = arith.addf %1089, %1092 : vector<8x256xf32>
    %c255_i32_123 = arith.constant 255 : i32
    %1094 = tpu.dynamic_rotate %1011 by %c255_i32_123 dim 1 : vector<8x256xf32>, i32 -> vector<8x256xf32>
    %cst_124 = arith.constant 0.000000e+00 : f32
    %1095 = vector.broadcast %cst_124 : f32 to vector<8x256xf32>
    %1096 = arith.select %19, %1094, %1095 : vector<8x256xi1>, vector<8x256xf32>
    %c5_125 = arith.constant 5 : index
    %1097 = memref.load %arg6[%c5_125] : memref<24xf32, #tpu.memory_space<smem>>
    %1098 = vector.broadcast %1097 : f32 to vector<8x256xf32>
    %1099 = arith.mulf %1098, %1096 : vector<8x256xf32>
    %1100 = arith.addf %1093, %1099 : vector<8x256xf32>
    %c1_i32_126 = arith.constant 1 : i32
    %1101 = tpu.dynamic_rotate %1020 by %c1_i32_126 dim 1 : vector<8x256xf32>, i32 -> vector<8x256xf32>
    %cst_127 = arith.constant 0.000000e+00 : f32
    %1102 = vector.broadcast %cst_127 : f32 to vector<8x256xf32>
    %1103 = arith.select %10, %1101, %1102 : vector<8x256xi1>, vector<8x256xf32>
    %c6_128 = arith.constant 6 : index
    %1104 = memref.load %arg6[%c6_128] : memref<24xf32, #tpu.memory_space<smem>>
    %1105 = vector.broadcast %1104 : f32 to vector<8x256xf32>
    %1106 = arith.mulf %1105, %1103 : vector<8x256xf32>
    %1107 = arith.addf %1100, %1106 : vector<8x256xf32>
    %c7_129 = arith.constant 7 : index
    %1108 = memref.load %arg6[%c7_129] : memref<24xf32, #tpu.memory_space<smem>>
    %1109 = vector.broadcast %1108 : f32 to vector<8x256xf32>
    %1110 = arith.mulf %1109, %1020 : vector<8x256xf32>
    %1111 = arith.addf %1107, %1110 : vector<8x256xf32>
    %c255_i32_130 = arith.constant 255 : i32
    %1112 = tpu.dynamic_rotate %1020 by %c255_i32_130 dim 1 : vector<8x256xf32>, i32 -> vector<8x256xf32>
    %cst_131 = arith.constant 0.000000e+00 : f32
    %1113 = vector.broadcast %cst_131 : f32 to vector<8x256xf32>
    %1114 = arith.select %19, %1112, %1113 : vector<8x256xi1>, vector<8x256xf32>
    %c8_132 = arith.constant 8 : index
    %1115 = memref.load %arg6[%c8_132] : memref<24xf32, #tpu.memory_space<smem>>
    %1116 = vector.broadcast %1115 : f32 to vector<8x256xf32>
    %1117 = arith.mulf %1116, %1114 : vector<8x256xf32>
    %1118 = arith.addf %1111, %1117 : vector<8x256xf32>
    %c1_i32_133 = arith.constant 1 : i32
    %1119 = tpu.dynamic_rotate %1029 by %c1_i32_133 dim 1 : vector<8x256xf32>, i32 -> vector<8x256xf32>
    %cst_134 = arith.constant 0.000000e+00 : f32
    %1120 = vector.broadcast %cst_134 : f32 to vector<8x256xf32>
    %1121 = arith.select %10, %1119, %1120 : vector<8x256xi1>, vector<8x256xf32>
    %c9_135 = arith.constant 9 : index
    %1122 = memref.load %arg6[%c9_135] : memref<24xf32, #tpu.memory_space<smem>>
    %1123 = vector.broadcast %1122 : f32 to vector<8x256xf32>
    %1124 = arith.mulf %1123, %1121 : vector<8x256xf32>
    %1125 = arith.addf %1118, %1124 : vector<8x256xf32>
    %c10_136 = arith.constant 10 : index
    %1126 = memref.load %arg6[%c10_136] : memref<24xf32, #tpu.memory_space<smem>>
    %1127 = vector.broadcast %1126 : f32 to vector<8x256xf32>
    %1128 = arith.mulf %1127, %1029 : vector<8x256xf32>
    %1129 = arith.addf %1125, %1128 : vector<8x256xf32>
    %c255_i32_137 = arith.constant 255 : i32
    %1130 = tpu.dynamic_rotate %1029 by %c255_i32_137 dim 1 : vector<8x256xf32>, i32 -> vector<8x256xf32>
    %cst_138 = arith.constant 0.000000e+00 : f32
    %1131 = vector.broadcast %cst_138 : f32 to vector<8x256xf32>
    %1132 = arith.select %19, %1130, %1131 : vector<8x256xi1>, vector<8x256xf32>
    %c11_139 = arith.constant 11 : index
    %1133 = memref.load %arg6[%c11_139] : memref<24xf32, #tpu.memory_space<smem>>
    %1134 = vector.broadcast %1133 : f32 to vector<8x256xf32>
    %1135 = arith.mulf %1134, %1132 : vector<8x256xf32>
    %1136 = arith.addf %1129, %1135 : vector<8x256xf32>
    %c1_i32_140 = arith.constant 1 : i32
    %1137 = tpu.dynamic_rotate %1038 by %c1_i32_140 dim 1 : vector<8x256xf32>, i32 -> vector<8x256xf32>
    %cst_141 = arith.constant 0.000000e+00 : f32
    %1138 = vector.broadcast %cst_141 : f32 to vector<8x256xf32>
    %1139 = arith.select %10, %1137, %1138 : vector<8x256xi1>, vector<8x256xf32>
    %c12_142 = arith.constant 12 : index
    %1140 = memref.load %arg6[%c12_142] : memref<24xf32, #tpu.memory_space<smem>>
    %1141 = vector.broadcast %1140 : f32 to vector<8x256xf32>
    %1142 = arith.mulf %1141, %1139 : vector<8x256xf32>
    %1143 = arith.addf %1136, %1142 : vector<8x256xf32>
    %c13_143 = arith.constant 13 : index
    %1144 = memref.load %arg6[%c13_143] : memref<24xf32, #tpu.memory_space<smem>>
    %1145 = vector.broadcast %1144 : f32 to vector<8x256xf32>
    %1146 = arith.mulf %1145, %1038 : vector<8x256xf32>
    %1147 = arith.addf %1143, %1146 : vector<8x256xf32>
    %c255_i32_144 = arith.constant 255 : i32
    %1148 = tpu.dynamic_rotate %1038 by %c255_i32_144 dim 1 : vector<8x256xf32>, i32 -> vector<8x256xf32>
    %cst_145 = arith.constant 0.000000e+00 : f32
    %1149 = vector.broadcast %cst_145 : f32 to vector<8x256xf32>
    %1150 = arith.select %19, %1148, %1149 : vector<8x256xi1>, vector<8x256xf32>
    %c14_146 = arith.constant 14 : index
    %1151 = memref.load %arg6[%c14_146] : memref<24xf32, #tpu.memory_space<smem>>
    %1152 = vector.broadcast %1151 : f32 to vector<8x256xf32>
    %1153 = arith.mulf %1152, %1150 : vector<8x256xf32>
    %1154 = arith.addf %1147, %1153 : vector<8x256xf32>
    %c1_i32_147 = arith.constant 1 : i32
    %1155 = tpu.dynamic_rotate %1047 by %c1_i32_147 dim 1 : vector<8x256xf32>, i32 -> vector<8x256xf32>
    %cst_148 = arith.constant 0.000000e+00 : f32
    %1156 = vector.broadcast %cst_148 : f32 to vector<8x256xf32>
    %1157 = arith.select %10, %1155, %1156 : vector<8x256xi1>, vector<8x256xf32>
    %c15_149 = arith.constant 15 : index
    %1158 = memref.load %arg6[%c15_149] : memref<24xf32, #tpu.memory_space<smem>>
    %1159 = vector.broadcast %1158 : f32 to vector<8x256xf32>
    %1160 = arith.mulf %1159, %1157 : vector<8x256xf32>
    %1161 = arith.addf %1154, %1160 : vector<8x256xf32>
    %c16_150 = arith.constant 16 : index
    %1162 = memref.load %arg6[%c16_150] : memref<24xf32, #tpu.memory_space<smem>>
    %1163 = vector.broadcast %1162 : f32 to vector<8x256xf32>
    %1164 = arith.mulf %1163, %1047 : vector<8x256xf32>
    %1165 = arith.addf %1161, %1164 : vector<8x256xf32>
    %c255_i32_151 = arith.constant 255 : i32
    %1166 = tpu.dynamic_rotate %1047 by %c255_i32_151 dim 1 : vector<8x256xf32>, i32 -> vector<8x256xf32>
    %cst_152 = arith.constant 0.000000e+00 : f32
    %1167 = vector.broadcast %cst_152 : f32 to vector<8x256xf32>
    %1168 = arith.select %19, %1166, %1167 : vector<8x256xi1>, vector<8x256xf32>
    %c17_153 = arith.constant 17 : index
    %1169 = memref.load %arg6[%c17_153] : memref<24xf32, #tpu.memory_space<smem>>
    %1170 = vector.broadcast %1169 : f32 to vector<8x256xf32>
    %1171 = arith.mulf %1170, %1168 : vector<8x256xf32>
    %1172 = arith.addf %1165, %1171 : vector<8x256xf32>
    %c1_i32_154 = arith.constant 1 : i32
    %1173 = tpu.dynamic_rotate %1056 by %c1_i32_154 dim 1 : vector<8x256xf32>, i32 -> vector<8x256xf32>
    %cst_155 = arith.constant 0.000000e+00 : f32
    %1174 = vector.broadcast %cst_155 : f32 to vector<8x256xf32>
    %1175 = arith.select %10, %1173, %1174 : vector<8x256xi1>, vector<8x256xf32>
    %c18_156 = arith.constant 18 : index
    %1176 = memref.load %arg6[%c18_156] : memref<24xf32, #tpu.memory_space<smem>>
    %1177 = vector.broadcast %1176 : f32 to vector<8x256xf32>
    %1178 = arith.mulf %1177, %1175 : vector<8x256xf32>
    %1179 = arith.addf %1172, %1178 : vector<8x256xf32>
    %c19_157 = arith.constant 19 : index
    %1180 = memref.load %arg6[%c19_157] : memref<24xf32, #tpu.memory_space<smem>>
    %1181 = vector.broadcast %1180 : f32 to vector<8x256xf32>
    %1182 = arith.mulf %1181, %1056 : vector<8x256xf32>
    %1183 = arith.addf %1179, %1182 : vector<8x256xf32>
    %c255_i32_158 = arith.constant 255 : i32
    %1184 = tpu.dynamic_rotate %1056 by %c255_i32_158 dim 1 : vector<8x256xf32>, i32 -> vector<8x256xf32>
    %cst_159 = arith.constant 0.000000e+00 : f32
    %1185 = vector.broadcast %cst_159 : f32 to vector<8x256xf32>
    %1186 = arith.select %19, %1184, %1185 : vector<8x256xi1>, vector<8x256xf32>
    %c20_160 = arith.constant 20 : index
    %1187 = memref.load %arg6[%c20_160] : memref<24xf32, #tpu.memory_space<smem>>
    %1188 = vector.broadcast %1187 : f32 to vector<8x256xf32>
    %1189 = arith.mulf %1188, %1186 : vector<8x256xf32>
    %1190 = arith.addf %1183, %1189 : vector<8x256xf32>
    %c1_i32_161 = arith.constant 1 : i32
    %1191 = tpu.dynamic_rotate %1065 by %c1_i32_161 dim 1 : vector<8x256xf32>, i32 -> vector<8x256xf32>
    %cst_162 = arith.constant 0.000000e+00 : f32
    %1192 = vector.broadcast %cst_162 : f32 to vector<8x256xf32>
    %1193 = arith.select %10, %1191, %1192 : vector<8x256xi1>, vector<8x256xf32>
    %c21_163 = arith.constant 21 : index
    %1194 = memref.load %arg6[%c21_163] : memref<24xf32, #tpu.memory_space<smem>>
    %1195 = vector.broadcast %1194 : f32 to vector<8x256xf32>
    %1196 = arith.mulf %1195, %1193 : vector<8x256xf32>
    %1197 = arith.addf %1190, %1196 : vector<8x256xf32>
    %c22_164 = arith.constant 22 : index
    %1198 = memref.load %arg6[%c22_164] : memref<24xf32, #tpu.memory_space<smem>>
    %1199 = vector.broadcast %1198 : f32 to vector<8x256xf32>
    %1200 = arith.mulf %1199, %1065 : vector<8x256xf32>
    %1201 = arith.addf %1197, %1200 : vector<8x256xf32>
    %c255_i32_165 = arith.constant 255 : i32
    %1202 = tpu.dynamic_rotate %1065 by %c255_i32_165 dim 1 : vector<8x256xf32>, i32 -> vector<8x256xf32>
    %cst_166 = arith.constant 0.000000e+00 : f32
    %1203 = vector.broadcast %cst_166 : f32 to vector<8x256xf32>
    %1204 = arith.select %19, %1202, %1203 : vector<8x256xi1>, vector<8x256xf32>
    %c23_167 = arith.constant 23 : index
    %1205 = memref.load %arg6[%c23_167] : memref<24xf32, #tpu.memory_space<smem>>
    %1206 = vector.broadcast %1205 : f32 to vector<8x256xf32>
    %1207 = arith.mulf %1206, %1204 : vector<8x256xf32>
    %1208 = arith.addf %1201, %1207 : vector<8x256xf32>
    %c0_168 = arith.constant 0 : index
    %1209 = memref.load %arg7[%c0_168] : memref<1xf32, #tpu.memory_space<smem>>
    %1210 = vector.broadcast %1209 : f32 to vector<8x256xf32>
    %1211 = arith.addf %1208, %1210 : vector<8x256xf32>
    %cst_169 = arith.constant 0.000000e+00 : f32
    %1212 = vector.broadcast %cst_169 : f32 to vector<8x256xf32>
    %1213 = arith.cmpf ogt, %1211, %1212 : vector<8x256xf32>
    %1214 = math.exp %1211 : vector<8x256xf32>
    %cst_170 = arith.constant 1.000000e+00 : f32
    %1215 = vector.broadcast %cst_170 : f32 to vector<8x256xf32>
    %1216 = arith.subf %1214, %1215 : vector<8x256xf32>
    %1217 = arith.select %1213, %1211, %1216 : vector<8x256xi1>, vector<8x256xf32>
    %1218 = arith.addf %1217, %0 : vector<8x256xf32>
    %c0_171 = arith.constant 0 : index
    %c0_172 = arith.constant 0 : index
    %1219 = vector.load %arg8[%c0_171, %c0_172] : memref<8x256xf32, #tpu.memory_space<vmem>>, vector<8x256xf32>
    tpu.vector_store %arg8[%c0_171, %c0_172], %1218 {strides = array<i32>} : memref<8x256xf32, #tpu.memory_space<vmem>>, vector<8x256xf32>,
    return
  }
  func.func @transform_0(%arg0: i32) -> (i32, i32) {
    %c0_i32 = arith.constant 0 : i32
    %c0_i32_0 = arith.constant 0 : i32
    return %arg0, %c0_i32 : i32, i32
  }
  func.func @transform_1(%arg0: i32) -> i32 {
    %c0_i32 = arith.constant 0 : i32
    %c0_i32_0 = arith.constant 0 : i32
    return %c0_i32 : i32
  }
  func.func @transform_2(%arg0: i32) -> i32 {
    %c0_i32 = arith.constant 0 : i32
    %c0_i32_0 = arith.constant 0 : i32
    return %c0_i32 : i32
  }
  func.func @transform_3(%arg0: i32) -> i32 {
    %c0_i32 = arith.constant 0 : i32
    %c0_i32_0 = arith.constant 0 : i32
    return %c0_i32 : i32
  }
  func.func @transform_4(%arg0: i32) -> i32 {
    %c0_i32 = arith.constant 0 : i32
    %c0_i32_0 = arith.constant 0 : i32
    return %c0_i32 : i32
  }
  func.func @transform_5(%arg0: i32) -> i32 {
    %c0_i32 = arith.constant 0 : i32
    %c0_i32_0 = arith.constant 0 : i32
    return %c0_i32 : i32
  }
  func.func @transform_6(%arg0: i32) -> i32 {
    %c0_i32 = arith.constant 0 : i32
    %c0_i32_0 = arith.constant 0 : i32
    return %c0_i32 : i32
  }
  func.func @transform_7(%arg0: i32) -> (i32, i32) {
    %c0_i32 = arith.constant 0 : i32
    %c0_i32_0 = arith.constant 0 : i32
    return %arg0, %c0_i32 : i32, i32
  }
}

</mosaic_0001>

<bundles_post_ra>
// kernel: tpu_custom_call.1
= control target key start
LH: loop header
LB: loop body
LE: loop exit
PB: predicated region body
PF: predicated region fallthrough
CT: control target
= control target key end

     0   :  { %s5368_s0 = inlined_call_operand.hbm [shape: f32[8,256], index: 0, kind: input, shape index: {}]   ;;  %s5369_s1 = inlined_call_operand.vmem [shape: f32[24], index: 1, kind: input, shape index: {}]   ;;  %s5370_s2 = inlined_call_operand.vmem [shape: f32[8], index: 2, kind: input, shape index: {}]   ;;  %s5371_s3 = inlined_call_operand.vmem [shape: f32[192], index: 3, kind: input, shape index: {}]   ;;  %s5372_s4 = inlined_call_operand.vmem [shape: f32[8], index: 4, kind: input, shape index: {}]   ;;  %s5373_s5 = inlined_call_operand.vmem [shape: f32[24], index: 5, kind: input, shape index: {}]   ;;  %s5374_s6 = inlined_call_operand.<no memory space> [shape: f32[1], index: 6, kind: input, shape index: {}]   ;;  %s5375_s7 = inlined_call_operand.hbm [shape: f32[8,256], index: 7, kind: output, shape index: {}]  }
   0x1   :  { %5622 = sst [smem:[#allocation188_spill]] %s5374_s6 }
   0x2   :  { %5623 = sst [smem:[#allocation189_spill]] %s5375_s7 }
   0x3   :  { %13 = vsyncpa [#allocation4], 0 }
   0x4   :  { %14 = vsyncpa [#allocation6], 0 }
   0x5   :  { %15 = vsyncpa [#allocation9], 0 }
   0x6   :  { %16 = vsyncpa [#allocation12], 0  ;;  %s44_s26 = sshll.u32 %s5370_s2, 4  ;;  %s45_s26 = int_to_ptr.vmem [resolvable:$true] %s44_s26 }
   0x7   :  { %17 = vsyncpa [#allocation5], 0  ;;  %s64_s29 = sshll.u32 %s5372_s4, 4  ;;  %s2424_s30 = scalar_lea.vmem %s45_s26, 16  ;;  %s65_s29 = int_to_ptr.vmem [resolvable:$true] %s64_s29 }
   0x8   :  { %p2425_p0 = scmp.ne.s32.totalorder %s45_s26, %s2424_s30  ;;  %p2429_p1 = scmp.lt.s32.totalorder %s45_s26, %s45_s26 }
   0x9   :  { %p2430_p2 = scmp.lt.s32.totalorder %s2424_s30, %s2424_s30 }
   0xb   :  { %p2431_p3 = por %p2430_p2, %p2429_p1 }
   0xd   :  { %p2432_p4 = pnand %p2431_p3, %p2425_p0 }
   0xf   :  { %2435 = shalt.err (!%p2432_p4)
}
  0x10   :  { %s2538_s8 = smov [#allocation8]   ;;  %s2436_s9 = scalar_lea.vmem %s65_s29, 16 }
  0x11   :  { %47 = dma.vmem_to_smem %s45_s26, 16, %s2538_s8, [#allocation9]  }
  0x12   :  { %p2437_p5 = scmp.ne.s32.totalorder %s65_s29, %s2436_s9  ;;  %p2441_p6 = scmp.lt.s32.totalorder %s65_s29, %s65_s29 }
  0x13   :  { %p2442_p7 = scmp.lt.s32.totalorder %s2436_s9, %s2436_s9 }
  0x15   :  { %p2443_p8 = por %p2442_p7, %p2441_p6 }
  0x17   :  { %p2444_p9 = pnand %p2443_p8, %p2437_p5 }
  0x19   :  { %2447 = shalt.err (!%p2444_p9)
}
  0x1a   :  { %s2539_s2 = smov [#allocation11]   ;;  %s34_s11 = sshll.u32 %s5369_s1, 4  ;;  %s35_s11 = int_to_ptr.vmem [resolvable:$true] %s34_s11 }
  0x1b   :  { %67 = dma.vmem_to_smem %s65_s29, 16, %s2539_s2, [#allocation12]  }
  0x1c   :  { %s2540_s12 = smov [#allocation3]   ;;  %s2448_s16 = scalar_lea.hbm %s5368_s0, 256 }
  0x1d   :  { %s24_s13 = sshll.u32 %s2540_s12, 4  ;;  %p2449_p10 = scmp.ne.s32.totalorder %s5368_s0, %s2448_s16  ;;  %s25_s13 = int_to_ptr.vmem [resolvable:$true] %s24_s13 }
  0x1e   :  { %p2452_p11 = scmp.lt.u32.totalorder %s2448_s16, %s5368_s0 }
  0x20   :  { %p2454_p12 = pnand %p2452_p11, %p2449_p10 }
  0x22   :  { %2457 = shalt.err (!%p2454_p12)
}
  0x23   :  { %s2458_s21 = scalar_lea.vmem %s25_s13, 256  ;;  %p2463_p0 = scmp.lt.s32.totalorder %s25_s13, %s25_s13 }
  0x24   :  { %p2459_p13 = scmp.ne.s32.totalorder %s25_s13, %s2458_s21  ;;  %p2464_p1 = scmp.lt.s32.totalorder %s2458_s21, %s2458_s21 }
  0x26   :  { %p2465_p2 = por %p2464_p1, %p2463_p0 }
  0x28   :  { %p2466_p3 = pnand %p2465_p2, %p2459_p13 }
  0x2a   :  { %2469 = shalt.err (!%p2466_p3)
}
  0x2b   :  { %27 = dma.hbm_to_vmem [thread:$0]  %s5368_s0, 256, %s25_s13, [#allocation4]  }
  0x2c   :  { %s2470_s23 = scalar_lea.vmem %s35_s11, 16  ;;  %p2475_p5 = scmp.lt.s32.totalorder %s35_s11, %s35_s11 }
  0x2d   :  { %p2471_p4 = scmp.ne.s32.totalorder %s35_s11, %s2470_s23  ;;  %p2476_p6 = scmp.lt.s32.totalorder %s2470_s23, %s2470_s23 }
  0x2f   :  { %p2477_p7 = por %p2476_p6, %p2475_p5 }
  0x31   :  { %p2478_p8 = pnand %p2477_p7, %p2471_p4 }
  0x33   :  { %2481 = shalt.err (!%p2478_p8)
}
  0x34   :  { %s2541_s24 = smov [#allocation7]   ;;  %s54_s27 = sshll.u32 %s5371_s3, 4  ;;  %s55_s27 = int_to_ptr.vmem [resolvable:$true] %s54_s27 }
  0x35   :  { %37 = dma.vmem_to_smem %s35_s11, 16, %s2541_s24, [#allocation6]  }
  0x36   :  { %s74_s30 = sshll.u32 %s5373_s5, 4  ;;  %s2482_s8 = scalar_lea.vmem %s55_s27, 32  ;;  %s75_s30 = int_to_ptr.vmem [resolvable:$true] %s74_s30 }
  0x37   :  { %p2483_p9 = scmp.ne.s32.totalorder %s55_s27, %s2482_s8  ;;  %p2487_p10 = scmp.lt.s32.totalorder %s55_s27, %s55_s27 }
  0x38   :  { %p2488_p11 = scmp.lt.s32.totalorder %s2482_s8, %s2482_s8 }
  0x3a   :  { %p2489_p12 = por %p2488_p11, %p2487_p10 }
  0x3c   :  { %p2490_p13 = pnand %p2489_p12, %p2483_p9 }
  0x3e   :  { %2493 = shalt.err (!%p2490_p13)
}
  0x3f   :  { %s2542_s0 = smov [#allocation10]   ;;  %s2494_s9 = scalar_lea.vmem %s75_s30, 16 }
  0x40   :  { %57 = dma.vmem_to_smem %s55_s27, 32, %s2542_s0, [#allocation9]  }
  0x41   :  { %p2495_p0 = scmp.ne.s32.totalorder %s75_s30, %s2494_s9  ;;  %p2499_p1 = scmp.lt.s32.totalorder %s75_s30, %s75_s30 }
  0x42   :  { %p2500_p2 = scmp.lt.s32.totalorder %s2494_s9, %s2494_s9 }
  0x44   :  { %p2501_p3 = por %p2500_p2, %p2499_p1 }
  0x46   :  { %p2502_p4 = pnand %p2501_p3, %p2495_p0 }
  0x48   :  { %2505 = shalt.err (!%p2502_p4)
}
  0x49   :  { %s2543_s3 = smov [#allocation13]  }
  0x4a   :  { %77 = dma.vmem_to_smem %s75_s30, 16, %s2543_s3, [#allocation12]  }
  0x4b   :  { %2528 = dma.done.wait [#allocation4], 256  }
  0x4c   :  { %2529 = vsyncadd [#allocation4], 4294967040 }
  0x4d   :  { %2530 = dma.done.wait [#allocation6], 16  }
  0x4e   :  { %2531 = vsyncadd [#allocation6], 4294967280 }
  0x4f   :  { %2532 = dma.done.wait [#allocation9], 48  }
  0x50   :  { %2533 = vsyncadd [#allocation9], 4294967248 }
  0x51   :  { %2534 = dma.done.wait [#allocation12], 32  }
  0x52   :  { %2535 = vsyncadd [#allocation12], 4294967264 }
  0x53   :  { %98 = sfence }
  0x54   :  { %v2614_v0 = vld [vmem:[#allocation3] sm:$0xff]  ;;  %s5378_s5 = smov 127   ;;  %s5376_s2 = smov 1   ;;  %v2620_v1 = vld [vmem:[#allocation3 + $0x8] sm:$0xff]  ;;  %v101_v2 = vlaneseq }
  0x55   :  { %209 = vrot.lane.b32.xlu1 %v2614_v0, %s5378_s5  ;;  %120 = vrot.lane.b32.xlu0 %v2614_v0, %s5376_s2  ;;  %s2628_s4 = sld [smem:[#allocation7 + $0x1]]  ;;  %s2630_s10 = sld [smem:[#allocation7 + $0x4]] }
  0x56   :  { %v2626_v3 = vand.u32 127, %v101_v2  ;;  %s2632_s11 = sld [smem:[#allocation7]]  ;;  %s2635_s12 = sld [smem:[#allocation7 + $0x3]] }
  0x57   :  { %s2637_s13 = sld [smem:[#allocation7 + $0x2]]  ;;  %s2644_s14 = sld [smem:[#allocation7 + $0x5]] }
  0x58   :  { %5624 = vst [vmem:[#allocation20_spill] sm:$0xff] %v2626_v3  ;;  %v103_v6 = vadd.s32 128, %v2626_v3  ;;  %v2640_v7 = vadd.s32 4294967295, %v2626_v3  ;;  %vm124_vm0 = vcmp.lt.s32.totalorder %v2626_v3, 1  ;;  %vm213_vm1 = vcmp.lt.s32.totalorder %v2626_v3, 127  ;;  %s2650_s15 = sld [smem:[#allocation7 + $0x7]] }
  0x59   :  { %211 = vrot.lane.b32.xlu1 %v2620_v1, %s5378_s5  ;;  %122 = vrot.lane.b32.xlu0 %v2620_v1, %s5376_s2  ;;  %s2654_s16 = sld [smem:[#allocation7 + $0x6]]  ;;  %s2680_s17 = sld [smem:[#allocation8]] }
  0x5a   :  { %5625 = vst [vmem:[#allocation21_spill] sm:$0xff] %v2640_v7  ;;  %v2642_v8 = vadd.s32 1, %v103_v6  ;;  %vm106_vm2 = vcmp.ge.s32.totalorder %v2640_v7, 0  ;;  %s2686_s18 = sld [smem:[#allocation7 + $0x8]]  ;;  %s2688_s19 = sld [smem:[#allocation8 + $0x1]] }
  0x5b   :  { %v162_v11 = vstv %s2628_s4  ;;  %v168_v12 = vstv %s2630_s10  ;;  %s2694_s20 = sld [smem:[#allocation7 + $0x9]]  ;;  %s2698_s21 = sld [smem:[#allocation7 + $0xa]] }
  0x5c   :  { %5626 = vst [vmem:[#allocation22_spill] sm:$0xff] %v2642_v8  ;;  %v130_v13 = vstv %s2632_s11  ;;  %vm117_vm3 = vcmp.lt.s32.totalorder %v2642_v8, 256  ;;  %v134_v17 = vstv %s2635_s12  ;;  %v164_v19 = vmul.f32 %v162_v11, %v2620_v1  ;;  %s2705_s1 = sld [smem:[#allocation8 + $0x2]]  ;;  %s2712_s22 = sld [smem:[#allocation7 + $0xb]] }
  0x5d   :  { %v219_v18 = vstv %s2637_s13  ;;  %v170_v20 = vmul.f32 %v168_v12, %v2620_v1  ;;  %v163_v23 = vmul.f32 %v162_v11, %v2614_v0  ;;  %v169_v24 = vmul.f32 %v168_v12, %v2614_v0  ;;  %s2716_s23 = sld [smem:[#allocation7 + $0xc]]  ;;  %s2719_s24 = sld [smem:[#allocation7 + $0xd]] }
  0x5e   :  { %v225_v29 = vstv %s2644_s14  ;;  %v174_v32 = vstv %s2650_s15  ;;  %s2736_s25 = sld [smem:[#allocation7 + $0xe]]  ;;  %s2740_s26 = sld [smem:[#allocation8 + $0x3]] }
  0x5f   :  { %v138_v36 = vstv %s2654_s16  ;;  %v176_v41 = vmul.f32 %v174_v32, %v2620_v1  ;;  %v175_v43 = vmul.f32 %v174_v32, %v2614_v0  ;;  %v267_v46 = vstv %s2680_s17  ;;  %s2745_s27 = sld [smem:[#allocation7 + $0xf]]  ;;  %s2747_s28 = sld [smem:[#allocation7 + $0x10]] }
  0x60   :  { %v231_v50 = vstv %s2686_s18  ;;  %v281_v51 = vstv %s2688_s19  ;;  %s2757_s29 = sld [smem:[#allocation7 + $0x11]]  ;;  %s2766_s30 = sld [smem:[#allocation8 + $0x4]] }
  0x61   :  { %v142_v52 = vstv %s2694_s20  ;;  %v180_v53 = vstv %s2698_s21  ;;  %s2772_s8 = sld [smem:[#allocation7 + $0x12]]  ;;  %s2774_s0 = sld [smem:[#allocation7 + $0x13]] }
  0x62   :  { %v182_v2 = vmul.f32 %v180_v53, %v2620_v1  ;;  %s2792_s9 = sld [smem:[#allocation7 + $0x14]]  ;;  %s2802_s3 = sld [smem:[#allocation8 + $0x5]] }
  0x63   :  { %s2809_s4 = sld [smem:[#allocation7 + $0x15]]  ;;  %s2812_s10 = sld [smem:[#allocation7 + $0x16]] }
  0x64   :  { %s2832_s11 = sld [smem:[#allocation7 + $0x17]]  ;;  %s2842_s12 = sld [smem:[#allocation8 + $0x6]] }
  0x65   :  { %s2876_s13 = sld [smem:[#allocation8 + $0x7]]  ;;  %s2899_s14 = sld [smem:[#allocation10 + $0x1]] }
  0x66   :  { %s2903_s15 = sld [smem:[#allocation10 + $0x19]]  ;;  %s5656_s7 = smov 1  }
  0x67   :  { %s2905_s16 = sld [smem:[#allocation10 + $0x31]]  ;;  %s2998_s6 = sld [smem:[#allocation10 + $0x82]] }
  0x68   :  { %s2908_s17 = sld [smem:[#allocation10 + $0x49]] }
  0x69   :  { %s2910_s18 = sld [smem:[#allocation10 + $0x61]] }
  0x6a   :  { %s2914_s19 = sld [smem:[#allocation10 + $0x79]] }
  0x6b   :  { %5627 = sst [smem:[#allocation23_spill]] %s2899_s14  ;;  %s2918_s20 = sld [smem:[#allocation10 + $0x91]] }
  0x6c   :  { %5628 = sst [smem:[#allocation24_spill]] %s2903_s15 }
  0x6d   :  { %5629 = sst [smem:[#allocation25_spill]] %s2905_s16  ;;  %s2920_s21 = sld [smem:[#allocation10 + $0xa9]] }
  0x6e   :  { %5630 = sst [smem:[#allocation26_spill]] %s2908_s17 }
  0x6f   :  { %5631 = sst [smem:[#allocation27_spill]] %s2910_s18 }
  0x70   :  { %5632 = sst [smem:[#allocation28_spill]] %s2914_s19 }
  0x71   :  { %5633 = sst [smem:[#allocation29_spill]] %s2918_s20 }
  0x72   :  { %5657 = sst [smem:[#allocation52_spill]] %s2998_s6 }
  0x73   :  { %5634 = sst [smem:[#allocation30_spill]] %s2920_s21  ;;  %s3012_s6 = sld [smem:[#allocation10 + $0x55]] }
  0x79   :  { %5663 = sst [smem:[#allocation58_spill]] %s3012_s6  ;;  %s3028_s6 = sld [smem:[#allocation10 + $0xb5]] }
  0x7f   :  { %5668 = sst [smem:[#allocation62_spill]] %s3028_s6  ;;  %s3271_s6 = sld [smem:[#allocation10 + $0x5]] }
  0x85   :  { %5736 = sst [smem:[#allocation28_spill]] %s3271_s6  ;;  %s3402_s6 = sld [smem:[#allocation10 + $0x66]] }
  0xc7   :  { %v210_v4 = vpop.permute.xlu1 %209  ;;  %v121_v5 = vpop.permute.xlu0 %120 }
  0xcb   :  { %v123_v9 = vpop.permute.xlu0 %122  ;;  %v212_v10 = vpop.permute.xlu1 %211 }
  0xcc   :  { %v2658_v14 = vsel %vm124_vm0, %v121_v5, %v123_v9  ;;  %v126_v15 = vsel %vm124_vm0, %v123_v9, %v121_v5  ;;  %v215_v16 = vsel %vm213_vm1, %v212_v10, %v210_v4  ;;  %v2692_v30 = vsel %vm213_vm1, %v210_v4, %v212_v10 }
  0xcd   :  { %v2671_v21 = vsel %vm106_vm2, %v126_v15, 0.0  ;;  %v132_v22 = vmul.f32 %v130_v13, %v2658_v14  ;;  %v2678_v25 = vsel %vm117_vm3, %v215_v16, 0.0  ;;  %v136_v28 = vmul.f32 %v134_v17, %v2658_v14 }
  0xce   :  { %v131_v26 = vmul.f32 %v130_v13, %v2671_v21  ;;  %v135_v27 = vmul.f32 %v134_v17, %v2671_v21  ;;  %v221_v31 = vmul.f32 %v219_v18, %v2678_v25  ;;  %v227_v35 = vmul.f32 %v225_v29, %v2678_v25 }
  0xcf   :  { %v166_v34 = vadd.f32 %v164_v19, %v132_v22  ;;  %v172_v38 = vadd.f32 %v170_v20, %v136_v28  ;;  %v220_v39 = vmul.f32 %v219_v18, %v2692_v30  ;;  %v226_v40 = vmul.f32 %v225_v29, %v2692_v30 }
  0xd0   :  { %v165_v33 = vadd.f32 %v163_v23, %v131_v26  ;;  %v171_v37 = vadd.f32 %v169_v24, %v135_v27  ;;  %v139_v42 = vmul.f32 %v138_v36, %v2671_v21  ;;  %v140_v47 = vmul.f32 %v138_v36, %v2658_v14 }
  0xd1   :  { %v223_v45 = vadd.f32 %v221_v31, %v166_v34  ;;  %v229_v49 = vadd.f32 %v227_v35, %v172_v38  ;;  %v233_v57 = vmul.f32 %v231_v50, %v2678_v25  ;;  %v232_v61 = vmul.f32 %v231_v50, %v2692_v30 }
  0xd2   :  { %v222_v44 = vadd.f32 %v220_v39, %v165_v33  ;;  %v228_v48 = vadd.f32 %v226_v40, %v171_v37  ;;  %v177_v54 = vadd.f32 %v175_v43, %v139_v42  ;;  %v178_v58 = vadd.f32 %v176_v41, %v140_v47 }
  0xd3   :  { %v2723_v56 = vadd.f32 %v267_v46, %v223_v45  ;;  %v2728_v60 = vadd.f32 %v281_v51, %v229_v49  ;;  %v295_v4 = vstv %s2705_s1  ;;  %v181_v5 = vmul.f32 %v180_v53, %v2614_v0  ;;  %s2924_s1 = sld [smem:[#allocation10 + $0x4]] }
  0xd4   :  { %v2721_v55 = vadd.f32 %v267_v46, %v222_v44  ;;  %v2726_v59 = vadd.f32 %v281_v51, %v228_v48  ;;  %v143_v6 = vmul.f32 %v142_v52, %v2671_v21  ;;  %v234_v9 = vadd.f32 %v232_v61, %v177_v54 }
  0xd5   :  { %v274_v63 = vmul.f32 1.442695, %v2723_v56  ;;  %v144_v11 = vmul.f32 %v142_v52, %v2658_v14  ;;  %v235_v12 = vadd.f32 %v233_v57, %v178_v58  ;;  %v288_v13 = vmul.f32 1.442695, %v2728_v60 }
  0xd6   :  { %v272_v62 = vmul.f32 1.442695, %v2721_v55  ;;  %v286_v10 = vmul.f32 1.442695, %v2726_v59  ;;  %v237_v15 = vstv %s2712_s22  ;;  %v146_v16 = vstv %s2716_s23  ;;  %s2926_s22 = sld [smem:[#allocation10 + $0x1c]] }
  0xd7   :  { %v186_v17 = vstv %s2719_s24  ;;  %v183_v18 = vadd.f32 %v181_v5, %v143_v6  ;;  %v2751_v19 = vadd.f32 %v295_v4, %v234_v9  ;;  %v239_v20 = vmul.f32 %v237_v15, %v2678_v25  ;;  %s2931_s23 = sld [smem:[#allocation10 + $0x34]] }
  0xd8   :  { %2354 = vpow2.f32 %v272_v62  ;;  %v184_v22 = vadd.f32 %v182_v2, %v144_v11  ;;  %v2754_v23 = vadd.f32 %v295_v4, %v235_v12  ;;  %v238_v24 = vmul.f32 %v237_v15, %v2692_v30  ;;  %s2933_s24 = sld [smem:[#allocation10 + $0x4c]] }
  0xd9   :  { %2356 = vpow2.f32 %v274_v63  ;;  %v188_v26 = vmul.f32 %v186_v17, %v2620_v1  ;;  %v147_v27 = vmul.f32 %v146_v16, %v2671_v21  ;;  %v148_v28 = vmul.f32 %v146_v16, %v2658_v14  ;;  %5635 = sst [smem:[#allocation31_spill]] %s2924_s1 }
  0xda   :  { %2358 = vpow2.f32 %v286_v10  ;;  %v187_v29 = vmul.f32 %v186_v17, %v2614_v0  ;;  %v243_v31 = vstv %s2736_s25  ;;  %v240_v32 = vadd.f32 %v238_v24, %v183_v18  ;;  %s2941_s25 = sld [smem:[#allocation10 + $0x64]] }
  0xdb   :  { %2360 = vpow2.f32 %v288_v13  ;;  %v300_v33 = vmul.f32 1.442695, %v2751_v19  ;;  %v309_v34 = vstv %s2740_s26  ;;  %v241_v35 = vadd.f32 %v239_v20, %v184_v22  ;;  %s2943_s26 = sld [smem:[#allocation10 + $0x7c]] }
  0xdc   :  { %v302_v36 = vmul.f32 1.442695, %v2754_v23  ;;  %v150_v38 = vstv %s2745_s27  ;;  %v192_v39 = vstv %s2747_s28  ;;  %v245_v41 = vmul.f32 %v243_v31, %v2678_v25  ;;  %5636 = sst [smem:[#allocation32_spill]] %s2926_s22  ;;  %s2950_s27 = sld [smem:[#allocation10 + $0x94]] }
  0xdd   :  { %v189_v42 = vadd.f32 %v187_v29, %v147_v27  ;;  %v190_v43 = vadd.f32 %v188_v26, %v148_v28  ;;  %2362 = vpow2.f32 %v300_v33  ;;  %v2776_v45 = vadd.f32 %v309_v34, %v240_v32  ;;  %5637 = sst [smem:[#allocation33_spill]] %s2931_s23  ;;  %s2952_s28 = sld [smem:[#allocation10 + $0xac]] }
  0xde   :  { %vm270_vm4 = vcmp.gt.f32.partialorder %v2721_v55, 0.0  ;;  %2364 = vpow2.f32 %v302_v36  ;;  %v2779_v47 = vadd.f32 %v309_v34, %v241_v35  ;;  %vm271_vm5 = vcmp.gt.f32.partialorder %v2723_v56, 0.0  ;;  %5638 = sst [smem:[#allocation34_spill]] %s2933_s24 }
  0xdf   :  { %v244_v50 = vmul.f32 %v243_v31, %v2692_v30  ;;  %v249_v53 = vstv %s2757_s29  ;;  %v151_v54 = vmul.f32 %v150_v38, %v2671_v21  ;;  %v193_v57 = vmul.f32 %v192_v39, %v2614_v0  ;;  %s2956_s29 = sld [smem:[#allocation10 + $0x7]] }
  0xe0   :  { %v314_v61 = vmul.f32 1.442695, %v2776_v45  ;;  %v323_v62 = vstv %s2766_s30  ;;  %v247_v63 = vadd.f32 %v245_v41, %v190_v43  ;;  %v316_v2 = vmul.f32 1.442695, %v2779_v47  ;;  %5639 = sst [smem:[#allocation35_spill]] %s2941_s25  ;;  %s2958_s30 = sld [smem:[#allocation10 + $0x1f]] }
  0xe1   :  { %v246_v58 = vadd.f32 %v244_v50, %v189_v42  ;;  %v251_v6 = vmul.f32 %v249_v53, %v2678_v25  ;;  %v154_v9 = vstv %s2772_s8  ;;  %v198_v10 = vstv %s2774_s0  ;;  %5640 = sst [smem:[#allocation36_spill]] %s2943_s26  ;;  %s2961_s8 = sld [smem:[#allocation10 + $0x37]] }
  0xe2   :  { %v2355_v37 = vpop.eup %2354  ;;  %v195_v11 = vadd.f32 %v193_v57, %v151_v54  ;;  %2366 = vpow2.f32 %v314_v61  ;;  %vm284_vm6 = vcmp.gt.f32.partialorder %v2726_v59, 0.0  ;;  %v2819_v15 = vadd.f32 %v323_v62, %v247_v63  ;;  %5641 = sst [smem:[#allocation37_spill]] %s2950_s27  ;;  %s2963_s0 = sld [smem:[#allocation10 + $0x4f]] }
  0xe3   :  { %v2357_v40 = vpop.eup %2356  ;;  %v2083_v44 = vadd.f32 -1.0, %v2355_v37  ;;  %v2816_v13 = vadd.f32 %v323_v62, %v246_v58  ;;  %2368 = vpow2.f32 %v316_v2  ;;  %vm285_vm7 = vcmp.gt.f32.partialorder %v2728_v60, 0.0  ;;  %5642 = sst [smem:[#allocation38_spill]] %s2952_s28 }
  0xe4   :  { %v2084_v46 = vadd.f32 -1.0, %v2357_v40  ;;  %v2359_v49 = vpop.eup %2358  ;;  %v250_v18 = vmul.f32 %v249_v53, %v2692_v30  ;;  %v255_v24 = vstv %s2792_s9  ;;  %v155_v26 = vmul.f32 %v154_v9, %v2671_v21  ;;  %s2966_s9 = sld [smem:[#allocation10 + $0x67]] }
  0xe5   :  { %v2783_v48 = vsel %vm270_vm4, %v2721_v55, %v2083_v44  ;;  %v2361_v52 = vpop.eup %2360  ;;  %v194_v55 = vmul.f32 %v192_v39, %v2620_v1  ;;  %v2086_v4 = vadd.f32 -1.0, %v2359_v49  ;;  %v200_v27 = vmul.f32 %v198_v10, %v2620_v1  ;;  %5643 = sst [smem:[#allocation39_spill]] %s2956_s29 }
  0xe6   :  { %v2787_v51 = vsel %vm271_vm5, %v2723_v56, %v2084_v46  ;;  %378 = vrot.lane.b32.xlu0 %v2783_v48, %s5376_s2  ;;  %v152_v56 = vmul.f32 %v150_v38, %v2658_v14  ;;  %v2087_v5 = vadd.f32 -1.0, %v2361_v52  ;;  %v252_v28 = vadd.f32 %v250_v18, %v195_v11  ;;  %5644 = sst [smem:[#allocation40_spill]] %s2958_s30 }
  0xe7   :  { %380 = vrot.lane.b32.xlu1 %v2787_v51, %s5376_s2  ;;  %v2823_v16 = vsel %vm284_vm6, %v2726_v59, %v2086_v4  ;;  %v2363_v17 = vpop.eup %2362  ;;  %v199_v59 = vmul.f32 %v198_v10, %v2614_v0  ;;  %v328_v29 = vmul.f32 1.442695, %v2816_v13  ;;  %v337_v31 = vstv %s2802_s3  ;;  %5645 = sst [smem:[#allocation41_spill]] %s2961_s8  ;;  %s2970_s3 = sld [smem:[#allocation10 + $0x7f]] }
  0xe8   :  { %v196_v12 = vadd.f32 %v194_v55, %v152_v56  ;;  %v2827_v20 = vsel %vm285_vm7, %v2728_v60, %v2087_v5  ;;  %v2365_v22 = vpop.eup %2364  ;;  %v156_v60 = vmul.f32 %v154_v9, %v2658_v14  ;;  %v330_v33 = vmul.f32 1.442695, %v2819_v15  ;;  %5646 = sst [smem:[#allocation42_spill]] %s2963_s0 }
  0xe9   :  { %v2089_v34 = vadd.f32 -1.0, %v2363_v17  ;;  %v2090_v35 = vadd.f32 -1.0, %v2365_v22  ;;  %v257_v36 = vmul.f32 %v255_v24, %v2678_v25  ;;  %v158_v37 = vstv %s2809_s4  ;;  %s2972_s4 = sld [smem:[#allocation10 + $0x97]]  ;;  %5766 = sst [smem:[#allocation39_spill]] %s3402_s6 }
  0xea   :  { %466 = vrot.lane.b32.xlu0 %v2783_v48, %s5378_s5  ;;  %v253_v32 = vadd.f32 %v251_v6, %v196_v12  ;;  %v204_v38 = vstv %s2812_s10  ;;  %v201_v39 = vadd.f32 %v199_v59, %v155_v26  ;;  %v202_v40 = vadd.f32 %v200_v27, %v156_v60  ;;  %5647 = sst [smem:[#allocation43_spill]] %s2966_s9  ;;  %s2976_s10 = sld [smem:[#allocation10 + $0xaf]] }
  0xeb   :  { %468 = vrot.lane.b32.xlu1 %v2787_v51, %s5378_s5  ;;  %2370 = vpow2.f32 %v328_v29  ;;  %v2852_v41 = vadd.f32 %v337_v31, %v252_v28  ;;  %vm298_vm8 = vcmp.gt.f32.partialorder %v2751_v19, 0.0  ;;  %vm299_vm9 = vcmp.gt.f32.partialorder %v2754_v23, 0.0  ;;  %s3571_s6 = sld [smem:[#allocation10 + $0x50]] }
  0xec   :  { %2372 = vpow2.f32 %v330_v33  ;;  %v2855_v42 = vadd.f32 %v337_v31, %v253_v32  ;;  %v2859_v43 = vsel %vm298_vm8, %v2751_v19, %v2089_v34  ;;  %v2367_v44 = vpop.eup %2366  ;;  %v256_v46 = vmul.f32 %v255_v24, %v2692_v30 }
  0xed   :  { %v2863_v49 = vsel %vm299_vm9, %v2754_v23, %v2090_v35  ;;  %v2369_v50 = vpop.eup %2368  ;;  %v261_v52 = vstv %s2832_s11  ;;  %v159_v53 = vmul.f32 %v158_v37, %v2671_v21  ;;  %v205_v54 = vmul.f32 %v204_v38, %v2614_v0  ;;  %5648 = sst [smem:[#allocation44_spill]] %s2970_s3  ;;  %s2978_s11 = sld [smem:[#allocation10 + $0xa]] }
  0xee   :  { %522 = vrot.lane.b32.xlu0 %v2823_v16, %s5376_s2  ;;  %v206_v19 = vmul.f32 %v204_v38, %v2620_v1  ;;  %v160_v57 = vmul.f32 %v158_v37, %v2658_v14  ;;  %v258_v55 = vadd.f32 %v256_v46, %v201_v39  ;;  %v342_v23 = vmul.f32 1.442695, %v2852_v41 }
  0xef   :  { %524 = vrot.lane.b32.xlu1 %v2827_v20, %s5376_s2  ;;  %v351_v56 = vstv %s2842_s12  ;;  %v259_v58 = vadd.f32 %v257_v36, %v202_v40  ;;  %v344_v61 = vmul.f32 1.442695, %v2855_v42  ;;  %v2092_v62 = vadd.f32 -1.0, %v2367_v44  ;;  %5649 = sst [smem:[#allocation45_spill]] %s2972_s4  ;;  %s2981_s12 = sld [smem:[#allocation10 + $0x22]] }
  0xf0   :  { %v2093_v0 = vadd.f32 -1.0, %v2369_v50  ;;  %v263_v21 = vmul.f32 %v261_v52, %v2678_v25  ;;  %v207_v63 = vadd.f32 %v205_v54, %v159_v53  ;;  %v208_v1 = vadd.f32 %v206_v19, %v160_v57  ;;  %5650 = sst [smem:[#allocation46_spill]] %s2976_s10  ;;  %s5665_s10 = smov 127  }
  0xf1   :  { %2374 = vpow2.f32 %v342_v23  ;;  %v2884_v14 = vadd.f32 %v351_v56, %v258_v55  ;;  %vm312_vm10 = vcmp.gt.f32.partialorder %v2776_v45, 0.0  ;;  %v2887_v2 = vadd.f32 %v351_v56, %v259_v58 }
  0xf2   :  { %626 = vrot.lane.b32.xlu0 %v2823_v16, %s5378_s5  ;;  %2376 = vpow2.f32 %v344_v61  ;;  %vm313_vm11 = vcmp.gt.f32.partialorder %v2779_v47, 0.0  ;;  %v2891_v4 = vsel %vm312_vm10, %v2776_v45, %v2092_v62  ;;  %v262_v5 = vmul.f32 %v261_v52, %v2692_v30 }
  0xf3   :  { %628 = vrot.lane.b32.xlu1 %v2827_v20, %s5378_s5  ;;  %v2895_v6 = vsel %vm313_vm11, %v2779_v47, %v2093_v0  ;;  %v356_v10 = vmul.f32 1.442695, %v2884_v14  ;;  %v365_v30 = vstv %s2876_s13  ;;  %v265_v47 = vadd.f32 %v263_v21, %v208_v1  ;;  %5651 = sst [smem:[#allocation47_spill]] %s2978_s11  ;;  %s2983_s13 = sld [smem:[#allocation10 + $0x3a]] }
  0xf4   :  { %v264_v45 = vadd.f32 %v262_v5, %v207_v63  ;;  %v358_v11 = vmul.f32 1.442695, %v2887_v2  ;;  %vm326_vm12 = vcmp.gt.f32.partialorder %v2816_v13, 0.0  ;;  %vm327_vm13 = vcmp.gt.f32.partialorder %v2819_v15, 0.0  ;;  %s3010_s11 = sld [smem:[#allocation10 + $0x3d]] }
  0xf5   :  { %v2371_v25 = vpop.eup %2370  ;;  %2378 = vpow2.f32 %v356_v10  ;;  %v2935_v22 = vadd.f32 %v365_v30, %v265_v47  ;;  %vm340_vm14 = vcmp.gt.f32.partialorder %v2852_v41, 0.0  ;;  %5652 = sst [smem:[#allocation48_spill]] %s2981_s12  ;;  %vm341_vm15 = vcmp.gt.f32.partialorder %v2855_v42, 0.0  ;;  %s3008_s12 = sld [smem:[#allocation10 + $0x25]] }
  0xf6   :  { %682 = vrot.lane.b32.xlu0 %v2859_v43, %s5376_s2  ;;  %v2373_v9 = vpop.eup %2372  ;;  %v2095_v12 = vadd.f32 -1.0, %v2371_v25  ;;  %v2928_v18 = vadd.f32 %v365_v30, %v264_v45  ;;  %2380 = vpow2.f32 %v358_v11  ;;  %v419_v36 = vstv %s2899_s14  ;;  %s3036_s14 = sld [smem:[#allocation10 + $0x28]] }
  0xf7   :  { %684 = vrot.lane.b32.xlu1 %v2863_v49, %s5376_s2  ;;  %v2096_v17 = vadd.f32 -1.0, %v2373_v9  ;;  %v425_v37 = vstv %s2903_s15  ;;  %v431_v38 = vstv %s2905_s16  ;;  %v437_v39 = vstv %s2908_s17  ;;  %s3046_s17 = sld [smem:[#allocation10 + $0x58]]  ;;  %s3077_s16 = sld [smem:[#allocation10 + $0x2b]] }
  0xf8   :  { %v2939_v24 = vsel %vm326_vm12, %v2816_v13, %v2095_v12  ;;  %v370_v13 = vmul.f32 1.442695, %v2928_v18  ;;  %vm354_vm4 = vcmp.gt.f32.partialorder %v2884_v14, 0.0  ;;  %v443_v40 = vstv %s2910_s18  ;;  %s3048_s18 = sld [smem:[#allocation10 + $0x70]] }
  0xf9   :  { %v2946_v59 = vsel %vm327_vm13, %v2819_v15, %v2096_v17  ;;  %v372_v15 = vmul.f32 1.442695, %v2935_v22  ;;  %5653 = sst [smem:[#allocation49_spill]] %s2983_s13  ;;  %vm355_vm5 = vcmp.gt.f32.partialorder %v2887_v2, 0.0  ;;  %v461_v46 = vstv %s2920_s21  ;;  %s3058_s21 = sld [smem:[#allocation10 + $0x88]] }
  0xfa   :  { %786 = vrot.lane.b32.xlu0 %v2859_v43, %s5378_s5  ;;  %2382 = vpow2.f32 %v370_v13  ;;  %s3000_s13 = sld [smem:[#allocation10 + $0x9a]]  ;;  %v579_v50 = vstv %s2924_s1  ;;  %v585_v54 = vstv %s2926_s22  ;;  %v591_v19 = vstv %s2931_s23  ;;  %s3060_s1 = sld [smem:[#allocation10 + $0xa0]] }
  0xfb   :  { %788 = vrot.lane.b32.xlu1 %v2863_v49, %s5378_s5  ;;  %v2375_v26 = vpop.eup %2374  ;;  %2384 = vpow2.f32 %v372_v15  ;;  %5661 = sst [smem:[#allocation56_spill]] %s3008_s12  ;;  %v597_v57 = vstv %s2933_s24  ;;  %v603_v23 = vstv %s2941_s25  ;;  %v609_v56 = vstv %s2943_s26  ;;  %s5680_s24 = sld [smem:[#allocation46_spill]] }
  0xfc   :  { %v2377_v27 = vpop.eup %2376  ;;  %v2098_v60 = vadd.f32 -1.0, %v2375_v26  ;;  %5662 = sst [smem:[#allocation57_spill]] %s3010_s11  ;;  %v615_v58 = vstv %s2950_s27  ;;  %v621_v61 = vstv %s2952_s28  ;;  %v739_v62 = vstv %s2956_s29  ;;  %s3075_s22 = sld [smem:[#allocation10 + $0x16]] }
  0xfd   :  { %v2099_v28 = vadd.f32 -1.0, %v2377_v27  ;;  %5670 = sst [smem:[#allocation64_spill]] %s3036_s14  ;;  %v745_v0 = vstv %s2958_s30  ;;  %v751_v21 = vstv %s2961_s8  ;;  %v757_v1 = vstv %s2963_s0  ;;  %s3082_s25 = sld [smem:[#allocation10 + $0x2e]] }
  0xfe   :  { %842 = vrot.lane.b32.xlu0 %v2891_v4, %s5376_s2  ;;  %v2987_v29 = vsel %vm340_vm14, %v2852_v41, %v2098_v60  ;;  %v449_v41 = vstv %s2914_s19  ;;  %5673 = sst [smem:[#allocation67_spill]] %s3046_s17  ;;  %s3088_s29 = sld [smem:[#allocation10]]  ;;  %v5529_v5 = vstv %s2972_s4  ;;  %vm368_vm6 = vcmp.gt.f32.partialorder %v2928_v18, 0.0 }
  0xff   :  { %844 = vrot.lane.b32.xlu1 %v2895_v6, %s5376_s2  ;;  %v2379_v31 = vpop.eup %2378  ;;  %v2994_v32 = vsel %vm341_vm15, %v2855_v42, %v2099_v28  ;;  %v455_v42 = vstv %s2918_s20  ;;  %5674 = sst [smem:[#allocation68_spill]] %s3048_s18  ;;  %s3067_s20 = sld [smem:[#allocation10 + $0xb8]]  ;;  %vm369_vm7 = vcmp.gt.f32.partialorder %v2935_v22, 0.0  ;;  %v3244_v28 = vmul.f32 %v425_v37, %v2783_v48 }
 0x100   :  { %5658 = sst [smem:[#allocation53_spill]] %s3000_s13  ;;  %v2381_v33 = vpop.eup %2380  ;;  %v2101_v34 = vadd.f32 -1.0, %v2379_v31  ;;  %s3014_s13 = sld [smem:[#allocation10 + $0x6d]]  ;;  %v3202_v31 = vmul.f32 %v425_v37, %v2787_v51  ;;  %v3249_v60 = vmul.f32 %v431_v38, %v2783_v48  ;;  %v3269_v37 = vmul.f32 %v455_v42, %v2783_v48 }
 0x101   :  { %v2102_v35 = vadd.f32 -1.0, %v2381_v33  ;;  %5676 = sst [smem:[#allocation70_spill]] %s3058_s21  ;;  %s3069_s19 = sld [smem:[#allocation10 + $0x13]]  ;;  %v5528_v9 = vstv %s5680_s24  ;;  %v3219_v33 = vmul.f32 %v443_v40, %v2787_v51  ;;  %v3321_v17 = vmul.f32 %v591_v19, %v2827_v20 }
 0x102   :  { %946 = vrot.lane.b32.xlu0 %v2891_v4, %s5378_s5  ;;  %v3042_v44 = vsel %vm354_vm4, %v2884_v14, %v2101_v34  ;;  %5677 = sst [smem:[#allocation71_spill]] %s3060_s1  ;;  %v5520_v14 = vstv %s2966_s9  ;;  %s3097_s9 = sld [smem:[#allocation10 + $0x18]]  ;;  %v3224_v34 = vmul.f32 %v449_v41, %v2787_v51  ;;  %v3336_v13 = vmul.f32 %v609_v56, %v2827_v20 }
 0x103   :  { %948 = vrot.lane.b32.xlu1 %v2895_v6, %s5378_s5  ;;  %5672 = vst [vmem:[#allocation66_spill] sm:$0xff] %v3042_v44  ;;  %v3051_v53 = vsel %vm355_vm5, %v2887_v2, %v2102_v35  ;;  %5682 = sst [smem:[#allocation74_spill]] %s3075_s22  ;;  %v5523_v2 = vstv %s2970_s3  ;;  %s3093_s0 = sld [smem:[#allocation10 + $0x46]]  ;;  %v3197_v35 = vmul.f32 %v419_v36, %v2787_v51  ;;  %v3341_v27 = vmul.f32 %v615_v58, %v2827_v20 }
 0x104   :  { %v2383_v52 = vpop.eup %2382  ;;  %5675 = vst [vmem:[#allocation69_spill] sm:$0xff] %v3051_v53  ;;  %5686 = sst [smem:[#allocation75_spill]] %s3082_s25  ;;  %s3099_s25 = sld [smem:[#allocation10 + $0x30]]  ;;  %v3356_v12 = vmul.f32 %v585_v54, %v2823_v16  ;;  %v3361_v11 = vmul.f32 %v591_v19, %v2823_v16  ;;  %v3366_v47 = vmul.f32 %v597_v57, %v2823_v16  ;;  %v3388_v19 = vmul.f32 %v621_v61, %v2823_v16 }
 0x105   :  { %v2385_v55 = vpop.eup %2384  ;;  %5678 = sst [smem:[#allocation72_spill]] %s3067_s20  ;;  %v2104_v63 = vadd.f32 -1.0, %v2383_v52  ;;  %s3105_s4 = sld [smem:[#allocation10 + $0x48]]  ;;  %v3214_v52 = vmul.f32 %v437_v39, %v2787_v51  ;;  %v3418_v10 = vmul.f32 %v745_v0, %v2863_v49  ;;  %v3430_v30 = vmul.f32 %v757_v1, %v2863_v49 }
 0x106   :  { %1002 = vrot.lane.b32.xlu0 %v2939_v24, %s5376_s2  ;;  %5664 = sst [smem:[#allocation59_spill]] %s3014_s13  ;;  %s3030_s13 = sld [smem:[#allocation10 + $0x10]]  ;;  %v2105_v25 = vadd.f32 -1.0, %v2385_v55  ;;  %v3229_v55 = vmul.f32 %v455_v42, %v2787_v51  ;;  %v3316_v42 = vmul.f32 %v585_v54, %v2827_v20  ;;  %v3381_v54 = vmul.f32 %v615_v58, %v2823_v16  ;;  %5755 = vst [vmem:[#allocation97_spill] sm:$0xff] %v3388_v19 }
 0x107   :  { %1004 = vrot.lane.b32.xlu1 %v2946_v59, %s5376_s2  ;;  %s2989_s2 = sld [smem:[#allocation10 + $0x52]]  ;;  %5679 = sst [smem:[#allocation73_spill]] %s3069_s19  ;;  %v3114_v26 = vsel %vm368_vm6, %v2928_v18, %v2104_v63  ;;  %v3234_v63 = vmul.f32 %v461_v46, %v2787_v51  ;;  %v3259_v18 = vmul.f32 %v443_v40, %v2783_v48  ;;  %v3346_v40 = vmul.f32 %v621_v61, %v2827_v20 }
 0x108   :  { %s3084_s19 = sld [smem:[#allocation10 + $0x43]]  ;;  %5690 = sst [smem:[#allocation77_spill]] %s3088_s29  ;;  %5701 = vst [vmem:[#allocation83_spill] sm:$0xff] %v3114_v26  ;;  %v3123_v15 = vsel %vm369_vm7, %v2935_v22, %v2105_v25  ;;  %v3207_v25 = vmul.f32 %v431_v38, %v2787_v51  ;;  %v3239_v22 = vmul.f32 %v419_v36, %v2783_v48  ;;  %v3254_v51 = vmul.f32 %v437_v39, %v2783_v48 }
 0x109   :  { %5692 = sst [smem:[#allocation78_spill]] %s3093_s0  ;;  %s3107_s23 = sld [smem:[#allocation10 + $0x60]]  ;;  %5705 = vst [vmem:[#allocation86_spill] sm:$0xff] %v3123_v15  ;;  %v3264_v36 = vmul.f32 %v449_v41, %v2783_v48  ;;  %v3278_v38 = vmul.f32 %v461_v46, %v2783_v48  ;;  %v3311_v41 = vmul.f32 %v579_v50, %v2827_v20  ;;  %v3326_v48 = vmul.f32 %v597_v57, %v2827_v20 }
 0x10a   :  { %1106 = vrot.lane.b32.xlu0 %v2939_v24, %s5378_s5  ;;  %5694 = sst [smem:[#allocation79_spill]] %s3097_s9  ;;  %s3116_s27 = sld [smem:[#allocation10 + $0x78]]  ;;  %v3331_v46 = vmul.f32 %v603_v23, %v2827_v20  ;;  %v3351_v39 = vmul.f32 %v579_v50, %v2823_v16  ;;  %v3371_v20 = vmul.f32 %v603_v23, %v2823_v16  ;;  %v3376_v50 = vmul.f32 %v609_v56, %v2823_v16 }
 0x10b   :  { %1108 = vrot.lane.b32.xlu1 %v2946_v59, %s5378_s5  ;;  %s2991_s5 = sld [smem:[#allocation10 + $0x6a]]  ;;  %5696 = sst [smem:[#allocation80_spill]] %s3099_s25  ;;  %v3407_v16 = vmul.f32 %v739_v62, %v2863_v49  ;;  %5770 = vst [vmem:[#allocation99_spill] sm:$0xff] %v3418_v10  ;;  %v3423_v58 = vmul.f32 %v751_v21, %v2863_v49  ;;  %5773 = vst [vmem:[#allocation101_spill] sm:$0xff] %v3430_v30  ;;  %v3435_v61 = vmul.f32 %v5520_v14, %v2863_v49 }
 0x10c   :  { %5669 = sst [smem:[#allocation63_spill]] %s3030_s13  ;;  %s3129_s8 = sld [smem:[#allocation10 + $0x2]]  ;;  %v3440_v56 = vmul.f32 %v5523_v2, %v2863_v49  ;;  %v3445_v23 = vmul.f32 %v5529_v5, %v2863_v49  ;;  %v3450_v57 = vmul.f32 %v5528_v9, %v2863_v49  ;;  %v3455_v45 = vmul.f32 %v739_v62, %v2859_v43 }
 0x10d   :  { %5654 = sst [smem:[#allocation50_spill]] %s2989_s2  ;;  %s3006_s2 = sld [smem:[#allocation10 + $0xd]]  ;;  %5767 = vst [vmem:[#allocation98_spill] sm:$0xff] %v3407_v16  ;;  %5771 = vst [vmem:[#allocation100_spill] sm:$0xff] %v3423_v58  ;;  %v3460_v14 = vmul.f32 %v745_v0, %v2859_v43  ;;  %v3465_v2 = vmul.f32 %v751_v21, %v2859_v43  ;;  %v3472_v49 = vmul.f32 %v757_v1, %v2859_v43 }
 0x10e   :  { %1162 = vrot.lane.b32.xlu0 %v2987_v29, %s5656_s7  ;;  %5687 = sst [smem:[#allocation76_spill]] %s3084_s19  ;;  %s3118_s15 = sld [smem:[#allocation10 + $0x90]]  ;;  %5775 = vst [vmem:[#allocation102_spill] sm:$0xff] %v3435_v61  ;;  %5777 = vst [vmem:[#allocation103_spill] sm:$0xff] %v3440_v56 }
 0x10f   :  { %1164 = vrot.lane.b32.xlu1 %v2994_v32, %s5656_s7  ;;  %5697 = sst [smem:[#allocation81_spill]] %s3105_s4  ;;  %s3136_s19 = sld [smem:[#allocation10 + $0x1a]]  ;;  %5779 = vst [vmem:[#allocation104_spill] sm:$0xff] %v3445_v23  ;;  %5780 = vst [vmem:[#allocation105_spill] sm:$0xff] %v3450_v57 }
 0x110   :  { %5698 = sst [smem:[#allocation82_spill]] %s3107_s23  ;;  %s3127_s28 = sld [smem:[#allocation10 + $0xa8]]  ;;  %5781 = vst [vmem:[#allocation106_spill] sm:$0xff] %v3455_v45  ;;  %5782 = vst [vmem:[#allocation107_spill] sm:$0xff] %v3460_v14 }
 0x111   :  { %5655 = sst [smem:[#allocation51_spill]] %s2991_s5  ;;  %s3004_s5 = sld [smem:[#allocation10 + $0xb2]]  ;;  %5784 = vst [vmem:[#allocation108_spill] sm:$0xff] %v3465_v2  ;;  %5787 = vst [vmem:[#allocation109_spill] sm:$0xff] %v3472_v49 }
 0x112   :  { %1266 = vrot.lane.b32.xlu0 %v2987_v29, %s5665_s10  ;;  %5702 = sst [smem:[#allocation84_spill]] %s3116_s27  ;;  %s5716_s0 = sld [smem:[#allocation76_spill]] }
 0x113   :  { %5660 = sst [smem:[#allocation55_spill]] %s3006_s2  ;;  %s3021_s2 = sld [smem:[#allocation10 + $0x9d]]  ;;  %1268 = vrot.lane.b32.xlu1 %v2994_v32, %s5665_s10 }
 0x114   :  { %5704 = sst [smem:[#allocation85_spill]] %s3118_s15  ;;  %s3138_s3 = sld [smem:[#allocation10 + $0x32]] }
 0x115   :  { %5707 = sst [smem:[#allocation88_spill]] %s3129_s8  ;;  %s3143_s30 = sld [smem:[#allocation10 + $0x4a]] }
 0x116   :  { %1322 = vrot.lane.b32.xlu0 %v3042_v44, %s5656_s7  ;;  %5706 = sst [smem:[#allocation87_spill]] %s3127_s28  ;;  %s3145_s11 = sld [smem:[#allocation10 + $0x62]] }
 0x117   :  { %5659 = sst [smem:[#allocation54_spill]] %s3004_s5  ;;  %s3019_s5 = sld [smem:[#allocation10 + $0x85]]  ;;  %1324 = vrot.lane.b32.xlu1 %v3051_v53, %s5656_s7 }
 0x118   :  { %5708 = sst [smem:[#allocation89_spill]] %s3136_s19  ;;  %s5714_s24 = sld [smem:[#allocation75_spill]] }
 0x119   :  { %5667 = sst [smem:[#allocation61_spill]] %s3021_s2  ;;  %s3038_s2 = sld [smem:[#allocation10 + $0x40]] }
 0x11a   :  { %1426 = vrot.lane.b32.xlu0 %v3042_v44, %s5665_s10  ;;  %5709 = sst [smem:[#allocation90_spill]] %s3138_s3  ;;  %s3153_s19 = sld [smem:[#allocation10 + $0x92]] }
 0x11b   :  { %1428 = vrot.lane.b32.xlu1 %v3051_v53, %s5665_s10  ;;  %5710 = sst [smem:[#allocation91_spill]] %s3143_s30  ;;  %s3161_s13 = sld [smem:[#allocation10 + $0xaa]] }
 0x11c   :  { %5712 = sst [smem:[#allocation92_spill]] %s3145_s11  ;;  %s3163_s14 = sld [smem:[#allocation10 + $0x3]] }
 0x11d   :  { %5666 = sst [smem:[#allocation60_spill]] %s3019_s5  ;;  %s3170_s21 = sld [smem:[#allocation10 + $0x1b]] }
 0x11e   :  { %1482 = vrot.lane.b32.xlu0 %v3114_v26, %s5656_s7  ;;  %s3172_s1 = sld [smem:[#allocation10 + $0x33]]  ;;  %s3273_s17 = sld [smem:[#allocation10 + $0x1d]] }
 0x11f   :  { %5671 = sst [smem:[#allocation65_spill]] %s3038_s2  ;;  %1484 = vrot.lane.b32.xlu1 %v3123_v15, %s5656_s7  ;;  %s5718_s2 = sld [smem:[#allocation78_spill]] }
 0x120   :  { %s3151_s7 = sld [smem:[#allocation10 + $0x7a]]  ;;  %s3180_s20 = sld [smem:[#allocation10 + $0x4b]] }
 0x121   :  { %5715 = sst [smem:[#allocation75_spill]] %s3153_s19  ;;  %s3189_s9 = sld [smem:[#allocation10 + $0x7b]] }
 0x122   :  { %1586 = vrot.lane.b32.xlu0 %v3114_v26, %s5665_s10  ;;  %5717 = sst [smem:[#allocation76_spill]] %s3161_s13  ;;  %s3283_s5 = sld [smem:[#allocation10 + $0x35]] }
 0x123   :  { %5719 = sst [smem:[#allocation78_spill]] %s3163_s14  ;;  %1588 = vrot.lane.b32.xlu1 %v3123_v15, %s5665_s10  ;;  %s3182_s10 = sld [smem:[#allocation10 + $0x63]] }
 0x124   :  { %5720 = sst [smem:[#allocation94_spill]] %s3170_s21  ;;  %s3285_s22 = sld [smem:[#allocation10 + $0x4d]] }
 0x125   :  { %5721 = sst [smem:[#allocation95_spill]] %s3172_s1  ;;  %s3191_s25 = sld [smem:[#allocation10 + $0x93]] }
 0x126   :  { %5713 = sst [smem:[#allocation93_spill]] %s3151_s7  ;;  %s3209_s15 = sld [smem:[#allocation10 + $0xab]] }
 0x127   :  { %5727 = sst [smem:[#allocation23_spill]] %s3180_s20  ;;  %s3291_s27 = sld [smem:[#allocation10 + $0x65]] }
 0x128   :  { %5732 = sst [smem:[#allocation25_spill]] %s3189_s9  ;;  %s3293_s8 = sld [smem:[#allocation10 + $0x7d]] }
 0x129   :  { %5729 = sst [smem:[#allocation24_spill]] %s3182_s10  ;;  %s3299_s11 = sld [smem:[#allocation10 + $0x95]] }
 0x12a   :  { %5737 = sst [smem:[#allocation29_spill]] %s3273_s17  ;;  %s3301_s7 = sld [smem:[#allocation10 + $0xad]] }
 0x12b   :  { %5733 = sst [smem:[#allocation26_spill]] %s3191_s25  ;;  %s3383_s26 = sld [smem:[#allocation10 + $0x6]] }
 0x12c   :  { %5734 = sst [smem:[#allocation27_spill]] %s3209_s15  ;;  %s3393_s1 = sld [smem:[#allocation10 + $0x1e]] }
 0x12d   :  { %5739 = sst [smem:[#allocation30_spill]] %s3283_s5  ;;  %s5760_s12 = sld [smem:[#allocation43_spill]] }
 0x12e   :  { %5740 = sst [smem:[#allocation96_spill]] %s3285_s22  ;;  %s3395_s25 = sld [smem:[#allocation10 + $0x36]] }
 0x12f   :  { %5744 = sst [smem:[#allocation31_spill]] %s3291_s27  ;;  %s5762_s4 = sld [smem:[#allocation44_spill]] }
 0x130   :  { %5746 = sst [smem:[#allocation32_spill]] %s3293_s8  ;;  %s5763_s9 = sld [smem:[#allocation45_spill]] }
 0x131   :  { %5751 = sst [smem:[#allocation33_spill]] %s3299_s11  ;;  %s5764_s10 = sld [smem:[#allocation46_spill]] }
 0x132   :  { %5752 = sst [smem:[#allocation34_spill]] %s3301_s7  ;;  %s3400_s29 = sld [smem:[#allocation10 + $0x4e]] }
 0x133   :  { %5754 = sst [smem:[#allocation35_spill]] %s3383_s26  ;;  %s3411_s22 = sld [smem:[#allocation10 + $0x7e]]  ;;  %v5788_v62 = vstv %s5760_s12 }
 0x134   :  { %5759 = sst [smem:[#allocation36_spill]] %s3393_s1  ;;  %s3413_s27 = sld [smem:[#allocation10 + $0x96]]  ;;  %v3477_v9 = vmul.f32 %v5788_v62, %v2859_v43 }
 0x135   :  { %5761 = sst [smem:[#allocation37_spill]] %s3395_s25  ;;  %s5774_s7 = sld [smem:[#allocation47_spill]]  ;;  %v5790_v0 = vstv %s5762_s4 }
 0x136   :  { %s3425_s8 = sld [smem:[#allocation10 + $0xae]]  ;;  %s5776_s11 = sld [smem:[#allocation48_spill]]  ;;  %5789 = vst [vmem:[#allocation110_spill] sm:$0xff] %v3477_v9  ;;  %v3482_v5 = vmul.f32 %v5790_v0, %v2859_v43  ;;  %v5792_v14 = vstv %s5763_s9 }
 0x137   :  { %s5778_s5 = sld [smem:[#allocation49_spill]]  ;;  %s5783_s17 = sld [smem:[#allocation50_spill]]  ;;  %v3487_v21 = vmul.f32 %v5792_v14, %v2859_v43  ;;  %v5794_v1 = vstv %s5764_s10 }
 0x138   :  { %5765 = sst [smem:[#allocation38_spill]] %s3400_s29  ;;  %s5785_s20 = sld [smem:[#allocation51_spill]]  ;;  %5791 = vst [vmem:[#allocation111_spill] sm:$0xff] %v3482_v5  ;;  %v3496_v49 = vmul.f32 %v5794_v1, %v2859_v43 }
 0x139   :  { %5768 = sst [smem:[#allocation40_spill]] %s3411_s22  ;;  %s3467_s18 = sld [smem:[#allocation10 + $0x5b]]  ;;  %5793 = vst [vmem:[#allocation112_spill] sm:$0xff] %v3487_v21 }
 0x13a   :  { %5769 = sst [smem:[#allocation41_spill]] %s3413_s27  ;;  %s5786_s21 = sld [smem:[#allocation52_spill]]  ;;  %5796 = vst [vmem:[#allocation113_spill] sm:$0xff] %v3496_v49 }
 0x13b   :  { %s3489_s15 = sld [smem:[#allocation10 + $0x5e]]  ;;  %s3491_s28 = sld [smem:[#allocation10 + $0x73]]  ;;  %v5797_v62 = vstv %s5774_s7 }
 0x13c   :  { %5772 = sst [smem:[#allocation42_spill]] %s3425_s8  ;;  %s5795_s3 = sld [smem:[#allocation53_spill]]  ;;  %v3501_v0 = vmul.f32 %v5797_v62, %v2895_v6  ;;  %v5800_v5 = vstv %s5776_s11 }
 0x13d   :  { %s5798_s23 = sld [smem:[#allocation54_spill]]  ;;  %v3506_v9 = vmul.f32 %v5800_v5, %v2895_v6  ;;  %v5802_v14 = vstv %s5778_s5  ;;  %s3513_s9 = sld [smem:[#allocation10 + $0x76]]  ;;  %v5804_v1 = vstv %s5783_s17  ;;  %v5828_v43 = vstv %s5778_s5 }
 0x13e   :  { %5799 = vst [vmem:[#allocation114_spill] sm:$0xff] %v3501_v0  ;;  %v3511_v21 = vmul.f32 %v5802_v14, %v2895_v6  ;;  %s3515_s10 = sld [smem:[#allocation10 + $0x8b]]  ;;  %v3521_v62 = vmul.f32 %v5804_v1, %v2895_v6  ;;  %v5806_v0 = vstv %s5785_s20  ;;  %s3533_s12 = sld [smem:[#allocation10 + $0x8e]] }
 0x13f   :  { %5801 = vst [vmem:[#allocation115_spill] sm:$0xff] %v3506_v9  ;;  %v3526_v5 = vmul.f32 %v5806_v0, %v2895_v6  ;;  %s3535_s4 = sld [smem:[#allocation10 + $0xa3]]  ;;  %s3539_s26 = sld [smem:[#allocation10 + $0x8]] }
 0x140   :  { %5803 = vst [vmem:[#allocation116_spill] sm:$0xff] %v3511_v21  ;;  %5805 = vst [vmem:[#allocation117_spill] sm:$0xff] %v3521_v62  ;;  %v5808_v9 = vstv %s5786_s21  ;;  %s3551_s14 = sld [smem:[#allocation10 + $0xa6]]  ;;  %s3555_s25 = sld [smem:[#allocation10 + $0x20]]  ;;  %v5819_v21 = vstv %s5774_s7 }
 0x141   :  { %5807 = vst [vmem:[#allocation118_spill] sm:$0xff] %v3526_v5  ;;  %v3531_v14 = vmul.f32 %v5808_v9, %v2895_v6  ;;  %s3557_s1 = sld [smem:[#allocation10 + $0x38]]  ;;  %s5824_s19 = sld [smem:[#allocation56_spill]] }
 0x142   :  { %v5812_v1 = vstv %s5795_s3  ;;  %s5822_s13 = sld [smem:[#allocation55_spill]]  ;;  %s5825_s29 = sld [smem:[#allocation57_spill]] }
 0x143   :  { %5809 = vst [vmem:[#allocation119_spill] sm:$0xff] %v3531_v14  ;;  %v3544_v0 = vmul.f32 %v5812_v1, %v2895_v6  ;;  %v5814_v5 = vstv %s5798_s23  ;;  %v3562_v1 = vmul.f32 %v5819_v21, %v2891_v4  ;;  %5826 = sst [smem:[#allocation48_spill]] %s3571_s6  ;;  %s3573_s30 = sld [smem:[#allocation10 + $0x68]]  ;;  %v5830_v21 = vstv %s5783_s17 }
 0x144   :  { %v3549_v9 = vmul.f32 %v5814_v5, %v2895_v6  ;;  %s5831_s7 = sld [smem:[#allocation58_spill]]  ;;  %s5836_s22 = sld [smem:[#allocation61_spill]]  ;;  %v5838_v14 = vstv %s5785_s20 }
 0x145   :  { %5810 = sst [smem:[#allocation43_spill]] %s3535_s4  ;;  %5813 = vst [vmem:[#allocation120_spill] sm:$0xff] %v3544_v0  ;;  %5820 = vst [vmem:[#allocation122_spill] sm:$0xff] %v3562_v1  ;;  %v5821_v0 = vstv %s5776_s11  ;;  %v3583_v1 = vmul.f32 %v5830_v21, %v2891_v4  ;;  %s3586_s4 = sld [smem:[#allocation10 + $0x80]]  ;;  %v3593_v5 = vmul.f32 %v5838_v14, %v2891_v4 }
 0x146   :  { %5811 = sst [smem:[#allocation44_spill]] %s3539_s26  ;;  %5815 = vst [vmem:[#allocation121_spill] sm:$0xff] %v3549_v9  ;;  %v3567_v6 = vmul.f32 %v5821_v0, %v2891_v4  ;;  %v3578_v9 = vmul.f32 %v5828_v43, %v2891_v4  ;;  %s5833_s11 = sld [smem:[#allocation59_spill]]  ;;  %v5840_v43 = vstv %s5786_s21  ;;  %v5846_v0 = vstv %s5798_s23 }
 0x147   :  { %5816 = sst [smem:[#allocation45_spill]] %s3551_s14  ;;  %5832 = vst [vmem:[#allocation125_spill] sm:$0xff] %v3583_v1  ;;  %s5834_s14 = sld [smem:[#allocation60_spill]]  ;;  %5839 = vst [vmem:[#allocation126_spill] sm:$0xff] %v3593_v5  ;;  %v3610_v1 = vmul.f32 %v5846_v0, %v2891_v4 }
 0x148   :  { %5817 = sst [smem:[#allocation46_spill]] %s3555_s25  ;;  %5823 = vst [vmem:[#allocation123_spill] sm:$0xff] %v3567_v6  ;;  %5829 = vst [vmem:[#allocation124_spill] sm:$0xff] %v3578_v9  ;;  %s3588_s27 = sld [smem:[#allocation10 + $0x98]]  ;;  %v3598_v9 = vmul.f32 %v5840_v43, %v2891_v4  ;;  %v5842_v6 = vstv %s5795_s3  ;;  %v5848_v14 = vstv %s5822_s13  ;;  %v5850_v43 = vstv %s5824_s19 }
 0x149   :  { %5818 = sst [smem:[#allocation47_spill]] %s3557_s1  ;;  %s5843_s17 = sld [smem:[#allocation62_spill]]  ;;  %v3603_v21 = vmul.f32 %v5842_v6, %v2891_v4  ;;  %5847 = vst [vmem:[#allocation129_spill] sm:$0xff] %v3610_v1  ;;  %v3615_v5 = vmul.f32 %v5848_v14, %v2946_v59  ;;  %v5852_v6 = vstv %s5825_s29 }
 0x14a   :  { %5827 = sst [smem:[#allocation49_spill]] %s3573_s30  ;;  %5841 = vst [vmem:[#allocation127_spill] sm:$0xff] %v3598_v9  ;;  %s3605_s5 = sld [smem:[#allocation10 + $0xb0]]  ;;  %v3620_v9 = vmul.f32 %v5850_v43, %v2946_v59  ;;  %v5857_v4 = vstv %s5831_s7 }
 0x14b   :  { %5835 = sst [smem:[#allocation50_spill]] %s3586_s4  ;;  %5844 = vst [vmem:[#allocation128_spill] sm:$0xff] %v3603_v21  ;;  %5849 = vst [vmem:[#allocation130_spill] sm:$0xff] %v3615_v5  ;;  %v3625_v21 = vmul.f32 %v5852_v6, %v2946_v59  ;;  %s3629_s21 = sld [smem:[#allocation10 + $0x9]]  ;;  %v3636_v0 = vmul.f32 %v5857_v4, %v2946_v59 }
 0x14c   :  { %5851 = vst [vmem:[#allocation131_spill] sm:$0xff] %v3620_v9  ;;  %s3627_s20 = sld [smem:[#allocation10 + $0xbb]]  ;;  %s3631_s3 = sld [smem:[#allocation10 + $0x21]]  ;;  %v5859_v14 = vstv %s5833_s11  ;;  %v5863_v9 = vstv %s5836_s22 }
 0x14d   :  { %5853 = vst [vmem:[#allocation132_spill] sm:$0xff] %v3625_v21  ;;  %5858 = vst [vmem:[#allocation133_spill] sm:$0xff] %v3636_v0  ;;  %v3641_v43 = vmul.f32 %v5859_v14, %v2946_v59  ;;  %v5861_v6 = vstv %s5834_s14  ;;  %v3651_v5 = vmul.f32 %v5863_v9, %v2946_v59  ;;  %s3653_s23 = sld [smem:[#allocation10 + $0x39]]  ;;  %s5866_s8 = sld [smem:[#allocation63_spill]]  ;;  %v5871_v14 = vstv %s5822_s13 }
 0x14e   :  { %5837 = sst [smem:[#allocation51_spill]] %s3588_s27  ;;  %v3646_v21 = vmul.f32 %v5861_v6, %v2946_v59  ;;  %v3665_v6 = vmul.f32 %v5871_v14, %v2939_v24  ;;  %s5881_s13 = sld [smem:[#allocation67_spill]]  ;;  %v5883_v14 = vstv %s5833_s11 }
 0x14f   :  { %5860 = vst [vmem:[#allocation134_spill] sm:$0xff] %v3641_v43  ;;  %5864 = vst [vmem:[#allocation136_spill] sm:$0xff] %v3651_v5  ;;  %v5868_v4 = vstv %s5843_s17  ;;  %v5875_v5 = vstv %s5825_s29  ;;  %s3702_s29 = sld [smem:[#allocation10 + $0x99]]  ;;  %s3723_s11 = sld [smem:[#allocation10 + $0xb]] }
 0x150   :  { %5845 = sst [smem:[#allocation52_spill]] %s3605_s5  ;;  %5862 = vst [vmem:[#allocation135_spill] sm:$0xff] %v3646_v21  ;;  %v3660_v0 = vmul.f32 %v5868_v4, %v2946_v59  ;;  %5872 = vst [vmem:[#allocation138_spill] sm:$0xff] %v3665_v6  ;;  %v5873_v21 = vstv %s5824_s19  ;;  %v3675_v43 = vmul.f32 %v5875_v5, %v2939_v24  ;;  %v5880_v59 = vstv %s5831_s7  ;;  %s5889_s19 = sld [smem:[#allocation68_spill]] }
 0x151   :  { %5855 = sst [smem:[#allocation54_spill]] %s3629_s21  ;;  %v3670_v9 = vmul.f32 %v5873_v21, %v2939_v24  ;;  %s3679_s21 = sld [smem:[#allocation10 + $0x81]]  ;;  %v3684_v4 = vmul.f32 %v5880_v59, %v2939_v24  ;;  %v3689_v6 = vmul.f32 %v5883_v14, %v2939_v24  ;;  %v5885_v21 = vstv %s5834_s14 }
 0x152   :  { %5854 = sst [smem:[#allocation53_spill]] %s3627_s20  ;;  %s3655_s20 = sld [smem:[#allocation10 + $0x51]]  ;;  %5870 = vst [vmem:[#allocation137_spill] sm:$0xff] %v3660_v0  ;;  %5876 = vst [vmem:[#allocation140_spill] sm:$0xff] %v3675_v43  ;;  %v3694_v5 = vmul.f32 %v5885_v21, %v2939_v24  ;;  %v5887_v43 = vstv %s5836_s22  ;;  %v5893_v59 = vstv %s5843_s17 }
 0x153   :  { %5856 = sst [smem:[#allocation55_spill]] %s3631_s3  ;;  %s5869_s3 = sld [smem:[#allocation64_spill]]  ;;  %5874 = vst [vmem:[#allocation139_spill] sm:$0xff] %v3670_v9  ;;  %5882 = vst [vmem:[#allocation141_spill] sm:$0xff] %v3684_v4  ;;  %v3699_v9 = vmul.f32 %v5887_v43, %v2939_v24  ;;  %v3709_v14 = vmul.f32 %v5893_v59, %v2939_v24 }
 0x154   :  { %5865 = sst [smem:[#allocation56_spill]] %s3653_s23  ;;  %s5878_s23 = sld [smem:[#allocation65_spill]]  ;;  %5884 = vst [vmem:[#allocation142_spill] sm:$0xff] %v3689_v6  ;;  %5886 = vst [vmem:[#allocation143_spill] sm:$0xff] %v3694_v5  ;;  %v5895_v6 = vstv %s5866_s8 }
 0x155   :  { %5888 = vst [vmem:[#allocation144_spill] sm:$0xff] %v3699_v9  ;;  %5890 = sst [smem:[#allocation60_spill]] %s3702_s29  ;;  %5894 = vst [vmem:[#allocation145_spill] sm:$0xff] %v3709_v14  ;;  %v3714_v21 = vmul.f32 %v5895_v6, %v2994_v32  ;;  %s5899_s14 = sld [smem:[#allocation71_spill]]  ;;  %v5905_v6 = vstv %s5881_s13 }
 0x156   :  { %s5891_s7 = sld [smem:[#allocation70_spill]]  ;;  %s5900_s22 = sld [smem:[#allocation72_spill]]  ;;  %v5908_v5 = vstv %s5889_s19 }
 0x157   :  { %5879 = sst [smem:[#allocation59_spill]] %s3679_s21  ;;  %s3704_s21 = sld [smem:[#allocation10 + $0xb1]]  ;;  %5896 = vst [vmem:[#allocation146_spill] sm:$0xff] %v3714_v21  ;;  %v3735_v21 = vmul.f32 %v5905_v6, %v2994_v32 }
 0x158   :  { %5867 = sst [smem:[#allocation57_spill]] %s3655_s20  ;;  %s3677_s20 = sld [smem:[#allocation10 + $0x69]] }
 0x159   :  { %v5897_v43 = vstv %s5869_s3  ;;  %5901 = sst [smem:[#allocation62_spill]] %s3723_s11  ;;  %s3725_s17 = sld [smem:[#allocation10 + $0x23]]  ;;  %5906 = vst [vmem:[#allocation149_spill] sm:$0xff] %v3735_v21 }
 0x15a   :  { %v3719_v9 = vmul.f32 %v5897_v43, %v2994_v32  ;;  %v5903_v24 = vstv %s5878_s23  ;;  %s3739_s1 = sld [smem:[#allocation10 + $0x3b]]  ;;  %s5916_s26 = sld [smem:[#allocation73_spill]]  ;;  %v5919_v43 = vstv %s5866_s8 }
 0x15b   :  { %v3730_v59 = vmul.f32 %v5903_v24, %v2994_v32  ;;  %s3741_s25 = sld [smem:[#allocation10 + $0x53]]  ;;  %v5912_v0 = vstv %s5899_s14  ;;  %v3777_v6 = vmul.f32 %v5919_v43, %v2987_v29  ;;  %s3789_s5 = sld [smem:[#allocation10 + $0xc]] }
 0x15c   :  { %5898 = vst [vmem:[#allocation147_spill] sm:$0xff] %v3719_v9  ;;  %v3746_v9 = vmul.f32 %v5908_v5, %v2994_v32  ;;  %v5910_v24 = vstv %s5891_s7  ;;  %s3755_s30 = sld [smem:[#allocation10 + $0x6b]]  ;;  %v3762_v21 = vmul.f32 %v5912_v0, %v2994_v32  ;;  %v5914_v5 = vstv %s5900_s22  ;;  %s3813_s8 = sld [smem:[#allocation10 + $0x3c]] }
 0x15d   :  { %5892 = sst [smem:[#allocation61_spill]] %s3704_s21  ;;  %5904 = vst [vmem:[#allocation148_spill] sm:$0xff] %v3730_v59  ;;  %v3751_v59 = vmul.f32 %v5910_v24, %v2994_v32  ;;  %s3757_s6 = sld [smem:[#allocation10 + $0x83]]  ;;  %5920 = vst [vmem:[#allocation154_spill] sm:$0xff] %v3777_v6  ;;  %v5921_v0 = vstv %s5869_s3  ;;  %v5927_v24 = vstv %s5889_s19  ;;  %v5956_v6 = vstv %s5718_s2 }
 0x15e   :  { %5877 = sst [smem:[#allocation58_spill]] %s3677_s20  ;;  %5909 = vst [vmem:[#allocation150_spill] sm:$0xff] %v3746_v9  ;;  %5913 = vst [vmem:[#allocation152_spill] sm:$0xff] %v3762_v21  ;;  %v3767_v9 = vmul.f32 %v5914_v5, %v2994_v32  ;;  %v3782_v21 = vmul.f32 %v5921_v0, %v2987_v29  ;;  %v5925_v5 = vstv %s5881_s13  ;;  %v3801_v0 = vmul.f32 %v5927_v24, %v2987_v29  ;;  %s3815_s3 = sld [smem:[#allocation10 + $0x54]] }
 0x15f   :  { %5902 = sst [smem:[#allocation63_spill]] %s3725_s17  ;;  %5911 = vst [vmem:[#allocation151_spill] sm:$0xff] %v3751_v59  ;;  %s3770_s4 = sld [smem:[#allocation10 + $0x9b]]  ;;  %v5923_v59 = vstv %s5878_s23  ;;  %v3796_v43 = vmul.f32 %v5925_v5, %v2987_v29  ;;  %v5934_v5 = vstv %s5900_s22  ;;  %v3885_v14 = vmul.f32 %v5956_v6, %v3123_v15 }
 0x160   :  { %5915 = vst [vmem:[#allocation153_spill] sm:$0xff] %v3767_v9  ;;  %s3772_s27 = sld [smem:[#allocation10 + $0xb3]]  ;;  %5922 = vst [vmem:[#allocation155_spill] sm:$0xff] %v3782_v21  ;;  %v3787_v32 = vmul.f32 %v5923_v59, %v2987_v29  ;;  %v5929_v9 = vstv %s5891_s7  ;;  %v5931_v59 = vstv %s5899_s14  ;;  %v3820_v24 = vmul.f32 %v5934_v5, %v2987_v29  ;;  %s3837_s23 = sld [smem:[#allocation10 + $0x6c]] }
 0x161   :  { %5907 = sst [smem:[#allocation64_spill]] %s3741_s25  ;;  %5926 = vst [vmem:[#allocation157_spill] sm:$0xff] %v3796_v43  ;;  %5928 = vst [vmem:[#allocation158_spill] sm:$0xff] %v3801_v0  ;;  %v3806_v21 = vmul.f32 %v5929_v9, %v2987_v29  ;;  %v5936_v0 = vstv %s5916_s26  ;;  %s3839_s13 = sld [smem:[#allocation10 + $0x84]]  ;;  %v5945_v5 = vstv %s3077_s16 }
 0x162   :  { %s5917_s25 = sld [smem:[#allocation74_spill]]  ;;  %5924 = vst [vmem:[#allocation156_spill] sm:$0xff] %v3787_v32  ;;  %v3811_v32 = vmul.f32 %v5931_v59, %v2987_v29  ;;  %5933 = sst [smem:[#allocation67_spill]] %s3813_s8  ;;  %5935 = vst [vmem:[#allocation161_spill] sm:$0xff] %v3820_v24  ;;  %v3825_v9 = vmul.f32 %v5936_v0, %v3051_v53  ;;  %v5940_v59 = vmov %v5936_v0  ;;  %v1403_v24 = vstv %s3491_s28 }
 0x163   :  { %5930 = vst [vmem:[#allocation159_spill] sm:$0xff] %v3806_v21  ;;  %s3857_s26 = sld [smem:[#allocation10 + $0x9c]]  ;;  %s3875_s7 = sld [smem:[#allocation10 + $0x26]]  ;;  %5958 = vst [vmem:[#allocation171_spill] sm:$0xff] %v3885_v14  ;;  %v1569_v14 = vstv %s3533_s12 }
 0x164   :  { %5932 = vst [vmem:[#allocation160_spill] sm:$0xff] %v3811_v32  ;;  %5937 = vst [vmem:[#allocation162_spill] sm:$0xff] %v3825_v9  ;;  %v3835_v32 = vmul.f32 %v5940_v59, %v3042_v44  ;;  %v1397_v59 = vstv %s3467_s18  ;;  %s3859_s19 = sld [smem:[#allocation10 + $0xb4]]  ;;  %s3895_s18 = sld [smem:[#allocation10 + $0x56]] }
 0x165   :  { %5918 = sst [smem:[#allocation65_spill]] %s3770_s4  ;;  %s3791_s4 = sld [smem:[#allocation10 + $0x24]] }
 0x166   :  { %5941 = vst [vmem:[#allocation164_spill] sm:$0xff] %v3835_v32  ;;  %5942 = sst [smem:[#allocation68_spill]] %s3837_s23  ;;  %v5949_v32 = vmov %v5945_v5  ;;  %s3907_s14 = sld [smem:[#allocation10 + $0x6e]] }
 0x167   :  { %s3924_s2 = sld [smem:[#allocation10 + $0x9e]]  ;;  %s3939_s16 = sld [smem:[#allocation10 + $0xf]] }
 0x168   :  { %v5938_v21 = vstv %s5917_s25  ;;  %s3873_s25 = sld [smem:[#allocation10 + $0xe]]  ;;  %s3953_s28 = sld [smem:[#allocation10 + $0x57]] }
 0x169   :  { %v3830_v43 = vmul.f32 %v5938_v21, %v3123_v15  ;;  %v5943_v29 = vmov %v5938_v21  ;;  %v3849_v21 = vmul.f32 %v5945_v5, %v3051_v53  ;;  %s3963_s20 = sld [smem:[#allocation10 + $0x6f]]  ;;  %s5998_s8 = sld [smem:[#allocation79_spill]] }
 0x16a   :  { %v3844_v0 = vmul.f32 %v5943_v29, %v3114_v26  ;;  %v3864_v29 = vmul.f32 %v5949_v32, %v3042_v44  ;;  %5961 = sst [smem:[#allocation71_spill]] %s3895_s18  ;;  %s3972_s12 = sld [smem:[#allocation10 + $0x9f]] }
 0x16b   :  { %5939 = vst [vmem:[#allocation163_spill] sm:$0xff] %v3830_v43  ;;  %5946 = vst [vmem:[#allocation166_spill] sm:$0xff] %v3849_v21  ;;  %v5947_v43 = vstv %s5714_s24  ;;  %v1557_v21 = vstv %s3489_s15  ;;  %s3893_s24 = sld [smem:[#allocation10 + $0x3e]]  ;;  %s3951_s15 = sld [smem:[#allocation10 + $0x3f]] }
 0x16c   :  { %5944 = vst [vmem:[#allocation165_spill] sm:$0xff] %v3844_v0  ;;  %v3854_v9 = vmul.f32 %v5947_v43, %v3123_v15  ;;  %5950 = vst [vmem:[#allocation168_spill] sm:$0xff] %v3864_v29  ;;  %v5951_v0 = vmov %v5947_v43  ;;  %v5954_v43 = vstv %s5716_s0  ;;  %s3909_s0 = sld [smem:[#allocation10 + $0x86]]  ;;  %s3974_s29 = sld [smem:[#allocation10 + $0xb7]] }
 0x16d   :  { %v3869_v5 = vmul.f32 %v5951_v0, %v3114_v26  ;;  %v5959_v32 = vmov %v5954_v43  ;;  %v1563_v0 = vstv %s3513_s9  ;;  %5973 = sst [smem:[#allocation73_spill]] %s3924_s2  ;;  %s3941_s2 = sld [smem:[#allocation10 + $0x27]] }
 0x16e   :  { %5948 = vst [vmem:[#allocation167_spill] sm:$0xff] %v3854_v9  ;;  %5953 = sst [smem:[#allocation70_spill]] %s3873_s25  ;;  %v3880_v9 = vmul.f32 %v5954_v43, %v3051_v53  ;;  %v3890_v29 = vmul.f32 %v5959_v32, %v3042_v44  ;;  %v3903_v43 = vmul.f32 %v1397_v59, %v3051_v53  ;;  %v3912_v32 = vmul.f32 %v1557_v21, %v3123_v15  ;;  %s3965_s9 = sld [smem:[#allocation10 + $0x87]] }
 0x16f   :  { %5952 = vst [vmem:[#allocation169_spill] sm:$0xff] %v3869_v5  ;;  %v5962_v5 = vmov %v5956_v6  ;;  %v1409_v6 = vstv %s3515_s10  ;;  %s3926_s10 = sld [smem:[#allocation10 + $0xb6]]  ;;  %s5993_s22 = sld [smem:[#allocation73_spill]] }
 0x170   :  { %5955 = vst [vmem:[#allocation170_spill] sm:$0xff] %v3880_v9  ;;  %5960 = vst [vmem:[#allocation172_spill] sm:$0xff] %v3890_v29  ;;  %v3900_v4 = vmul.f32 %v5962_v5, %v3114_v26  ;;  %v3915_v29 = vmul.f32 %v1397_v59, %v3042_v44  ;;  %v3918_v5 = vmul.f32 %v1557_v21, %v3114_v26  ;;  %5981 = sst [smem:[#allocation182_spill]] %s3939_s16  ;;  %s5986_s16 = sld [smem:[#allocation64_spill]] }
 0x171   :  { %5965 = vst [vmem:[#allocation174_spill] sm:$0xff] %v3903_v43  ;;  %5968 = vst [vmem:[#allocation175_spill] sm:$0xff] %v3912_v32  ;;  %v3921_v43 = vmul.f32 %v1403_v24, %v3051_v53  ;;  %v3929_v9 = vmul.f32 %v1563_v0, %v3123_v15  ;;  %v3932_v59 = vmul.f32 %v1403_v24, %v3042_v44  ;;  %s5995_s11 = sld [smem:[#allocation182_spill]]  ;;  %s5999_s23 = sld [smem:[#allocation80_spill]] }
 0x172   :  { %5963 = vst [vmem:[#allocation173_spill] sm:$0xff] %v3900_v4  ;;  %5967 = sst [smem:[#allocation72_spill]] %s3909_s0  ;;  %5970 = vst [vmem:[#allocation176_spill] sm:$0xff] %v3915_v29  ;;  %v3935_v32 = vmul.f32 %v1563_v0, %v3114_v26  ;;  %v3944_v4 = vmul.f32 %v1409_v6, %v3051_v53  ;;  %v3947_v24 = vmul.f32 %v1569_v14, %v3123_v15  ;;  %s6000_s25 = sld [smem:[#allocation81_spill]] }
 0x173   :  { %5971 = vst [vmem:[#allocation177_spill] sm:$0xff] %v3918_v5  ;;  %5972 = vst [vmem:[#allocation178_spill] sm:$0xff] %v3921_v43  ;;  %5982 = sst [smem:[#allocation183_spill]] %s3941_s2  ;;  %v3956_v5 = vmul.f32 %v1409_v6, %v3042_v44  ;;  %v3959_v21 = vmul.f32 %v1569_v14, %v3114_v26  ;;  %s5989_s2 = sld [smem:[#allocation65_spill]]  ;;  %v6005_v43 = vstv %s5998_s8 }
 0x174   :  { %5976 = vst [vmem:[#allocation179_spill] sm:$0xff] %v3929_v9  ;;  %5977 = vst [vmem:[#allocation180_spill] sm:$0xff] %v3932_v59  ;;  %5990 = sst [smem:[#allocation64_spill]] %s3965_s9  ;;  %s5992_s0 = sld [smem:[#allocation72_spill]]  ;;  %v379_v9 = vpop.permute.xlu0 %378  ;;  %v381_v59 = vpop.permute.xlu1 %380  ;;  %v6009_v53 = vmov %v6005_v43 }
 0x175   :  { %5974 = sst [smem:[#allocation74_spill]] %s3926_s10  ;;  %5978 = vst [vmem:[#allocation181_spill] sm:$0xff] %v3935_v32  ;;  %5983 = vst [vmem:[#allocation184_spill] sm:$0xff] %v3944_v4  ;;  %s5997_s10 = sld [smem:[#allocation77_spill]]  ;;  %v382_v4 = vsel %vm124_vm0, %v379_v9, %v381_v59 }
 0x176   :  { %5984 = vst [vmem:[#allocation185_spill] sm:$0xff] %v3947_v24  ;;  %5987 = vst [vmem:[#allocation186_spill] sm:$0xff] %v3956_v5  ;;  %5991 = sst [smem:[#allocation65_spill]] %s3974_s29  ;;  %s6001_s18 = sld [smem:[#allocation82_spill]]  ;;  %v383_v24 = vsel %vm124_vm0, %v381_v59, %v379_v9  ;;  %v393_v14 = vmul.f32 %v6005_v43, %v382_v4 }
 0x177   :  { %5988 = vst [vmem:[#allocation187_spill] sm:$0xff] %v3959_v21  ;;  %s6002_s17 = sld [smem:[#allocation84_spill]]  ;;  %s6003_s21 = sld [smem:[#allocation85_spill]]  ;;  %v384_v29 = vsel %vm106_vm2, %v383_v24, 0.0  ;;  %v6007_v6 = vstv %s5999_s23 }
 0x178   :  { %s6006_s9 = sld [smem:[#allocation87_spill]]  ;;  %v397_v26 = vmul.f32 %v6007_v6, %v382_v4  ;;  %v392_v9 = vmul.f32 %v6009_v53, %v384_v29  ;;  %v6010_v59 = vmov %v6007_v6  ;;  %v6011_v0 = vstv %s6000_s25  ;;  %v467_v62 = vpop.permute.xlu0 %466  ;;  %v469_v56 = vpop.permute.xlu1 %468  ;;  %s6023_s8 = sld [smem:[#allocation90_spill]] }
 0x179   :  { %v396_v32 = vmul.f32 %v6010_v59, %v384_v29  ;;  %v400_v1 = vmul.f32 %v6011_v0, %v384_v29  ;;  %v6012_v49 = vmov %v6011_v0  ;;  %s6024_s23 = sld [smem:[#allocation91_spill]]  ;;  %s6027_s25 = sld [smem:[#allocation92_spill]] }
 0x17a   :  { %v401_v24 = vmul.f32 %v6012_v49, %v382_v4  ;;  %s6048_s29 = sld [smem:[#allocation24_spill]] }
 0x17b   :  { %v6004_v5 = vstv %s5997_s10  ;;  %s6035_s10 = sld [smem:[#allocation76_spill]] }
 0x17c   :  { %v389_v21 = vmul.f32 %v6004_v5, %v382_v4  ;;  %v6008_v44 = vmov %v6004_v5  ;;  %v6013_v2 = vstv %s6001_s18  ;;  %s6030_s18 = sld [smem:[#allocation93_spill]] }
 0x17d   :  { %v388_v15 = vmul.f32 %v6008_v44, %v384_v29  ;;  %v404_v45 = vmul.f32 %v6013_v2, %v384_v29  ;;  %v6014_v5 = vmov %v6013_v2  ;;  %v6015_v23 = vstv %s6002_s17  ;;  %s6022_s17 = sld [smem:[#allocation89_spill]] }
 0x17e   :  { %v405_v57 = vmul.f32 %v6014_v5, %v382_v4  ;;  %v408_v43 = vmul.f32 %v6015_v23, %v384_v29  ;;  %v6016_v61 = vmov %v6015_v23  ;;  %v6017_v30 = vstv %s6003_s21  ;;  %s6021_s21 = sld [smem:[#allocation88_spill]] }
 0x17f   :  { %v409_v6 = vmul.f32 %v6016_v61, %v382_v4  ;;  %v412_v44 = vmul.f32 %v6017_v30, %v384_v29  ;;  %v6018_v58 = vmov %v6017_v30  ;;  %v6019_v10 = vstv %s6006_s9  ;;  %s6033_s9 = sld [smem:[#allocation75_spill]] }
 0x180   :  { %v413_v53 = vmul.f32 %v6018_v58, %v382_v4  ;;  %v416_v59 = vmul.f32 %v6019_v10, %v384_v29  ;;  %v6020_v16 = vmov %v6019_v10  ;;  %v422_v19 = vadd.f32 %v3239_v22, %v388_v15  ;;  %v523_v58 = vpop.permute.xlu0 %522 }
 0x181   :  { %v417_v0 = vmul.f32 %v6020_v16, %v382_v4  ;;  %v423_v49 = vadd.f32 %v3197_v35, %v389_v21  ;;  %v428_v2 = vadd.f32 %v3244_v28, %v392_v9  ;;  %v429_v5 = vadd.f32 %v3202_v31, %v393_v14 }
 0x182   :  { %v434_v23 = vadd.f32 %v3249_v60, %v396_v32  ;;  %v435_v61 = vadd.f32 %v3207_v25, %v397_v26  ;;  %v440_v30 = vadd.f32 %v3254_v51, %v400_v1  ;;  %v441_v10 = vadd.f32 %v3214_v52, %v401_v24  ;;  %v525_v60 = vpop.permute.xlu1 %524 }
 0x183   :  { %v446_v15 = vadd.f32 %v3259_v18, %v404_v45  ;;  %v447_v22 = vadd.f32 %v3219_v33, %v405_v57  ;;  %v452_v28 = vadd.f32 %v3264_v36, %v408_v43  ;;  %v453_v26 = vadd.f32 %v3224_v34, %v409_v6 }
 0x184   :  { %v458_v31 = vadd.f32 %v3269_v37, %v412_v44  ;;  %v459_v35 = vadd.f32 %v3229_v55, %v413_v53  ;;  %v464_v52 = vadd.f32 %v3278_v38, %v416_v59  ;;  %v465_v45 = vadd.f32 %v3234_v63, %v417_v0 }
 0x185   :  { %v470_v18 = vsel %vm213_vm1, %v467_v62, %v469_v56  ;;  %v471_v33 = vsel %vm213_vm1, %v469_v56, %v467_v62  ;;  %v4067_v25 = vsel %vm124_vm0, %v523_v58, %v525_v60  ;;  %v6025_v51 = vstv %s6021_s21  ;;  %s6040_s21 = sld [smem:[#allocation78_spill]] }
 0x186   :  { %v473_v34 = vsel %vm117_vm3, %v471_v33, 0.0  ;;  %v476_v55 = vmul.f32 %v6025_v51, %v470_v18  ;;  %v6026_v36 = vstv %s6022_s17  ;;  %v6028_v38 = vstv %s6023_s8  ;;  %s6042_s17 = sld [smem:[#allocation94_spill]]  ;;  %s6045_s8 = sld [smem:[#allocation95_spill]] }
 0x187   :  { %v482_v37 = vmul.f32 %v6026_v36, %v470_v18  ;;  %v488_v63 = vmul.f32 %v6028_v38, %v470_v18  ;;  %v6029_v57 = vmov %v6025_v51  ;;  %v6031_v1 = vmov %v6026_v36 }
 0x188   :  { %v477_v16 = vmul.f32 %v6029_v57, %v473_v34  ;;  %v483_v56 = vmul.f32 %v6031_v1, %v473_v34  ;;  %v6032_v62 = vmov %v6028_v38  ;;  %v6034_v29 = vstv %s6024_s23  ;;  %s6047_s23 = sld [smem:[#allocation23_spill]] }
 0x189   :  { %v489_v4 = vmul.f32 %v6032_v62, %v473_v34  ;;  %v494_v32 = vmul.f32 %v6034_v29, %v470_v18  ;;  %v478_v21 = vadd.f32 %v476_v55, %v422_v19  ;;  %v484_v14 = vadd.f32 %v482_v37, %v428_v2 }
 0x18a   :  { %v490_v9 = vadd.f32 %v488_v63, %v434_v23  ;;  %v6036_v24 = vmov %v6034_v29  ;;  %v479_v6 = vadd.f32 %v477_v16, %v423_v49  ;;  %v485_v44 = vadd.f32 %v483_v56, %v429_v5 }
 0x18b   :  { %v495_v43 = vmul.f32 %v6036_v24, %v473_v34  ;;  %v491_v53 = vadd.f32 %v489_v4, %v435_v61  ;;  %v496_v59 = vadd.f32 %v494_v32, %v440_v30  ;;  %v6037_v33 = vstv %s6027_s25  ;;  %s6055_s25 = sld [smem:[#allocation25_spill]] }
 0x18c   :  { %v500_v51 = vmul.f32 %v6037_v33, %v470_v18  ;;  %v6038_v36 = vmov %v6037_v33  ;;  %v6039_v57 = vstv %s6030_s18  ;;  %v6043_v2 = vstv %s6033_s9  ;;  %s6058_s18 = sld [smem:[#allocation26_spill]]  ;;  %s6060_s9 = sld [smem:[#allocation27_spill]] }
 0x18d   :  { %v497_v0 = vadd.f32 %v495_v43, %v441_v10  ;;  %v501_v38 = vmul.f32 %v6038_v36, %v473_v34  ;;  %v506_v1 = vmul.f32 %v6039_v57, %v470_v18  ;;  %v6041_v62 = vmov %v6039_v57 }
 0x18e   :  { %v507_v19 = vmul.f32 %v6041_v62, %v473_v34  ;;  %v512_v23 = vmul.f32 %v6043_v2, %v470_v18  ;;  %v6044_v55 = vmov %v6043_v2  ;;  %v6046_v49 = vstv %s6035_s10  ;;  %s6070_s10 = sld [smem:[#allocation29_spill]] }
 0x18f   :  { %v513_v37 = vmul.f32 %v6044_v55, %v473_v34  ;;  %v518_v5 = vmul.f32 %v6046_v49, %v470_v18  ;;  %v502_v61 = vadd.f32 %v500_v51, %v446_v15  ;;  %v503_v30 = vadd.f32 %v501_v38, %v447_v22 }
 0x190   :  { %v508_v10 = vadd.f32 %v506_v1, %v452_v28  ;;  %v6049_v63 = vmov %v6046_v49  ;;  %v509_v56 = vadd.f32 %v507_v19, %v453_v26  ;;  %v514_v4 = vadd.f32 %v512_v23, %v458_v31 }
 0x191   :  { %v519_v16 = vmul.f32 %v6049_v63, %v473_v34  ;;  %v515_v29 = vadd.f32 %v513_v37, %v459_v35  ;;  %v520_v32 = vadd.f32 %v518_v5, %v464_v52  ;;  %v527_v43 = vsel %vm124_vm0, %v525_v60, %v523_v58 }
 0x192   :  { %v6050_v18 = vstv %s6040_s21  ;;  %v6051_v15 = vstv %s6042_s17  ;;  %v528_v28 = vsel %vm106_vm2, %v527_v43, 0.0  ;;  %v6052_v26 = vstv %s6045_s8  ;;  %s6071_s21 = sld [smem:[#allocation30_spill]]  ;;  %s6072_s17 = sld [smem:[#allocation96_spill]] }
 0x193   :  { %v521_v24 = vadd.f32 %v519_v16, %v465_v45  ;;  %v533_v33 = vmul.f32 %v6050_v18, %v4067_v25  ;;  %v539_v22 = vmul.f32 %v6051_v15, %v4067_v25  ;;  %v545_v31 = vmul.f32 %v6052_v26, %v4067_v25  ;;  %s6073_s8 = sld [smem:[#allocation31_spill]] }
 0x194   :  { %v6053_v35 = vstv %s6047_s23  ;;  %v6054_v45 = vstv %s6048_s29  ;;  %v6056_v60 = vmov %v6050_v18  ;;  %v6057_v36 = vmov %v6051_v15  ;;  %s6069_s29 = sld [smem:[#allocation28_spill]]  ;;  %s6074_s23 = sld [smem:[#allocation32_spill]] }
 0x195   :  { %v551_v52 = vmul.f32 %v6053_v35, %v4067_v25  ;;  %v557_v58 = vmul.f32 %v6054_v45, %v4067_v25  ;;  %v532_v34 = vmul.f32 %v6056_v60, %v528_v28  ;;  %v535_v51 = vadd.f32 %v533_v33, %v479_v6 }
 0x196   :  { %v538_v38 = vmul.f32 %v6057_v36, %v528_v28  ;;  %v541_v57 = vadd.f32 %v539_v22, %v485_v44  ;;  %v6059_v1 = vmov %v6052_v26  ;;  %v547_v19 = vadd.f32 %v545_v31, %v491_v53 }
 0x197   :  { %v544_v62 = vmul.f32 %v6059_v1, %v528_v28  ;;  %v6061_v2 = vmov %v6053_v35  ;;  %v553_v55 = vadd.f32 %v551_v52, %v497_v0  ;;  %v534_v37 = vadd.f32 %v532_v34, %v478_v21 }
 0x198   :  { %v550_v23 = vmul.f32 %v6061_v2, %v528_v28  ;;  %v540_v49 = vadd.f32 %v538_v38, %v484_v14  ;;  %v6062_v5 = vmov %v6054_v45  ;;  %v559_v16 = vadd.f32 %v557_v58, %v503_v30 }
 0x199   :  { %v556_v63 = vmul.f32 %v6062_v5, %v528_v28  ;;  %v546_v43 = vadd.f32 %v544_v62, %v490_v9  ;;  %v6063_v18 = vstv %s6055_s25  ;;  %v6065_v26 = vstv %s6058_s18  ;;  %s6085_s25 = sld [smem:[#allocation33_spill]]  ;;  %s6087_s18 = sld [smem:[#allocation34_spill]] }
 0x19a   :  { %v552_v6 = vadd.f32 %v550_v23, %v496_v59  ;;  %v562_v33 = vmul.f32 %v6063_v18, %v528_v28  ;;  %v6064_v15 = vmov %v6063_v18  ;;  %v568_v35 = vmul.f32 %v6065_v26, %v528_v28 }
 0x19b   :  { %v563_v44 = vmul.f32 %v6064_v15, %v4067_v25  ;;  %v558_v22 = vadd.f32 %v556_v63, %v502_v61  ;;  %v6066_v53 = vmov %v6065_v26  ;;  %v6067_v45 = vstv %s6060_s9  ;;  %s6090_s9 = sld [smem:[#allocation35_spill]] }
 0x19c   :  { %v569_v31 = vmul.f32 %v6066_v53, %v4067_v25  ;;  %v574_v0 = vmul.f32 %v6067_v45, %v528_v28  ;;  %v564_v21 = vadd.f32 %v562_v33, %v508_v10  ;;  %v6068_v52 = vmov %v6067_v45  ;;  %v629_v10 = vpop.permute.xlu1 %628 }
 0x19d   :  { %v565_v14 = vadd.f32 %v563_v44, %v509_v56  ;;  %v575_v30 = vmul.f32 %v6068_v52, %v4067_v25  ;;  %v583_v9 = vadd.f32 %v3311_v41, %v535_v51  ;;  %v570_v59 = vadd.f32 %v568_v35, %v514_v4  ;;  %v627_v56 = vpop.permute.xlu0 %626 }
 0x19e   :  { %v571_v58 = vadd.f32 %v569_v31, %v515_v29  ;;  %v576_v60 = vadd.f32 %v574_v0, %v520_v32  ;;  %v589_v34 = vadd.f32 %v3316_v42, %v541_v57  ;;  %v595_v36 = vadd.f32 %v3321_v17, %v547_v19 }
 0x19f   :  { %v577_v61 = vadd.f32 %v575_v30, %v521_v24  ;;  %v601_v38 = vadd.f32 %v3326_v48, %v553_v55  ;;  %v607_v1 = vadd.f32 %v3331_v46, %v559_v16  ;;  %v613_v25 = vadd.f32 %v3336_v13, %v565_v14 }
 0x1a0   :  { %v619_v41 = vadd.f32 %v3341_v27, %v571_v58  ;;  %v582_v4 = vadd.f32 %v3351_v39, %v534_v37  ;;  %v588_v42 = vadd.f32 %v3356_v12, %v540_v49  ;;  %v594_v48 = vadd.f32 %v3361_v11, %v546_v43  ;;  %v6075_v39 = vld [vmem:[#allocation97_spill] sm:$0xff]  ;;  %v685_v45 = vpop.permute.xlu1 %684 }
 0x1a1   :  { %v625_v17 = vadd.f32 %v3346_v40, %v577_v61  ;;  %v600_v46 = vadd.f32 %v3366_v47, %v552_v6  ;;  %v606_v29 = vadd.f32 %v3371_v20, %v558_v22  ;;  %v612_v13 = vadd.f32 %v3376_v50, %v564_v21  ;;  %v683_v0 = vpop.permute.xlu0 %682 }
 0x1a2   :  { %v618_v27 = vadd.f32 %v3381_v54, %v570_v59  ;;  %v624_v32 = vadd.f32 %v6075_v39, %v576_v60  ;;  %v630_v12 = vsel %vm213_vm1, %v627_v56, %v629_v10  ;;  %v631_v40 = vsel %vm213_vm1, %v629_v10, %v627_v56 }
 0x1a3   :  { %v6076_v11 = vstv %s6069_s29  ;;  %v6077_v47 = vstv %s6070_s10  ;;  %v6078_v51 = vstv %s6071_s21  ;;  %v633_v50 = vsel %vm117_vm3, %v631_v40, 0.0  ;;  %s6091_s29 = sld [smem:[#allocation36_spill]]  ;;  %s6094_s10 = sld [smem:[#allocation37_spill]] }
 0x1a4   :  { %v636_v24 = vmul.f32 %v6076_v11, %v630_v12  ;;  %v642_v28 = vmul.f32 %v6077_v47, %v630_v12  ;;  %v648_v20 = vmul.f32 %v6078_v51, %v630_v12  ;;  %v6079_v54 = vstv %s6072_s17  ;;  %s6096_s21 = sld [smem:[#allocation38_spill]]  ;;  %s6102_s17 = sld [smem:[#allocation39_spill]] }
 0x1a5   :  { %v654_v57 = vmul.f32 %v6079_v54, %v630_v12  ;;  %v6080_v62 = vstv %s6073_s8  ;;  %v6081_v2 = vstv %s6074_s23  ;;  %v6082_v55 = vmov %v6076_v11  ;;  %s6105_s8 = sld [smem:[#allocation40_spill]]  ;;  %s6107_s23 = sld [smem:[#allocation41_spill]] }
 0x1a6   :  { %v660_v19 = vmul.f32 %v6080_v62, %v630_v12  ;;  %v666_v23 = vmul.f32 %v6081_v2, %v630_v12  ;;  %v637_v37 = vmul.f32 %v6082_v55, %v633_v50  ;;  %v638_v49 = vadd.f32 %v636_v24, %v582_v4 }
 0x1a7   :  { %v6083_v5 = vmov %v6077_v47  ;;  %v644_v16 = vadd.f32 %v642_v28, %v588_v42  ;;  %v6084_v43 = vmov %v6078_v51  ;;  %v650_v18 = vadd.f32 %v648_v20, %v594_v48 }
 0x1a8   :  { %v643_v63 = vmul.f32 %v6083_v5, %v633_v50  ;;  %v649_v6 = vmul.f32 %v6084_v43, %v633_v50  ;;  %v6086_v33 = vmov %v6079_v54  ;;  %v656_v44 = vadd.f32 %v654_v57, %v600_v46  ;;  %v787_v43 = vpop.permute.xlu0 %786 }
 0x1a9   :  { %v655_v15 = vmul.f32 %v6086_v33, %v633_v50  ;;  %v639_v22 = vadd.f32 %v637_v37, %v583_v9  ;;  %v6088_v35 = vmov %v6080_v62  ;;  %v662_v31 = vadd.f32 %v660_v19, %v606_v29 }
 0x1aa   :  { %v645_v26 = vadd.f32 %v643_v63, %v589_v34  ;;  %v661_v53 = vmul.f32 %v6088_v35, %v633_v50  ;;  %v651_v21 = vadd.f32 %v649_v6, %v595_v36  ;;  %v6089_v52 = vmov %v6081_v2  ;;  %v789_v63 = vpop.permute.xlu1 %788 }
 0x1ab   :  { %v657_v14 = vadd.f32 %v655_v15, %v601_v38  ;;  %v667_v30 = vmul.f32 %v6089_v52, %v633_v50  ;;  %v668_v59 = vadd.f32 %v666_v23, %v612_v13  ;;  %v6092_v60 = vstv %s6085_s25  ;;  %s6108_s25 = sld [smem:[#allocation42_spill]] }
 0x1ac   :  { %v663_v58 = vadd.f32 %v661_v53, %v607_v1  ;;  %v672_v61 = vmul.f32 %v6092_v60, %v630_v12  ;;  %v6093_v10 = vmov %v6092_v60  ;;  %v6095_v34 = vstv %s6087_s18  ;;  %s6125_s18 = sld [smem:[#allocation44_spill]] }
 0x1ad   :  { %v673_v9 = vmul.f32 %v6093_v10, %v633_v50  ;;  %v678_v56 = vmul.f32 %v6095_v34, %v630_v12  ;;  %v669_v4 = vadd.f32 %v667_v30, %v613_v25  ;;  %v6097_v36 = vmov %v6095_v34 }
 0x1ae   :  { %v679_v38 = vmul.f32 %v6097_v36, %v633_v50  ;;  %v686_v42 = vsel %vm124_vm0, %v683_v0, %v685_v45  ;;  %v687_v48 = vsel %vm124_vm0, %v685_v45, %v683_v0  ;;  %v674_v1 = vadd.f32 %v672_v61, %v618_v27 }
 0x1af   :  { %v675_v46 = vadd.f32 %v673_v9, %v619_v41  ;;  %v680_v29 = vadd.f32 %v678_v56, %v624_v32  ;;  %v688_v13 = vsel %vm106_vm2, %v687_v48, 0.0  ;;  %v6098_v40 = vstv %s6090_s9  ;;  %v6118_v48 = vld [vmem:[#allocation98_spill] sm:$0xff]  ;;  %s6126_s9 = sld [smem:[#allocation46_spill]] }
 0x1b0   :  { %v681_v39 = vadd.f32 %v679_v38, %v625_v17  ;;  %v692_v12 = vmul.f32 %v6098_v40, %v688_v13  ;;  %v6099_v11 = vmov %v6098_v40  ;;  %v6100_v24 = vstv %s6091_s29  ;;  %s6128_s29 = sld [smem:[#allocation47_spill]] }
 0x1b1   :  { %v693_v25 = vmul.f32 %v6099_v11, %v686_v42  ;;  %v698_v47 = vmul.f32 %v6100_v24, %v688_v13  ;;  %v6101_v28 = vmov %v6100_v24  ;;  %v6103_v20 = vstv %s6094_s10  ;;  %s6133_s10 = sld [smem:[#allocation48_spill]] }
 0x1b2   :  { %v699_v51 = vmul.f32 %v6101_v28, %v686_v42  ;;  %v704_v50 = vmul.f32 %v6103_v20, %v688_v13  ;;  %v6104_v54 = vmov %v6103_v20  ;;  %v6106_v27 = vstv %s6096_s21  ;;  %s6140_s21 = sld [smem:[#allocation49_spill]] }
 0x1b3   :  { %v705_v41 = vmul.f32 %v6104_v54, %v686_v42  ;;  %v710_v32 = vmul.f32 %v6106_v27, %v688_v13  ;;  %v694_v17 = vadd.f32 %v692_v12, %v638_v49  ;;  %v695_v57 = vadd.f32 %v693_v25, %v639_v22  ;;  %v6119_v12 = vld [vmem:[#allocation99_spill] sm:$0xff]  ;;  %v6120_v25 = vld [vmem:[#allocation100_spill] sm:$0xff] }
 0x1b4   :  { %v700_v62 = vadd.f32 %v698_v47, %v644_v16  ;;  %v6109_v19 = vmov %v6106_v27  ;;  %v701_v23 = vadd.f32 %v699_v51, %v645_v26  ;;  %v706_v55 = vadd.f32 %v704_v50, %v650_v18  ;;  %v6121_v47 = vld [vmem:[#allocation101_spill] sm:$0xff]  ;;  %v6122_v51 = vld [vmem:[#allocation102_spill] sm:$0xff]  ;;  %v6130_v50 = vld [vmem:[#allocation107_spill] sm:$0xff] }
 0x1b5   :  { %v711_v2 = vmul.f32 %v6109_v19, %v686_v42  ;;  %v707_v37 = vadd.f32 %v705_v41, %v651_v21  ;;  %v712_v5 = vadd.f32 %v710_v32, %v656_v44  ;;  %v6110_v33 = vstv %s6102_s17  ;;  %v6131_v41 = vld [vmem:[#allocation108_spill] sm:$0xff]  ;;  %v6132_v32 = vld [vmem:[#allocation109_spill] sm:$0xff]  ;;  %v6134_v19 = vld [vmem:[#allocation110_spill] sm:$0xff]  ;;  %s6143_s17 = sld [smem:[#allocation50_spill]] }
 0x1b6   :  { %v716_v15 = vmul.f32 %v6110_v33, %v688_v13  ;;  %v6111_v35 = vmov %v6110_v33  ;;  %v6112_v45 = vstv %s6105_s8  ;;  %v6114_v52 = vstv %s6107_s23  ;;  %s6146_s8 = sld [smem:[#allocation51_spill]]  ;;  %s6148_s23 = sld [smem:[#allocation52_spill]] }
 0x1b7   :  { %v713_v6 = vadd.f32 %v711_v2, %v657_v14  ;;  %v717_v53 = vmul.f32 %v6111_v35, %v686_v42  ;;  %v722_v49 = vmul.f32 %v6112_v45, %v688_v13  ;;  %v6113_v0 = vmov %v6112_v45 }
 0x1b8   :  { %v723_v22 = vmul.f32 %v6113_v0, %v686_v42  ;;  %v728_v16 = vmul.f32 %v6114_v52, %v688_v13  ;;  %v6115_v30 = vmov %v6114_v52  ;;  %v6116_v26 = vstv %s6108_s25  ;;  %s6153_s25 = sld [smem:[#allocation54_spill]] }
 0x1b9   :  { %v729_v60 = vmul.f32 %v6115_v30, %v686_v42  ;;  %v734_v18 = vmul.f32 %v6116_v26, %v688_v13  ;;  %v718_v61 = vadd.f32 %v716_v15, %v662_v31  ;;  %v719_v21 = vadd.f32 %v717_v53, %v663_v58  ;;  %v6123_v31 = vld [vmem:[#allocation103_spill] sm:$0xff]  ;;  %v6137_v15 = vld [vmem:[#allocation113_spill] sm:$0xff] }
 0x1ba   :  { %v724_v44 = vadd.f32 %v722_v49, %v668_v59  ;;  %v6117_v10 = vmov %v6116_v26  ;;  %v725_v14 = vadd.f32 %v723_v22, %v669_v4  ;;  %v730_v34 = vadd.f32 %v728_v16, %v674_v1  ;;  %v6124_v59 = vld [vmem:[#allocation104_spill] sm:$0xff]  ;;  %v845_v4 = vpop.permute.xlu1 %844  ;;  %v6127_v1 = vld [vmem:[#allocation105_spill] sm:$0xff] }
 0x1bb   :  { %v735_v9 = vmul.f32 %v6117_v10, %v686_v42  ;;  %v731_v56 = vadd.f32 %v729_v60, %v675_v46  ;;  %v736_v36 = vadd.f32 %v734_v18, %v680_v29  ;;  %v743_v40 = vadd.f32 %v6118_v48, %v695_v57  ;;  %v843_v42 = vpop.permute.xlu0 %842  ;;  %v6129_v29 = vld [vmem:[#allocation106_spill] sm:$0xff] }
 0x1bc   :  { %v749_v11 = vadd.f32 %v6119_v12, %v701_v23  ;;  %v755_v24 = vadd.f32 %v6120_v25, %v707_v37  ;;  %v761_v28 = vadd.f32 %v6121_v47, %v713_v6  ;;  %v767_v13 = vadd.f32 %v6122_v51, %v719_v21  ;;  %v6135_v23 = vld [vmem:[#allocation111_spill] sm:$0xff]  ;;  %v6136_v6 = vld [vmem:[#allocation112_spill] sm:$0xff] }
 0x1bd   :  { %v737_v38 = vadd.f32 %v735_v9, %v681_v39  ;;  %v773_v58 = vadd.f32 %v6123_v31, %v725_v14  ;;  %v779_v20 = vadd.f32 %v6124_v59, %v731_v56  ;;  %v742_v39 = vadd.f32 %v6129_v29, %v694_v17 }
 0x1be   :  { %v748_v54 = vadd.f32 %v6130_v50, %v700_v62  ;;  %v754_v27 = vadd.f32 %v6131_v41, %v706_v55  ;;  %v760_v57 = vadd.f32 %v6132_v32, %v712_v5  ;;  %v766_v2 = vadd.f32 %v6134_v19, %v718_v61 }
 0x1bf   :  { %v785_v46 = vadd.f32 %v6127_v1, %v737_v38  ;;  %v772_v37 = vadd.f32 %v6135_v23, %v724_v44  ;;  %v778_v33 = vadd.f32 %v6136_v6, %v730_v34  ;;  %v784_v35 = vadd.f32 %v6137_v15, %v736_v36 }
 0x1c0   :  { %v790_v17 = vsel %vm213_vm1, %v787_v43, %v789_v63  ;;  %v791_v62 = vsel %vm213_vm1, %v789_v63, %v787_v43  ;;  %v4261_v55 = vsel %vm124_vm0, %v843_v42, %v845_v4  ;;  %v6138_v53 = vstv %s6125_s18  ;;  %s6155_s18 = sld [smem:[#allocation55_spill]] }
 0x1c1   :  { %v793_v5 = vsel %vm117_vm3, %v791_v62, 0.0  ;;  %v796_v45 = vmul.f32 %v6138_v53, %v790_v17  ;;  %v6139_v49 = vstv %s6126_s9  ;;  %v6141_v22 = vstv %s6128_s29  ;;  %s6158_s9 = sld [smem:[#allocation56_spill]]  ;;  %s6160_s29 = sld [smem:[#allocation57_spill]] }
 0x1c2   :  { %v802_v0 = vmul.f32 %v6139_v49, %v790_v17  ;;  %v808_v52 = vmul.f32 %v6141_v22, %v790_v17  ;;  %v6142_v16 = vmov %v6138_v53  ;;  %v6144_v60 = vmov %v6139_v49 }
 0x1c3   :  { %v797_v30 = vmul.f32 %v6142_v16, %v793_v5  ;;  %v803_v63 = vmul.f32 %v6144_v60, %v793_v5  ;;  %v6145_v43 = vmov %v6141_v22  ;;  %v6147_v18 = vstv %s6133_s10  ;;  %s6161_s10 = sld [smem:[#allocation58_spill]] }
 0x1c4   :  { %v809_v26 = vmul.f32 %v6145_v43, %v793_v5  ;;  %v814_v61 = vmul.f32 %v6147_v18, %v790_v17  ;;  %v798_v21 = vadd.f32 %v796_v45, %v742_v39  ;;  %v804_v44 = vadd.f32 %v802_v0, %v748_v54 }
 0x1c5   :  { %v810_v10 = vadd.f32 %v808_v52, %v754_v27  ;;  %v6149_v9 = vmov %v6147_v18  ;;  %v799_v34 = vadd.f32 %v797_v30, %v743_v40  ;;  %v805_v56 = vadd.f32 %v803_v63, %v749_v11 }
 0x1c6   :  { %v815_v14 = vmul.f32 %v6149_v9, %v793_v5  ;;  %v811_v36 = vadd.f32 %v809_v26, %v755_v24  ;;  %v816_v38 = vadd.f32 %v814_v61, %v760_v57  ;;  %v6150_v12 = vstv %s6140_s21  ;;  %s6168_s21 = sld [smem:[#allocation59_spill]] }
 0x1c7   :  { %v820_v25 = vmul.f32 %v6150_v12, %v790_v17  ;;  %v6151_v47 = vmov %v6150_v12  ;;  %v6152_v31 = vstv %s6143_s17  ;;  %v6156_v39 = vstv %s6146_s8  ;;  %s6171_s17 = sld [smem:[#allocation60_spill]]  ;;  %s6173_s8 = sld [smem:[#allocation61_spill]] }
 0x1c8   :  { %v817_v48 = vadd.f32 %v815_v14, %v761_v28  ;;  %v821_v51 = vmul.f32 %v6151_v47, %v793_v5  ;;  %v826_v59 = vmul.f32 %v6152_v31, %v790_v17  ;;  %v6154_v1 = vmov %v6152_v31 }
 0x1c9   :  { %v827_v29 = vmul.f32 %v6154_v1, %v793_v5  ;;  %v832_v50 = vmul.f32 %v6156_v39, %v790_v17  ;;  %v6157_v54 = vmov %v6156_v39  ;;  %v6159_v40 = vstv %s6148_s23  ;;  %s6187_s23 = sld [smem:[#allocation62_spill]] }
 0x1ca   :  { %v833_v41 = vmul.f32 %v6157_v54, %v793_v5  ;;  %v838_v11 = vmul.f32 %v6159_v40, %v790_v17  ;;  %v822_v24 = vadd.f32 %v820_v25, %v766_v2  ;;  %v823_v28 = vadd.f32 %v821_v51, %v767_v13 }
 0x1cb   :  { %v828_v27 = vadd.f32 %v826_v59, %v772_v37  ;;  %v6162_v32 = vmov %v6159_v40  ;;  %v829_v19 = vadd.f32 %v827_v29, %v773_v58  ;;  %v834_v23 = vadd.f32 %v832_v50, %v778_v33 }
 0x1cc   :  { %v839_v57 = vmul.f32 %v6162_v32, %v793_v5  ;;  %v835_v6 = vadd.f32 %v833_v41, %v779_v20  ;;  %v840_v15 = vadd.f32 %v838_v11, %v784_v35  ;;  %v847_v53 = vsel %vm124_vm0, %v845_v4, %v843_v42  ;;  %v6183_v32 = vld [vmem:[#allocation115_spill] sm:$0xff] }
 0x1cd   :  { %v6163_v17 = vstv %s6153_s25  ;;  %v6164_v2 = vstv %s6155_s18  ;;  %v848_v37 = vsel %vm106_vm2, %v847_v53, 0.0  ;;  %v6165_v58 = vstv %s6158_s9  ;;  %v6184_v53 = vld [vmem:[#allocation116_spill] sm:$0xff]  ;;  %s6188_s25 = sld [smem:[#allocation63_spill]]  ;;  %s4590_s18 = sld [smem:[#allocation10 + $0x5a]] }
 0x1ce   :  { %v841_v62 = vadd.f32 %v839_v57, %v785_v46  ;;  %v853_v45 = vmul.f32 %v6163_v17, %v4261_v55  ;;  %v859_v13 = vmul.f32 %v6164_v2, %v4261_v55  ;;  %v865_v33 = vmul.f32 %v6165_v58, %v4261_v55  ;;  %s4592_s9 = sld [smem:[#allocation10 + $0x72]] }
 0x1cf   :  { %v6166_v20 = vstv %s6160_s29  ;;  %v6167_v46 = vstv %s6161_s10  ;;  %v6169_v42 = vmov %v6163_v17  ;;  %v6170_v0 = vmov %v6164_v2  ;;  %s6302_s29 = sld [smem:[#allocation53_spill]]  ;;  %s4604_s10 = sld [smem:[#allocation10 + $0x8a]] }
 0x1d0   :  { %v871_v35 = vmul.f32 %v6166_v20, %v4261_v55  ;;  %v877_v4 = vmul.f32 %v6167_v46, %v4261_v55  ;;  %v852_v5 = vmul.f32 %v6169_v42, %v848_v37  ;;  %v855_v49 = vadd.f32 %v853_v45, %v799_v34  ;;  %v6185_v45 = vld [vmem:[#allocation117_spill] sm:$0xff] }
 0x1d1   :  { %v858_v22 = vmul.f32 %v6170_v0, %v848_v37  ;;  %v861_v52 = vadd.f32 %v859_v13, %v805_v56  ;;  %v6172_v16 = vmov %v6165_v58  ;;  %v867_v60 = vadd.f32 %v865_v33, %v811_v36  ;;  %v6186_v13 = vld [vmem:[#allocation118_spill] sm:$0xff]  ;;  %v6190_v33 = vld [vmem:[#allocation120_spill] sm:$0xff] }
 0x1d2   :  { %v864_v30 = vmul.f32 %v6172_v16, %v848_v37  ;;  %v6174_v63 = vmov %v6166_v20  ;;  %v873_v26 = vadd.f32 %v871_v35, %v817_v48  ;;  %v854_v18 = vadd.f32 %v852_v5, %v798_v21  ;;  %v6192_v20 = vld [vmem:[#allocation123_spill] sm:$0xff]  ;;  %v6193_v35 = vld [vmem:[#allocation121_spill] sm:$0xff]  ;;  %v6196_v0 = vld [vmem:[#allocation126_spill] sm:$0xff] }
 0x1d3   :  { %v870_v43 = vmul.f32 %v6174_v63, %v848_v37  ;;  %v860_v61 = vadd.f32 %v858_v22, %v804_v44  ;;  %v6175_v9 = vmov %v6167_v46  ;;  %v879_v12 = vadd.f32 %v877_v4, %v823_v28  ;;  %v6194_v4 = vld [vmem:[#allocation124_spill] sm:$0xff]  ;;  %v6195_v5 = vld [vmem:[#allocation125_spill] sm:$0xff] }
 0x1d4   :  { %v876_v14 = vmul.f32 %v6175_v9, %v848_v37  ;;  %v866_v25 = vadd.f32 %v864_v30, %v810_v10  ;;  %v6176_v47 = vstv %s6168_s21  ;;  %v6178_v1 = vstv %s6171_s17  ;;  %v6182_v10 = vld [vmem:[#allocation114_spill] sm:$0xff]  ;;  %v6198_v30 = vld [vmem:[#allocation128_spill] sm:$0xff]  ;;  %v6199_v63 = vld [vmem:[#allocation129_spill] sm:$0xff]  ;;  %s4615_s21 = sld [smem:[#allocation10 + $0xa2]] }
 0x1d5   :  { %v872_v34 = vadd.f32 %v870_v43, %v816_v38  ;;  %v882_v51 = vmul.f32 %v6176_v47, %v848_v37  ;;  %v6177_v31 = vmov %v6176_v47  ;;  %v888_v29 = vmul.f32 %v6178_v1, %v848_v37  ;;  %s4617_s17 = sld [smem:[#allocation10 + $0xba]] }
 0x1d6   :  { %v883_v56 = vmul.f32 %v6177_v31, %v4261_v55  ;;  %v878_v59 = vadd.f32 %v876_v14, %v822_v24  ;;  %v6179_v36 = vmov %v6178_v1  ;;  %v6180_v50 = vstv %s6173_s8  ;;  %s4679_s8 = sld [smem:[#allocation10 + $0x14]] }
 0x1d7   :  { %v889_v39 = vmul.f32 %v6179_v36, %v4261_v55  ;;  %v894_v48 = vmul.f32 %v6180_v50, %v848_v37  ;;  %v884_v21 = vadd.f32 %v882_v51, %v828_v27  ;;  %v6181_v54 = vmov %v6180_v50  ;;  %v949_v27 = vpop.permute.xlu1 %948  ;;  %v6189_v37 = vld [vmem:[#allocation119_spill] sm:$0xff] }
 0x1d8   :  { %v885_v44 = vadd.f32 %v883_v56, %v829_v19  ;;  %v895_v41 = vmul.f32 %v6181_v54, %v4261_v55  ;;  %v903_v38 = vadd.f32 %v6182_v10, %v855_v49  ;;  %v890_v40 = vadd.f32 %v888_v29, %v834_v23  ;;  %v947_v19 = vpop.permute.xlu0 %946 }
 0x1d9   :  { %v891_v11 = vadd.f32 %v889_v39, %v835_v6  ;;  %v896_v28 = vadd.f32 %v894_v48, %v840_v15  ;;  %v909_v57 = vadd.f32 %v6183_v32, %v861_v52  ;;  %v915_v17 = vadd.f32 %v6184_v53, %v867_v60  ;;  %v6191_v6 = vld [vmem:[#allocation122_spill] sm:$0xff]  ;;  %v6197_v52 = vld [vmem:[#allocation127_spill] sm:$0xff] }
 0x1da   :  { %v897_v24 = vadd.f32 %v895_v41, %v841_v62  ;;  %v921_v2 = vadd.f32 %v6185_v45, %v873_v26  ;;  %v927_v58 = vadd.f32 %v6186_v13, %v879_v12  ;;  %v933_v55 = vadd.f32 %v6189_v37, %v885_v44 }
 0x1db   :  { %v939_v23 = vadd.f32 %v6190_v33, %v891_v11  ;;  %v902_v15 = vadd.f32 %v6191_v6, %v854_v18  ;;  %v908_v62 = vadd.f32 %v6192_v20, %v860_v61  ;;  %v914_v42 = vadd.f32 %v6194_v4, %v866_v25 }
 0x1dc   :  { %v945_v46 = vadd.f32 %v6193_v35, %v897_v24  ;;  %v920_v49 = vadd.f32 %v6195_v5, %v872_v34  ;;  %v926_v22 = vadd.f32 %v6196_v0, %v878_v59  ;;  %v932_v16 = vadd.f32 %v6197_v52, %v884_v21 }
 0x1dd   :  { %v938_v60 = vadd.f32 %v6198_v30, %v890_v40  ;;  %v944_v43 = vadd.f32 %v6199_v63, %v896_v28  ;;  %v950_v26 = vsel %vm213_vm1, %v947_v19, %v949_v27  ;;  %v951_v18 = vsel %vm213_vm1, %v949_v27, %v947_v19  ;;  %v1005_v27 = vpop.permute.xlu1 %1004  ;;  %v1003_v19 = vpop.permute.xlu0 %1002 }
 0x1de   :  { %v6200_v61 = vstv %s6187_s23  ;;  %v6201_v14 = vstv %s6188_s25  ;;  %v6202_v25 = vstv %s3739_s1  ;;  %v953_v47 = vsel %vm117_vm3, %v951_v18, 0.0  ;;  %s6214_s1 = sld [smem:[#allocation67_spill]]  ;;  %s4688_s23 = sld [smem:[#allocation10 + $0x15]] }
 0x1df   :  { %v956_v9 = vmul.f32 %v6200_v61, %v950_v26  ;;  %v962_v12 = vmul.f32 %v6201_v14, %v950_v26  ;;  %v968_v34 = vmul.f32 %v6202_v25, %v950_v26  ;;  %v6203_v51 = vstv %s5986_s16  ;;  %s4550_s16 = sld [smem:[#allocation10 + $0x71]]  ;;  %s4698_s25 = sld [smem:[#allocation10 + $0x17]] }
 0x1e0   :  { %v974_v31 = vmul.f32 %v6203_v51, %v950_v26  ;;  %v6204_v56 = vstv %s3755_s30  ;;  %v6205_v1 = vstv %s3757_s6  ;;  %v6206_v36 = vmov %v6200_v61  ;;  %s6241_s30 = sld [smem:[#allocation70_spill]]  ;;  %s6247_s6 = sld [smem:[#allocation71_spill]] }
 0x1e1   :  { %v980_v59 = vmul.f32 %v6204_v56, %v950_v26  ;;  %v986_v29 = vmul.f32 %v6205_v1, %v950_v26  ;;  %v957_v39 = vmul.f32 %v6206_v36, %v953_v47  ;;  %v958_v50 = vadd.f32 %v956_v9, %v902_v15 }
 0x1e2   :  { %v6207_v48 = vmov %v6201_v14  ;;  %v964_v44 = vadd.f32 %v962_v12, %v908_v62  ;;  %v6208_v54 = vmov %v6202_v25  ;;  %v970_v10 = vadd.f32 %v968_v34, %v914_v42 }
 0x1e3   :  { %v963_v21 = vmul.f32 %v6207_v48, %v953_v47  ;;  %v969_v41 = vmul.f32 %v6208_v54, %v953_v47  ;;  %v6209_v40 = vmov %v6203_v51  ;;  %v976_v28 = vadd.f32 %v974_v31, %v920_v49  ;;  %v1107_v54 = vpop.permute.xlu0 %1106 }
 0x1e4   :  { %v975_v11 = vmul.f32 %v6209_v40, %v953_v47  ;;  %v959_v32 = vadd.f32 %v957_v39, %v903_v38  ;;  %v6210_v53 = vmov %v6204_v56  ;;  %v982_v13 = vadd.f32 %v980_v59, %v926_v22 }
 0x1e5   :  { %v965_v24 = vadd.f32 %v963_v21, %v909_v57  ;;  %v981_v45 = vmul.f32 %v6210_v53, %v953_v47  ;;  %v971_v37 = vadd.f32 %v969_v41, %v915_v17  ;;  %v6211_v6 = vmov %v6205_v1  ;;  %v1109_v21 = vpop.permute.xlu1 %1108 }
 0x1e6   :  { %v977_v33 = vadd.f32 %v975_v11, %v921_v2  ;;  %v987_v15 = vmul.f32 %v6211_v6, %v953_v47  ;;  %v988_v20 = vadd.f32 %v986_v29, %v932_v16  ;;  %v6212_v35 = vstv %s5989_s2  ;;  %s4580_s2 = sld [smem:[#allocation10 + $0x42]] }
 0x1e7   :  { %v983_v62 = vadd.f32 %v981_v45, %v927_v58  ;;  %v992_v4 = vmul.f32 %v6212_v35, %v950_v26  ;;  %v6213_v42 = vmov %v6212_v35  ;;  %v6215_v57 = vstv %s3772_s27  ;;  %s6221_s27 = sld [smem:[#allocation68_spill]] }
 0x1e8   :  { %v993_v38 = vmul.f32 %v6213_v42, %v953_v47  ;;  %v998_v5 = vmul.f32 %v6215_v57, %v950_v26  ;;  %v989_v49 = vadd.f32 %v987_v15, %v933_v55  ;;  %v6216_v17 = vmov %v6215_v57 }
 0x1e9   :  { %v999_v2 = vmul.f32 %v6216_v17, %v953_v47  ;;  %v1006_v0 = vsel %vm124_vm0, %v1003_v19, %v1005_v27  ;;  %v1007_v22 = vsel %vm124_vm0, %v1005_v27, %v1003_v19  ;;  %v994_v58 = vadd.f32 %v992_v4, %v938_v60 }
 0x1ea   :  { %v995_v52 = vadd.f32 %v993_v38, %v939_v23  ;;  %v1000_v16 = vadd.f32 %v998_v5, %v944_v43  ;;  %v1008_v30 = vsel %vm106_vm2, %v1007_v22, 0.0  ;;  %v6217_v18 = vstv %s3789_s5  ;;  %v6234_v22 = vld [vmem:[#allocation130_spill] sm:$0xff]  ;;  %s6267_s5 = sld [smem:[#allocation183_spill]] }
 0x1eb   :  { %v1001_v63 = vadd.f32 %v999_v2, %v945_v46  ;;  %v1012_v26 = vmul.f32 %v6217_v18, %v1008_v30  ;;  %v6218_v61 = vmov %v6217_v18  ;;  %v6219_v9 = vstv %s3791_s4  ;;  %s6259_s4 = sld [smem:[#allocation74_spill]] }
 0x1ec   :  { %v1013_v55 = vmul.f32 %v6218_v61, %v1006_v0  ;;  %v1018_v14 = vmul.f32 %v6219_v9, %v1008_v30  ;;  %v6220_v12 = vmov %v6219_v9  ;;  %v6222_v34 = vstv %s6214_s1  ;;  %s4711_s1 = sld [smem:[#allocation11]] }
 0x1ed   :  { %v1019_v25 = vmul.f32 %v6220_v12, %v1006_v0  ;;  %v1024_v47 = vmul.f32 %v6222_v34, %v1008_v30  ;;  %v6223_v51 = vmov %v6222_v34  ;;  %v6224_v60 = vstv %s3815_s3  ;;  %s6277_s3 = sld [smem:[#allocation64_spill]] }
 0x1ee   :  { %v1025_v23 = vmul.f32 %v6223_v51, %v1006_v0  ;;  %v1030_v43 = vmul.f32 %v6224_v60, %v1008_v30  ;;  %v1014_v46 = vadd.f32 %v1012_v26, %v958_v50  ;;  %v1015_v31 = vadd.f32 %v1013_v55, %v959_v32  ;;  %v6235_v26 = vld [vmem:[#allocation131_spill] sm:$0xff]  ;;  %v6236_v55 = vld [vmem:[#allocation132_spill] sm:$0xff] }
 0x1ef   :  { %v1020_v56 = vadd.f32 %v1018_v14, %v964_v44  ;;  %v6225_v59 = vmov %v6224_v60  ;;  %v1021_v29 = vadd.f32 %v1019_v25, %v965_v24  ;;  %v1026_v36 = vadd.f32 %v1024_v47, %v970_v10  ;;  %v6237_v14 = vld [vmem:[#allocation133_spill] sm:$0xff]  ;;  %v6238_v25 = vld [vmem:[#allocation134_spill] sm:$0xff]  ;;  %v6244_v47 = vld [vmem:[#allocation139_spill] sm:$0xff] }
 0x1f0   :  { %v1031_v1 = vmul.f32 %v6225_v59, %v1006_v0  ;;  %v1027_v39 = vadd.f32 %v1025_v23, %v971_v37  ;;  %v1032_v48 = vadd.f32 %v1030_v43, %v976_v28  ;;  %v6226_v40 = vstv %s6221_s27  ;;  %v6245_v23 = vld [vmem:[#allocation140_spill] sm:$0xff]  ;;  %v6246_v43 = vld [vmem:[#allocation141_spill] sm:$0xff]  ;;  %v6248_v59 = vld [vmem:[#allocation142_spill] sm:$0xff]  ;;  %s4719_s27 = sld [smem:[#allocation10 + $0x2c]] }
 0x1f1   :  { %v1036_v11 = vmul.f32 %v6226_v40, %v1008_v30  ;;  %v6227_v53 = vmov %v6226_v40  ;;  %v6228_v27 = vstv %s3839_s13  ;;  %v6230_v6 = vstv %s3857_s26  ;;  %s6281_s13 = sld [smem:[#allocation65_spill]]  ;;  %s4530_s26 = sld [smem:[#allocation10 + $0xbe]] }
 0x1f2   :  { %v1033_v41 = vadd.f32 %v1031_v1, %v977_v33  ;;  %v1037_v45 = vmul.f32 %v6227_v53, %v1006_v0  ;;  %v1042_v50 = vmul.f32 %v6228_v27, %v1008_v30  ;;  %v6229_v19 = vmov %v6228_v27 }
 0x1f3   :  { %v1043_v32 = vmul.f32 %v6229_v19, %v1006_v0  ;;  %v1048_v44 = vmul.f32 %v6230_v6, %v1008_v30  ;;  %v6231_v15 = vmov %v6230_v6  ;;  %v6232_v24 = vstv %s3859_s19  ;;  %s4539_s19 = sld [smem:[#allocation10 + $0x41]] }
 0x1f4   :  { %v1049_v35 = vmul.f32 %v6231_v15, %v1006_v0  ;;  %v1054_v10 = vmul.f32 %v6232_v24, %v1008_v30  ;;  %v1038_v4 = vadd.f32 %v1036_v11, %v982_v13  ;;  %v1039_v37 = vadd.f32 %v1037_v45, %v983_v62  ;;  %v6239_v13 = vld [vmem:[#allocation135_spill] sm:$0xff]  ;;  %v6251_v11 = vld [vmem:[#allocation145_spill] sm:$0xff] }
 0x1f5   :  { %v1044_v28 = vadd.f32 %v1042_v50, %v988_v20  ;;  %v6233_v42 = vmov %v6232_v24  ;;  %v1045_v33 = vadd.f32 %v1043_v32, %v989_v49  ;;  %v1050_v57 = vadd.f32 %v1048_v44, %v994_v58  ;;  %v6240_v20 = vld [vmem:[#allocation136_spill] sm:$0xff]  ;;  %v1165_v49 = vpop.permute.xlu1 %1164  ;;  %v6242_v58 = vld [vmem:[#allocation137_spill] sm:$0xff] }
 0x1f6   :  { %v1055_v38 = vmul.f32 %v6233_v42, %v1006_v0  ;;  %v1051_v5 = vadd.f32 %v1049_v35, %v995_v52  ;;  %v1056_v17 = vadd.f32 %v1054_v10, %v1000_v16  ;;  %v1063_v18 = vadd.f32 %v6234_v22, %v1015_v31  ;;  %v1163_v0 = vpop.permute.xlu0 %1162  ;;  %v6243_v16 = vld [vmem:[#allocation138_spill] sm:$0xff] }
 0x1f7   :  { %v1069_v61 = vadd.f32 %v6235_v26, %v1021_v29  ;;  %v1075_v9 = vadd.f32 %v6236_v55, %v1027_v39  ;;  %v1081_v12 = vadd.f32 %v6237_v14, %v1033_v41  ;;  %v1087_v30 = vadd.f32 %v6238_v25, %v1039_v37  ;;  %v6249_v29 = vld [vmem:[#allocation143_spill] sm:$0xff]  ;;  %v6250_v41 = vld [vmem:[#allocation144_spill] sm:$0xff] }
 0x1f8   :  { %v1057_v2 = vadd.f32 %v1055_v38, %v1001_v63  ;;  %v1093_v62 = vadd.f32 %v6239_v13, %v1045_v33  ;;  %v1099_v34 = vadd.f32 %v6240_v20, %v1051_v5  ;;  %v1062_v63 = vadd.f32 %v6243_v16, %v1014_v46 }
 0x1f9   :  { %v1068_v51 = vadd.f32 %v6244_v47, %v1020_v56  ;;  %v1074_v60 = vadd.f32 %v6245_v23, %v1026_v36  ;;  %v1080_v31 = vadd.f32 %v6246_v43, %v1032_v48  ;;  %v1086_v1 = vadd.f32 %v6248_v59, %v1038_v4  ;;  %v4491_v59 = vpop.permute.xlu1 %1268 }
 0x1fa   :  { %v1105_v52 = vadd.f32 %v6242_v58, %v1057_v2  ;;  %v1092_v39 = vadd.f32 %v6249_v29, %v1044_v28  ;;  %v1098_v40 = vadd.f32 %v6250_v41, %v1050_v57  ;;  %v1104_v53 = vadd.f32 %v6251_v11, %v1056_v17  ;;  %v4493_v29 = vpop.permute.xlu0 %1266 }
 0x1fb   :  { %v1110_v46 = vsel %vm213_vm1, %v1107_v54, %v1109_v21  ;;  %v1111_v56 = vsel %vm213_vm1, %v1109_v21, %v1107_v54  ;;  %v4455_v36 = vsel %vm124_vm0, %v1163_v0, %v1165_v49  ;;  %v6252_v45 = vstv %s6241_s30  ;;  %s4731_s30 = sld [smem:[#allocation10 + $0x2d]] }
 0x1fc   :  { %v1113_v48 = vsel %vm117_vm3, %v1111_v56, 0.0  ;;  %v1116_v27 = vmul.f32 %v6252_v45, %v1110_v46  ;;  %v6253_v50 = vstv %s3875_s7  ;;  %v6254_v32 = vstv %s3893_s24  ;;  %s4548_s7 = sld [smem:[#allocation10 + $0x59]] }
 0x1fd   :  { %v1122_v19 = vmul.f32 %v6253_v50, %v1110_v46  ;;  %v1128_v6 = vmul.f32 %v6254_v32, %v1110_v46  ;;  %v6255_v44 = vmov %v6252_v45  ;;  %v6256_v35 = vmov %v6253_v50  ;;  %s4558_s24 = sld [smem:[#allocation10 + $0x89]] }
 0x1fe   :  { %v1117_v15 = vmul.f32 %v6255_v44, %v1113_v48  ;;  %v1123_v21 = vmul.f32 %v6256_v35, %v1113_v48  ;;  %v6257_v54 = vmov %v6254_v32  ;;  %v6258_v10 = vstv %s6247_s6  ;;  %s4752_s6 = sld [smem:[#allocation10 + $0x2f]] }
 0x1ff   :  { %v1129_v24 = vmul.f32 %v6257_v54, %v1113_v48  ;;  %v1134_v4 = vmul.f32 %v6258_v10, %v1110_v46  ;;  %v1118_v37 = vadd.f32 %v1116_v27, %v1062_v63  ;;  %v1124_v28 = vadd.f32 %v1122_v19, %v1068_v51 }
 0x200   :  { %v1130_v42 = vadd.f32 %v1128_v6, %v1074_v60  ;;  %v6260_v38 = vmov %v6258_v10  ;;  %v1119_v57 = vadd.f32 %v1117_v15, %v1063_v18  ;;  %v1125_v5 = vadd.f32 %v1123_v21, %v1069_v61 }
 0x201   :  { %v1135_v33 = vmul.f32 %v6260_v38, %v1113_v48  ;;  %v1131_v17 = vadd.f32 %v1129_v24, %v1075_v9  ;;  %v1136_v2 = vadd.f32 %v1134_v4, %v1080_v31  ;;  %v6261_v26 = vstv %s3907_s14  ;;  %s4567_s14 = sld [smem:[#allocation10 + $0x12]] }
 0x202   :  { %v1140_v55 = vmul.f32 %v6261_v26, %v1110_v46  ;;  %v6262_v14 = vmov %v6261_v26  ;;  %v6263_v13 = vstv %s5992_s0  ;;  %v6265_v47 = vstv %s5993_s22  ;;  %s4578_s0 = sld [smem:[#allocation10 + $0x2a]]  ;;  %s6298_s22 = sld [smem:[#allocation45_spill]] }
 0x203   :  { %v1137_v22 = vadd.f32 %v1135_v33, %v1081_v12  ;;  %v1141_v25 = vmul.f32 %v6262_v14, %v1113_v48  ;;  %v1146_v20 = vmul.f32 %v6263_v13, %v1110_v46  ;;  %v6264_v58 = vmov %v6263_v13 }
 0x204   :  { %v1147_v16 = vmul.f32 %v6264_v58, %v1113_v48  ;;  %v1152_v63 = vmul.f32 %v6265_v47, %v1110_v46  ;;  %v6266_v51 = vmov %v6265_v47  ;;  %v6268_v60 = vstv %s6259_s4  ;;  %s4770_s4 = sld [smem:[#allocation10 + $0x44]] }
 0x205   :  { %v1153_v23 = vmul.f32 %v6266_v51, %v1113_v48  ;;  %v1158_v18 = vmul.f32 %v6268_v60, %v1110_v46  ;;  %v1142_v61 = vadd.f32 %v1140_v55, %v1086_v1  ;;  %v1143_v9 = vadd.f32 %v1141_v25, %v1087_v30 }
 0x206   :  { %v1148_v12 = vadd.f32 %v1146_v20, %v1092_v39  ;;  %v6269_v43 = vmov %v6268_v60  ;;  %v1149_v41 = vadd.f32 %v1147_v16, %v1093_v62  ;;  %v1154_v11 = vadd.f32 %v1152_v63, %v1098_v40 }
 0x207   :  { %v1159_v31 = vmul.f32 %v6269_v43, %v1113_v48  ;;  %v1155_v56 = vadd.f32 %v1153_v23, %v1099_v34  ;;  %v1160_v46 = vadd.f32 %v1158_v18, %v1104_v53  ;;  %v1167_v30 = vsel %vm124_vm0, %v1165_v49, %v1163_v0 }
 0x208   :  { %v6270_v1 = vstv %s5995_s11  ;;  %v6271_v48 = vstv %s6267_s5  ;;  %v1168_v50 = vsel %vm106_vm2, %v1167_v30, 0.0  ;;  %v6272_v62 = vstv %s3951_s15  ;;  %s4524_s11 = sld [smem:[#allocation10 + $0x11]]  ;;  %s4778_s5 = sld [smem:[#allocation10 + $0x45]] }
 0x209   :  { %v1161_v45 = vadd.f32 %v1159_v31, %v1105_v52  ;;  %v1173_v39 = vmul.f32 %v6270_v1, %v4455_v36  ;;  %v1179_v27 = vmul.f32 %v6271_v48, %v4455_v36  ;;  %v1185_v40 = vmul.f32 %v6272_v62, %v4455_v36  ;;  %s4560_s15 = sld [smem:[#allocation10 + $0xa1]] }
 0x20a   :  { %v6273_v34 = vstv %s3953_s28  ;;  %v6274_v52 = vstv %s3963_s20  ;;  %v6275_v49 = vmov %v6270_v1  ;;  %v6276_v6 = vmov %v6271_v48  ;;  %s4537_s20 = sld [smem:[#allocation10 + $0x29]]  ;;  %v6289_v1 = vld [vmem:[#allocation147_spill] sm:$0xff]  ;;  %v6291_v48 = vld [vmem:[#allocation149_spill] sm:$0xff] }
 0x20b   :  { %v1191_v53 = vmul.f32 %v6273_v34, %v4455_v36  ;;  %v1197_v19 = vmul.f32 %v6274_v52, %v4455_v36  ;;  %v1172_v0 = vmul.f32 %v6275_v49, %v1168_v50  ;;  %v1175_v32 = vadd.f32 %v1173_v39, %v1119_v57  ;;  %v4526_v57 = vpop.permute.xlu1 %1324  ;;  %s4565_s28 = sld [smem:[#allocation10 + $0xb9]] }
 0x20c   :  { %v1178_v44 = vmul.f32 %v6276_v6, %v1168_v50  ;;  %v1181_v15 = vadd.f32 %v1179_v27, %v1125_v5  ;;  %v6278_v35 = vmov %v6272_v62  ;;  %v1187_v54 = vadd.f32 %v1185_v40, %v1131_v17  ;;  %v4528_v5 = vpop.permute.xlu0 %1322  ;;  %v6300_v6 = vld [vmem:[#allocation156_spill] sm:$0xff] }
 0x20d   :  { %v1184_v21 = vmul.f32 %v6278_v35, %v1168_v50  ;;  %v6279_v24 = vmov %v6273_v34  ;;  %v1193_v4 = vadd.f32 %v1191_v53, %v1137_v22  ;;  %v1174_v38 = vadd.f32 %v1172_v0, %v1118_v37  ;;  %v6296_v53 = vld [vmem:[#allocation155_spill] sm:$0xff]  ;;  %v6299_v0 = vld [vmem:[#allocation153_spill] sm:$0xff] }
 0x20e   :  { %v1190_v10 = vmul.f32 %v6279_v24, %v1168_v50  ;;  %v1180_v33 = vadd.f32 %v1178_v44, %v1124_v28  ;;  %v6280_v26 = vmov %v6274_v52  ;;  %v1199_v14 = vadd.f32 %v1197_v19, %v1143_v9  ;;  %v6288_v9 = vld [vmem:[#allocation146_spill] sm:$0xff]  ;;  %v6304_v24 = vld [vmem:[#allocation159_spill] sm:$0xff] }
 0x20f   :  { %v1196_v55 = vmul.f32 %v6280_v26, %v1168_v50  ;;  %v1186_v17 = vadd.f32 %v1184_v21, %v1130_v42  ;;  %v6282_v22 = vstv %s6277_s3  ;;  %v6284_v58 = vstv %s3972_s12  ;;  %s6297_s12 = sld [smem:[#allocation43_spill]]  ;;  %v4594_v19 = vpop.permute.xlu1 %1428  ;;  %v6303_v21 = vld [vmem:[#allocation158_spill] sm:$0xff]  ;;  %s4790_s3 = sld [smem:[#allocation11 + $0x1]] }
 0x210   :  { %v1192_v25 = vadd.f32 %v1190_v10, %v1136_v2  ;;  %v1202_v13 = vmul.f32 %v6282_v22, %v1168_v50  ;;  %v6283_v37 = vmov %v6282_v22  ;;  %v1208_v16 = vmul.f32 %v6284_v58, %v1168_v50  ;;  %v4596_v49 = vpop.permute.xlu0 %1426 }
 0x211   :  { %v1203_v28 = vmul.f32 %v6283_v37, %v4455_v36  ;;  %v1198_v20 = vadd.f32 %v1196_v55, %v1142_v61  ;;  %v6285_v47 = vmov %v6284_v58  ;;  %v6286_v51 = vstv %s6281_s13  ;;  %v6307_v55 = vld [vmem:[#allocation69_spill] sm:$0xff]  ;;  %v6311_v37 = vld [vmem:[#allocation66_spill] sm:$0xff]  ;;  %v6313_v58 = vld [vmem:[#allocation83_spill] sm:$0xff]  ;;  %s4798_s13 = sld [smem:[#allocation10 + $0x47]] }
 0x212   :  { %v1209_v63 = vmul.f32 %v6285_v47, %v4455_v36  ;;  %v1214_v23 = vmul.f32 %v6286_v51, %v1168_v50  ;;  %v1204_v42 = vadd.f32 %v1202_v13, %v1148_v12  ;;  %v6287_v60 = vmov %v6286_v51  ;;  %v6292_v50 = vld [vmem:[#allocation150_spill] sm:$0xff] }
 0x213   :  { %v1205_v2 = vadd.f32 %v1203_v28, %v1149_v41  ;;  %v1215_v18 = vmul.f32 %v6287_v60, %v4455_v36  ;;  %v4556_v43 = vadd.f32 %v6288_v9, %v1175_v32  ;;  %v1210_v61 = vadd.f32 %v1208_v16, %v1154_v11  ;;  %v6290_v41 = vld [vmem:[#allocation148_spill] sm:$0xff]  ;;  %v6293_v11 = vld [vmem:[#allocation151_spill] sm:$0xff] }
 0x214   :  { %v1211_v31 = vadd.f32 %v1209_v63, %v1155_v56  ;;  %v1216_v30 = vadd.f32 %v1214_v23, %v1160_v46  ;;  %v4563_v39 = vadd.f32 %v6289_v1, %v1181_v15  ;;  %v4570_v36 = vadd.f32 %v6290_v41, %v1187_v54  ;;  %v6294_v46 = vld [vmem:[#allocation152_spill] sm:$0xff]  ;;  %v6301_v15 = vld [vmem:[#allocation157_spill] sm:$0xff] }
 0x215   :  { %v1217_v12 = vadd.f32 %v1215_v18, %v1161_v45  ;;  %v4573_v27 = vadd.f32 %v6291_v48, %v1193_v4  ;;  %v4576_v62 = vadd.f32 %v6292_v50, %v1199_v14  ;;  %v4583_v56 = vadd.f32 %v6293_v11, %v1205_v2  ;;  %v6295_v45 = vld [vmem:[#allocation154_spill] sm:$0xff]  ;;  %v6305_v4 = vld [vmem:[#allocation160_spill] sm:$0xff]  ;;  %v1485_v50 = vpop.permute.xlu1 %1484  ;;  %v1483_v11 = vpop.permute.xlu0 %1482 }
 0x216   :  { %v4586_v40 = vadd.f32 %v6294_v46, %v1211_v31  ;;  %v1222_v34 = vadd.f32 %v6295_v45, %v1174_v38  ;;  %v1228_v52 = vadd.f32 %v6296_v53, %v1180_v33  ;;  %v1234_v44 = vadd.f32 %v6300_v6, %v1186_v17  ;;  %v6306_v33 = vld [vmem:[#allocation161_spill] sm:$0xff]  ;;  %v6317_v48 = vld [vmem:[#allocation162_spill] sm:$0xff] }
 0x217   :  { %v4599_v32 = vadd.f32 %v6299_v0, %v1217_v12  ;;  %v1240_v35 = vadd.f32 %v6301_v15, %v1192_v25  ;;  %v1246_v54 = vadd.f32 %v6303_v21, %v1198_v20  ;;  %v4607_v10 = vadd.f32 %v6304_v24, %v1204_v42  ;;  %v6309_v25 = vld [vmem:[#allocation86_spill] sm:$0xff] }
 0x218   :  { %v4610_v38 = vadd.f32 %v6305_v4, %v1210_v61  ;;  %v4613_v26 = vadd.f32 %v6306_v33, %v1216_v30  ;;  %v6308_v14 = vstv %s6297_s12  ;;  %v6310_v22 = vstv %s6298_s22  ;;  %s6338_s12 = smov 1   ;;  %s4919_s22 = sld [smem:[#allocation10 + $0x8c]] }
 0x219   :  { %v4622_v17 = vmul.f32 %v6308_v14, %v6307_v55  ;;  %v4627_v13 = vmul.f32 %v6310_v22, %v6309_v25  ;;  %v6312_v28 = vmov %v6308_v14  ;;  %v6314_v16 = vmov %v6310_v22 }
 0x21a   :  { %v4632_v20 = vmul.f32 %v6312_v28, %v6311_v37  ;;  %v4637_v47 = vmul.f32 %v6314_v16, %v6313_v58  ;;  %v1275_v51 = vstv %s4524_s11  ;;  %v4645_v23 = vsel %vm213_vm1, %v4493_v29, %v4491_v59  ;;  %v6321_v58 = vld [vmem:[#allocation163_spill] sm:$0xff]  ;;  %s4813_s11 = sld [smem:[#allocation11 + $0x2]] }
 0x21b   :  { %v6315_v42 = vstv %s6302_s29  ;;  %v1281_v9 = vstv %s4537_s20  ;;  %v1287_v61 = vstv %s4539_s19  ;;  %v1293_v31 = vstv %s4548_s7  ;;  %s4819_s20 = sld [smem:[#allocation10 + $0x5c]]  ;;  %s4831_s19 = sld [smem:[#allocation10 + $0x5d]] }
 0x21c   :  { %v4650_v2 = vmul.f32 %v6315_v42, %v6307_v55  ;;  %v6316_v60 = vmov %v6315_v42  ;;  %v1271_v30 = vsel %vm213_vm1, %v4491_v59, %v4493_v29  ;;  %v1299_v1 = vstv %s4550_s16  ;;  %s4838_s7 = sld [smem:[#allocation10 + $0x5f]]  ;;  %s4849_s16 = sld [smem:[#allocation11 + $0x3]] }
 0x21d   :  { %v4655_v18 = vmul.f32 %v6316_v60, %v6311_v37  ;;  %v5615_v12 = vstv %s4558_s24  ;;  %v1276_v46 = vmul.f32 %v1275_v51, %v4645_v23  ;;  %v1331_v45 = vstv %s4567_s14  ;;  %s4860_s14 = sld [smem:[#allocation10 + $0x74]] }
 0x21e   :  { %v1337_v53 = vstv %s4578_s0  ;;  %v1343_v0 = vstv %s4580_s2  ;;  %v4674_v6 = vsel %vm117_vm3, %v1271_v30, 0.0  ;;  %v1282_v59 = vmul.f32 %v1281_v9, %v4645_v23  ;;  %s4862_s0 = sld [smem:[#allocation10 + $0x75]]  ;;  %s4907_s2 = sld [smem:[#allocation11 + $0x4]] }
 0x21f   :  { %v1288_v21 = vmul.f32 %v1287_v61, %v4645_v23  ;;  %v1294_v24 = vmul.f32 %v1293_v31, %v4645_v23  ;;  %v1327_v33 = vsel %vm124_vm0, %v4526_v57, %v4528_v5  ;;  %v1300_v55 = vmul.f32 %v1299_v1, %v4645_v23  ;;  %s4982_s29 = sld [smem:[#allocation10 + $0xa4]] }
 0x220   :  { %v4694_v14 = vmul.f32 %v5615_v12, %v4645_v23  ;;  %v1277_v28 = vmul.f32 %v1275_v51, %v4674_v6  ;;  %v1278_v16 = vadd.f32 %v1276_v46, %v1222_v34  ;;  %v4705_v42 = vsel %vm124_vm0, %v4528_v5, %v4526_v57  ;;  %v1589_v51 = vpop.permute.xlu1 %1588  ;;  %v1587_v46 = vpop.permute.xlu0 %1586  ;;  %v6318_v12 = vld [vmem:[#allocation164_spill] sm:$0xff] }
 0x221   :  { %v4709_v60 = vsel %vm106_vm2, %v1327_v33, 0.0  ;;  %v1283_v30 = vmul.f32 %v1281_v9, %v4674_v6  ;;  %v1284_v63 = vadd.f32 %v1282_v59, %v1228_v52  ;;  %v1289_v37 = vmul.f32 %v1287_v61, %v4674_v6 }
 0x222   :  { %v1431_v34 = vsel %vm213_vm1, %v4594_v19, %v4596_v49  ;;  %v4721_v57 = vadd.f32 %v1288_v21, %v1234_v44  ;;  %v4724_v5 = vmul.f32 %v1293_v31, %v4674_v6  ;;  %v4726_v33 = vadd.f32 %v1294_v24, %v1240_v35 }
 0x223   :  { %v4729_v52 = vmul.f32 %v1299_v1, %v4674_v6  ;;  %v4733_v9 = vadd.f32 %v1300_v55, %v1246_v54  ;;  %v1332_v61 = vmul.f32 %v1331_v45, %v4709_v60  ;;  %v1333_v59 = vmul.f32 %v1331_v45, %v4705_v42 }
 0x224   :  { %v4741_v44 = vsel %vm213_vm1, %v4596_v49, %v4594_v19  ;;  %v1338_v35 = vmul.f32 %v1337_v53, %v4709_v60  ;;  %v4746_v31 = vsel %vm117_vm3, %v1431_v34, 0.0  ;;  %v1487_v54 = vsel %vm124_vm0, %v1485_v50, %v1483_v11 }
 0x225   :  { %v1591_v1 = vsel %vm213_vm1, %v1589_v51, %v1587_v46  ;;  %v1339_v45 = vmul.f32 %v1337_v53, %v4705_v42  ;;  %v4756_v19 = vmul.f32 %v1343_v0, %v4709_v60  ;;  %v1279_v49 = vadd.f32 %v1277_v28, %v4556_v43 }
 0x226   :  { %v1435_v21 = vstv %s4679_s8  ;;  %v1345_v24 = vmul.f32 %v1343_v0, %v4705_v42  ;;  %v4763_v55 = vsel %vm124_vm0, %v1483_v11, %v1485_v50  ;;  %v4767_v34 = vsel %vm106_vm2, %v1487_v54, 0.0  ;;  %s4984_s8 = sld [smem:[#allocation10 + $0xa5]] }
 0x227   :  { %v1491_v22 = vstv %s4688_s23  ;;  %v4774_v53 = vsel %vm117_vm3, %v1591_v1, 0.0  ;;  %v1335_v43 = vadd.f32 %v1333_v59, %v1279_v49  ;;  %v1437_v0 = vmul.f32 %v1435_v21, %v4746_v31  ;;  %s5015_s23 = sld [smem:[#allocation10 + $0xa7]] }
 0x228   :  { %v1595_v28 = vstv %s4698_s25  ;;  %v4782_v50 = vsel %vm213_vm1, %v1587_v46, %v1589_v51  ;;  %v1643_v11 = vstv %s4711_s1  ;;  %v1334_v54 = vadd.f32 %v1332_v61, %v1278_v16  ;;  %s5041_s25 = sld [smem:[#allocation11 + $0x6]]  ;;  %s5046_s1 = sld [smem:[#allocation10 + $0xbc]] }
 0x229   :  { %v1436_v4 = vmul.f32 %v1435_v21, %v4741_v44  ;;  %v1383_v41 = vadd.f32 %v6317_v48, %v1335_v43  ;;  %v1493_v1 = vmul.f32 %v1491_v22, %v4763_v55  ;;  %v1285_v59 = vadd.f32 %v1283_v30, %v4563_v39 }
 0x22a   :  { %v1441_v49 = vstv %s4719_s27  ;;  %v1597_v15 = vmul.f32 %v1595_v28, %v4774_v53  ;;  %v1382_v29 = vadd.f32 %v6318_v12, %v1334_v54  ;;  %v1492_v51 = vmul.f32 %v1491_v22, %v4767_v34  ;;  %v6319_v12 = vld [vmem:[#allocation166_spill] sm:$0xff]  ;;  %s5076_s27 = sld [smem:[#allocation10 + $0xbf]] }
 0x22b   :  { %v1497_v46 = vstv %s4731_s30  ;;  %v1439_v16 = vadd.f32 %v1437_v0, %v1383_v41  ;;  %v1596_v61 = vmul.f32 %v1595_v28, %v4782_v50  ;;  %v1341_v21 = vadd.f32 %v1339_v45, %v1285_v59  ;;  %v6320_v45 = vld [vmem:[#allocation168_spill] sm:$0xff]  ;;  %s2321_s30 = sld [smem:[#allocation13 + $0x2]] }
 0x22c   :  { %v1443_v48 = vmul.f32 %v1441_v49, %v4746_v31  ;;  %v1438_v39 = vadd.f32 %v1436_v4, %v1382_v29  ;;  %v1601_v30 = vstv %s4752_s6  ;;  %v1340_v43 = vadd.f32 %v1338_v35, %v1284_v63  ;;  %s5181_s6 = sld [smem:[#allocation13 + $0x3]] }
 0x22d   :  { %v1442_v8 = vmul.f32 %v1441_v49, %v4741_v44  ;;  %v1495_v7 = vadd.f32 %v1493_v1, %v1439_v16  ;;  %v1389_v54 = vadd.f32 %v6319_v12, %v1341_v21  ;;  %v1499_v22 = vmul.f32 %v1497_v46, %v4763_v55  ;;  %v6322_v1 = vld [vmem:[#allocation165_spill] sm:$0xff] }
 0x22e   :  { %v1498_v41 = vmul.f32 %v1497_v46, %v4767_v34  ;;  %v1494_v0 = vadd.f32 %v1492_v51, %v1438_v39  ;;  %v1388_v28 = vadd.f32 %v6320_v45, %v1340_v43  ;;  %v1291_v59 = vadd.f32 %v1289_v37, %v4570_v36  ;;  %v6323_v37 = vld [vmem:[#allocation170_spill] sm:$0xff]  ;;  %v6325_v45 = vld [vmem:[#allocation169_spill] sm:$0xff] }
 0x22f   :  { %v1447_v3 = vstv %s4770_s4  ;;  %v1543_v29 = vadd.f32 %v6321_v58, %v1495_v7  ;;  %v1445_v4 = vadd.f32 %v1443_v48, %v1389_v54  ;;  %v1603_v63 = vmul.f32 %v1601_v30, %v4774_v53  ;;  %s5183_s4 = sld [smem:[#allocation13 + $0x4]] }
 0x230   :  { %v1503_v35 = vstv %s4778_s5  ;;  %v1542_v49 = vadd.f32 %v6322_v1, %v1494_v0  ;;  %v1444_v16 = vadd.f32 %v1442_v8, %v1388_v28  ;;  %v1347_v21 = vadd.f32 %v1345_v24, %v1291_v59  ;;  %v6324_v24 = vld [vmem:[#allocation167_spill] sm:$0xff]  ;;  %v6327_v1 = vld [vmem:[#allocation172_spill] sm:$0xff]  ;;  %s5191_s5 = sld [smem:[#allocation13 + $0x5]] }
 0x231   :  { %v1449_v46 = vmul.f32 %v1447_v3, %v4746_v31  ;;  %v1599_v51 = vadd.f32 %v1597_v15, %v1543_v29  ;;  %v1501_v39 = vadd.f32 %v1499_v22, %v1445_v4  ;;  %v1657_v43 = vstv %s4790_s3  ;;  %s5202_s3 = sld [smem:[#allocation13 + $0x6]] }
 0x232   :  { %v1602_v36 = vmul.f32 %v1601_v30, %v4782_v50  ;;  %v1598_v7 = vadd.f32 %v1596_v61, %v1542_v49  ;;  %v1500_v58 = vadd.f32 %v1498_v41, %v1444_v16  ;;  %v1395_v48 = vadd.f32 %v6323_v37, %v1347_v21 }
 0x233   :  { %v1505_v12 = vmul.f32 %v1503_v35, %v4763_v55  ;;  %v4821_v8 = vadd.f32 %v1643_v11, %v1599_v51  ;;  %v1549_v54 = vadd.f32 %v6324_v24, %v1501_v39  ;;  %v1607_v0 = vstv %s4798_s13  ;;  %v6328_v51 = vld [vmem:[#allocation171_spill] sm:$0xff]  ;;  %s5205_s13 = sld [smem:[#allocation13 + $0x7]] }
 0x234   :  { %v1346_v15 = vadd.f32 %v4756_v19, %v4721_v57  ;;  %v4827_v22 = vadd.f32 %v1643_v11, %v1598_v7  ;;  %v1548_v30 = vadd.f32 %v6325_v45, %v1500_v58  ;;  %v1451_v61 = vadd.f32 %v1449_v46, %v1395_v48 }
 0x235   :  { %v1448_v41 = vmul.f32 %v1447_v3, %v4741_v44  ;;  %v6326_v28 = vstv %s4590_s18  ;;  %v1650_v29 = vmul.f32 1.442695, %v4821_v8  ;;  %v1605_v4 = vadd.f32 %v1603_v63, %v1549_v54  ;;  %s4935_s18 = sld [smem:[#allocation10 + $0x8d]] }
 0x236   :  { %v1351_v59 = vmul.f32 %v6326_v28, %v4705_v42  ;;  %v1394_v49 = vadd.f32 %v6327_v1, %v1346_v15  ;;  %v1648_v57 = vmul.f32 1.442695, %v4827_v22  ;;  %v1604_v19 = vadd.f32 %v1602_v36, %v1548_v30  ;;  %v6330_v15 = vld [vmem:[#allocation173_spill] sm:$0xff] }
 0x237   :  { %v1507_v11 = vadd.f32 %v1505_v12, %v1451_v61  ;;  %v1609_v3 = vmul.f32 %v1607_v0, %v4774_v53  ;;  %2386 = vpow2.f32 %v1650_v29  ;;  %v4842_v16 = vadd.f32 %v1657_v43, %v1605_v4  ;;  %v6332_v29 = vld [vmem:[#allocation174_spill] sm:$0xff] }
 0x238   :  { %v1450_v21 = vadd.f32 %v1448_v41, %v1394_v49  ;;  %v1504_v46 = vmul.f32 %v1503_v35, %v4767_v34  ;;  %2388 = vpow2.f32 %v1648_v57  ;;  %v4845_v63 = vadd.f32 %v1657_v43, %v1604_v19 }
 0x239   :  { %v1555_v39 = vadd.f32 %v6328_v51, %v1507_v11  ;;  %v1671_v7 = vstv %s4813_s11  ;;  %v1664_v36 = vmul.f32 1.442695, %v4842_v16  ;;  %v1608_v37 = vmul.f32 %v1607_v0, %v4782_v50  ;;  %s5215_s11 = sld [smem:[#allocation13 + $0x8]] }
 0x23a   :  { %v1506_v58 = vadd.f32 %v1504_v46, %v1450_v21  ;;  %v1297_v48 = vadd.f32 %v4724_v5, %v4573_v27  ;;  %v6329_v35 = vmov %v6326_v28  ;;  %v1662_v43 = vmul.f32 1.442695, %v4845_v63 }
 0x23b   :  { %v1350_v12 = vmul.f32 %v6329_v35, %v4709_v60  ;;  %v1611_v24 = vadd.f32 %v1609_v3, %v1555_v39  ;;  %v1453_v54 = vstv %s4819_s20  ;;  %2390 = vpow2.f32 %v1664_v36  ;;  %s5225_s20 = sld [smem:[#allocation13 + $0x9]] }
 0x23c   :  { %v1554_v45 = vadd.f32 %v6330_v15, %v1506_v58  ;;  %v1353_v0 = vadd.f32 %v1351_v59, %v1297_v48  ;;  %v1455_v30 = vmul.f32 %v1453_v54, %v4746_v31  ;;  %v6331_v27 = vstv %s4558_s24  ;;  %s4883_s24 = sld [smem:[#allocation10 + $0x77]] }
 0x23d   :  { %v4869_v5 = vmul.f32 %v6331_v27, %v4674_v6  ;;  %2392 = vpow2.f32 %v1662_v43  ;;  %v4871_v61 = vadd.f32 %v1671_v7, %v1611_v24  ;;  %v1509_v41 = vstv %s4831_s19  ;;  %v6336_v27 = vld [vmem:[#allocation178_spill] sm:$0xff]  ;;  %s5228_s19 = sld [smem:[#allocation13 + $0xa]] }
 0x23e   :  { %v1610_v28 = vadd.f32 %v1608_v37, %v1554_v45  ;;  %v1401_v4 = vadd.f32 %v6332_v29, %v1353_v0  ;;  %v1511_v1 = vmul.f32 %v1509_v41, %v4763_v55  ;;  %v1613_v49 = vstv %s4838_s7  ;;  %v6335_v0 = vld [vmem:[#allocation175_spill] sm:$0xff]  ;;  %s5238_s7 = sld [smem:[#allocation13 + $0xb]] }
 0x23f   :  { %v6333_v57 = vstv %s4592_s9  ;;  %vm1647_vm8 = vcmp.gt.f32.partialorder %v4821_v8, 0.0  ;;  %vm1646_vm9 = vcmp.gt.f32.partialorder %v4827_v22, 0.0  ;;  %v1678_v19 = vmul.f32 1.442695, %v4871_v61 }
 0x240   :  { %v1357_v59 = vmul.f32 %v6333_v57, %v4705_v42  ;;  %v4885_v11 = vadd.f32 %v1671_v7, %v1610_v28  ;;  %v1457_v3 = vadd.f32 %v1455_v30, %v1401_v4  ;;  %v1352_v21 = vadd.f32 %v1350_v12, %v4726_v33  ;;  %v6334_v7 = vld [vmem:[#allocation176_spill] sm:$0xff] }
 0x241   :  { %v1454_v46 = vmul.f32 %v1453_v54, %v4741_v44  ;;  %2394 = vpow2.f32 %v1678_v19  ;;  %v1615_v51 = vmul.f32 %v1613_v49, %v4774_v53  ;;  %v1685_v39 = vstv %s4849_s16  ;;  %v2387_v58 = vpop.eup %2386  ;;  %s5255_s16 = sld [smem:[#allocation13 + $0xc]] }
 0x242   :  { %v1303_v36 = vadd.f32 %v4729_v52, %v4576_v62  ;;  %v1676_v37 = vmul.f32 1.442695, %v4885_v11  ;;  %v1513_v48 = vadd.f32 %v1511_v1, %v1457_v3  ;;  %v1400_v35 = vadd.f32 %v6334_v7, %v1352_v21  ;;  %v2389_v24 = vpop.eup %2388  ;;  %v6340_v7 = vld [vmem:[#allocation177_spill] sm:$0xff] }
 0x243   :  { %v1510_v43 = vmul.f32 %v1509_v41, %v4767_v34  ;;  %v2298_v33 = vadd.f32 -1.0, %v2387_v58  ;;  %v1459_v54 = vstv %s4860_s14  ;;  %v1515_v15 = vstv %s4862_s0  ;;  %s5258_s14 = sld [smem:[#allocation13 + $0xd]]  ;;  %s2333_s0 = sld [smem:[#allocation13 + $0xe]] }
 0x244   :  { %v1359_v12 = vadd.f32 %v1357_v59, %v1303_v36  ;;  %v2297_v45 = vadd.f32 -1.0, %v2389_v24  ;;  %2396 = vpow2.f32 %v1676_v37  ;;  %v1561_v30 = vadd.f32 %v6335_v0, %v1513_v48 }
 0x245   :  { %v1456_v62 = vadd.f32 %v1454_v46, %v1400_v35  ;;  %v4902_v52 = vsel %vm1647_vm8, %v4821_v8, %v2298_v33  ;;  %v1461_v41 = vmul.f32 %v1459_v54, %v4746_v31  ;;  %v1517_v29 = vmul.f32 %v1515_v15, %v4763_v55  ;;  %v2391_v4 = vpop.eup %2390 }
 0x246   :  { %v1407_v28 = vadd.f32 %v6336_v27, %v1359_v12  ;;  %v6337_v1 = vstv %s4560_s15  ;;  %1756 = vrot.lane.b32.xlu1 %v4902_v52, %s6338_s12  ;;  %v4917_v8 = vsel %vm1646_vm9, %v4827_v22, %v2297_v45  ;;  %v1617_v59 = vadd.f32 %v1615_v51, %v1561_v30  ;;  %s4962_s15 = sld [smem:[#allocation10 + $0x8f]] }
 0x247   :  { %v1312_v57 = vmul.f32 %v6337_v1, %v4645_v23  ;;  %v1512_v19 = vadd.f32 %v1510_v43, %v1456_v62  ;;  %v2393_v3 = vpop.eup %2392  ;;  %v6339_v21 = vstv %s4592_s9  ;;  %1754 = vrot.lane.b32.xlu0 %v4917_v8, %s6338_s12  ;;  %v1614_v36 = vmul.f32 %v1613_v49, %v4782_v50  ;;  %s6344_s9 = smov 127  }
 0x248   :  { %v1356_v46 = vmul.f32 %v6339_v21, %v4709_v60  ;;  %v1463_v58 = vadd.f32 %v1461_v41, %v1407_v28  ;;  %v1619_v37 = vstv %s4883_s24  ;;  %v4930_v22 = vadd.f32 %v4694_v14, %v4607_v10  ;;  %v6345_v28 = vld [vmem:[#allocation179_spill] sm:$0xff]  ;;  %s5269_s24 = sld [smem:[#allocation13 + $0xf]] }
 0x249   :  { %v2301_v51 = vadd.f32 -1.0, %v2391_v4  ;;  %v4932_v48 = vadd.f32 %v1685_v39, %v1617_v59  ;;  %v1560_v35 = vadd.f32 %v6340_v7, %v1512_v19  ;;  %v6341_v43 = vmov %v6337_v1  ;;  %v6346_v19 = vld [vmem:[#allocation180_spill] sm:$0xff] }
 0x24a   :  { %v4940_v24 = vmul.f32 %v6341_v43, %v4674_v6  ;;  %v6342_v33 = vstv %s4565_s28  ;;  %v1519_v12 = vadd.f32 %v1517_v29, %v1463_v58  ;;  %v1621_v45 = vmul.f32 %v1619_v37, %v4774_v53  ;;  %1774 = vrot.lane.b32.xlu1 %v4902_v52, %s6344_s9 }
 0x24b   :  { %v4945_v49 = vmul.f32 %v6342_v33, %v4674_v6  ;;  %v4949_v10 = vadd.f32 %v1312_v57, %v4610_v38  ;;  %v6343_v14 = vstv %s4604_s10  ;;  %v2300_v30 = vadd.f32 -1.0, %v2393_v3  ;;  %v2395_v27 = vpop.eup %2394  ;;  %1772 = vrot.lane.b32.xlu0 %v4917_v8, %s6344_s9  ;;  %s5005_s10 = sld [smem:[#allocation11 + $0x5]] }
 0x24c   :  { %v1363_v0 = vmul.f32 %v6343_v14, %v4705_v42  ;;  %v1692_v62 = vmul.f32 1.442695, %v4932_v48  ;;  %vm1661_vm10 = vcmp.gt.f32.partialorder %v4842_v16, 0.0  ;;  %v1616_v6 = vadd.f32 %v1614_v36, %v1560_v35 }
 0x24d   :  { %v1567_v38 = vadd.f32 %v6345_v28, %v1519_v12  ;;  %v1358_v41 = vadd.f32 %v1356_v46, %v4733_v9  ;;  %v4965_v29 = vsel %vm1661_vm10, %v4842_v16, %v2301_v51  ;;  %vm1660_vm11 = vcmp.gt.f32.partialorder %v4845_v63, 0.0  ;;  %v6350_v28 = vld [vmem:[#allocation181_spill] sm:$0xff] }
 0x24e   :  { %2398 = vpow2.f32 %v1692_v62  ;;  %v1460_v4 = vmul.f32 %v1459_v54, %v4741_v44  ;;  %v4969_v1 = vadd.f32 %v1685_v39, %v1616_v6  ;;  %v1699_v59 = vstv %s4907_s2  ;;  %v2397_v21 = vpop.eup %2396  ;;  %1788 = vrot.lane.b32.xlu1 %v4965_v29, %s6338_s12  ;;  %s5272_s2 = sld [smem:[#allocation13 + $0x10]] }
 0x24f   :  { %v1623_v57 = vadd.f32 %v1621_v45, %v1567_v38  ;;  %v1406_v3 = vadd.f32 %v6346_v19, %v1358_v41  ;;  %v4976_v9 = vsel %vm1660_vm11, %v4845_v63, %v2300_v30  ;;  %v1516_v16 = vmul.f32 %v1515_v15, %v4767_v34  ;;  %v6349_v30 = vld [vmem:[#allocation184_spill] sm:$0xff] }
 0x250   :  { %v1309_v46 = vadd.f32 %v4869_v5, %v4583_v56  ;;  %v1465_v54 = vstv %s4919_s22  ;;  %v6347_v39 = vmov %v6343_v14  ;;  %v6348_v58 = vstv %s4615_s21  ;;  %1786 = vrot.lane.b32.xlu0 %v4976_v9, %s6338_s12  ;;  %s5291_s22 = sld [smem:[#allocation13 + $0x12]] }
 0x251   :  { %v1362_v36 = vmul.f32 %v6347_v39, %v4709_v60  ;;  %v1369_v51 = vmul.f32 %v6348_v58, %v4705_v42  ;;  %v2304_v63 = vadd.f32 -1.0, %v2395_v27  ;;  %v1690_v15 = vmul.f32 1.442695, %v4969_v1 }
 0x252   :  { %v4995_v7 = vadd.f32 %v1699_v59, %v1623_v57  ;;  %v1462_v56 = vadd.f32 %v1460_v4, %v1406_v3  ;;  %v1365_v5 = vadd.f32 %v1363_v0, %v1309_v46  ;;  %v1521_v35 = vstv %s4935_s18  ;;  %1808 = vrot.lane.b32.xlu1 %v4965_v29, %s6344_s9  ;;  %s5298_s18 = sld [smem:[#allocation13 + $0x13]] }
 0x253   :  { %vm1675_vm12 = vcmp.gt.f32.partialorder %v4871_v61, 0.0  ;;  %v2303_v43 = vadd.f32 -1.0, %v2397_v21  ;;  %2400 = vpow2.f32 %v1690_v15  ;;  %v1467_v33 = vmul.f32 %v1465_v54, %v4746_v31 }
 0x254   :  { %vm1674_vm13 = vcmp.gt.f32.partialorder %v4885_v11, 0.0  ;;  %v1706_v12 = vmul.f32 1.442695, %v4995_v7  ;;  %v1518_v45 = vadd.f32 %v1516_v16, %v1462_v56  ;;  %v1620_v14 = vmul.f32 %v1619_v37, %v4782_v50  ;;  %1806 = vrot.lane.b32.xlu0 %v4976_v9, %s6344_s9  ;;  %v6351_v16 = vld [vmem:[#allocation186_spill] sm:$0xff] }
 0x255   :  { %v5010_v0 = vsel %vm1675_vm12, %v4871_v61, %v2304_v63  ;;  %v1413_v62 = vadd.f32 %v6349_v30, %v1365_v5  ;;  %v1523_v27 = vmul.f32 %v1521_v35, %v4763_v55  ;;  %v1625_v6 = vstv %s4962_s15  ;;  %v6353_v5 = vld [vmem:[#allocation185_spill] sm:$0xff]  ;;  %s5314_s15 = sld [smem:[#allocation13 + $0x15]] }
 0x256   :  { %2402 = vpow2.f32 %v1706_v12  ;;  %v1566_v37 = vadd.f32 %v6350_v28, %v1518_v45  ;;  %v1364_v38 = vadd.f32 %v1362_v36, %v4930_v22  ;;  %v1466_v41 = vmul.f32 %v1465_v54, %v4741_v44  ;;  %1822 = vrot.lane.b32.xlu1 %v5010_v0, %s6338_s12  ;;  %v6354_v28 = vld [vmem:[#allocation187_spill] sm:$0xff] }
 0x257   :  { %v5021_v61 = vsel %vm1674_vm13, %v4885_v11, %v2303_v43  ;;  %v1469_v4 = vadd.f32 %v1467_v33, %v1413_v62  ;;  %v1522_v57 = vmul.f32 %v1521_v35, %v4767_v34  ;;  %v1315_v19 = vadd.f32 %v4940_v24, %v4586_v40 }
 0x258   :  { %v2399_v3 = vpop.eup %2398  ;;  %v1622_v21 = vadd.f32 %v1620_v14, %v1566_v37  ;;  %v1412_v46 = vadd.f32 %v6351_v16, %v1364_v38  ;;  %v1471_v22 = vstv %s4982_s29  ;;  %v1527_v39 = vstv %s4984_s8  ;;  %1820 = vrot.lane.b32.xlu0 %v5021_v61, %s6338_s12  ;;  %s5321_s29 = sld [smem:[#allocation13 + $0x16]]  ;;  %s5327_s8 = sld [smem:[#allocation13 + $0x17]] }
 0x259   :  { %v1525_v11 = vadd.f32 %v1523_v27, %v1469_v4  ;;  %v1627_v54 = vmul.f32 %v1625_v6, %v4774_v53  ;;  %v1371_v36 = vadd.f32 %v1369_v51, %v1315_v19  ;;  %v1473_v58 = vmul.f32 %v1471_v22, %v4746_v31 }
 0x25a   :  { %v6352_v40 = vstv %s4615_s21  ;;  %vm1689_vm14 = vcmp.gt.f32.partialorder %v4932_v48, 0.0  ;;  %v5039_v63 = vadd.f32 %v1699_v59, %v1622_v21  ;;  %v1468_v15 = vadd.f32 %v1466_v41, %v1412_v46  ;;  %1842 = vrot.lane.b32.xlu1 %v5010_v0, %s6344_s9  ;;  %s5053_s21 = sld [smem:[#allocation10 + $0xbd]] }
 0x25b   :  { %v1368_v24 = vmul.f32 %v6352_v40, %v4709_v60  ;;  %v2307_v56 = vadd.f32 -1.0, %v2399_v3  ;;  %v1573_v35 = vadd.f32 %v6353_v5, %v1525_v11  ;;  %v1419_v43 = vadd.f32 %v4622_v17, %v1371_v36 }
 0x25c   :  { %v1529_v51 = vmul.f32 %v1527_v39, %v4763_v55  ;;  %v1704_v33 = vmul.f32 1.442695, %v5039_v63  ;;  %v1713_v59 = vstv %s5005_s10  ;;  %v1524_v12 = vadd.f32 %v1522_v57, %v1468_v15  ;;  %1840 = vrot.lane.b32.xlu0 %v5021_v61, %s6344_s9 }
 0x25d   :  { %v1626_v45 = vmul.f32 %v1625_v6, %v4782_v50  ;;  %v2401_v14 = vpop.eup %2400  ;;  %vm1688_vm15 = vcmp.gt.f32.partialorder %v4969_v1, 0.0  ;;  %v1629_v17 = vadd.f32 %v1627_v54, %v1573_v35  ;;  %v1475_v30 = vadd.f32 %v1473_v58, %v1419_v43 }
 0x25e   :  { %v1631_v62 = vstv %s5015_s23  ;;  %v2306_v27 = vadd.f32 -1.0, %v2401_v14  ;;  %2404 = vpow2.f32 %v1704_v33  ;;  %v1572_v37 = vadd.f32 %v6354_v28, %v1524_v12 }
 0x25f   :  { %v1370_v38 = vadd.f32 %v1368_v24, %v4949_v10  ;;  %v5064_v6 = vsel %vm1689_vm14, %v4932_v48, %v2307_v56  ;;  %v5066_v41 = vadd.f32 %v1713_v59, %v1629_v17  ;;  %v1531_v4 = vadd.f32 %v1529_v51, %v1475_v30 }
 0x260   :  { %v1472_v57 = vmul.f32 %v1471_v22, %v4741_v44  ;;  %v2403_v19 = vpop.eup %2402  ;;  %1856 = vrot.lane.b32.xlu1 %v5064_v6, %s6338_s12  ;;  %v5072_v3 = vsel %vm1688_vm15, %v4969_v1, %v2306_v27  ;;  %v1628_v21 = vadd.f32 %v1626_v45, %v1572_v37  ;;  %v1633_v10 = vmul.f32 %v1631_v62, %v4774_v53 }
 0x261   :  { %v1418_v48 = vadd.f32 %v4632_v20, %v1370_v38  ;;  %v6355_v16 = vstv %s4565_s28  ;;  %v6356_v22 = vstv %s4617_s17  ;;  %1854 = vrot.lane.b32.xlu0 %v5072_v3, %s6338_s12  ;;  %v1720_v1 = vmul.f32 1.442695, %v5066_v41  ;;  %s5108_s28 = sld [smem:[#allocation11 + $0x7]]  ;;  %s2320_s17 = sld [smem:[#allocation13 + $0x1]] }
 0x262   :  { %v1318_v46 = vmul.f32 %v6355_v16, %v4645_v23  ;;  %v1375_v11 = vmul.f32 %v6356_v22, %v4705_v42  ;;  %v1528_v54 = vmul.f32 %v1527_v39, %v4767_v34  ;;  %v5088_v36 = vadd.f32 %v1713_v59, %v1628_v21 }
 0x263   :  { %v1579_v20 = vadd.f32 %v4627_v13, %v1531_v4  ;;  %v1727_v58 = vstv %s5041_s25  ;;  %v1321_v40 = vadd.f32 %v4945_v49, %v4599_v32  ;;  %v2310_v23 = vadd.f32 -1.0, %v2403_v19  ;;  %s6364_s25 = sld [smem:[#allocation188_spill]] }
 0x264   :  { %2406 = vpow2.f32 %v1720_v1  ;;  %v1474_v24 = vadd.f32 %v1472_v57, %v1418_v48  ;;  %v1477_v42 = vstv %s5046_s1  ;;  %v6357_v15 = vmov %v6356_v22  ;;  %1876 = vrot.lane.b32.xlu1 %v5064_v6, %s6344_s9  ;;  %s2546_s1 = smov [#allocation14]  }
 0x265   :  { %v1374_v56 = vmul.f32 %v6357_v15, %v4709_v60  ;;  %v1718_v39 = vmul.f32 1.442695, %v5088_v36  ;;  %v1635_v5 = vadd.f32 %v1633_v10, %v1579_v20  ;;  %v1533_v35 = vstv %s5053_s21  ;;  %1874 = vrot.lane.b32.xlu0 %v5072_v3, %s6344_s9  ;;  %s2048_s21 = sshll.u32 %s2546_s1, 4  ;;  %s2049_s21 = int_to_ptr.vmem [resolvable:$true] %s2048_s21 }
 0x266   :  { %v1530_v13 = vadd.f32 %v1528_v54, %v1474_v24  ;;  %v1632_v32 = vmul.f32 %v1631_v62, %v4782_v50  ;;  %v1377_v49 = vadd.f32 %v1375_v11, %v1321_v40  ;;  %v1479_v43 = vmul.f32 %v1477_v42, %v4746_v31  ;;  %p2511_p6 = scmp.lt.s32.totalorder %s2049_s21, %s2049_s21 }
 0x267   :  { %v1320_v51 = vadd.f32 %v1318_v46, %v4613_v26  ;;  %vm1703_vm4 = vcmp.gt.f32.partialorder %v4995_v7, 0.0  ;;  %2408 = vpow2.f32 %v1718_v39  ;;  %v1729_v60 = vadd.f32 %v1727_v58, %v1635_v5 }
 0x268   :  { %v5111_v33 = vsel %vm1703_vm4, %v4995_v7, %v2310_v23  ;;  %v1578_v59 = vadd.f32 %v4637_v47, %v1530_v13  ;;  %v1425_v12 = vadd.f32 %v4650_v2, %v1377_v49  ;;  %v1535_v45 = vmul.f32 %v1533_v35, %v4763_v55  ;;  %v2405_v14 = vpop.eup %2404 }
 0x269   :  { %1890 = vrot.lane.b32.xlu1 %v5111_v33, %s6338_s12  ;;  %v1734_v26 = vmul.f32 1.442695, %v1729_v60  ;;  %v1637_v31 = vstv %s5076_s27  ;;  %v1376_v17 = vadd.f32 %v1374_v56, %v1320_v51  ;;  %v1478_v30 = vmul.f32 %v1477_v42, %v4741_v44  ;;  %s2506_s27 = scalar_lea.vmem %s2049_s21, 256 }
 0x26a   :  { %v2309_v62 = vadd.f32 -1.0, %v2405_v14  ;;  %v1634_v27 = vadd.f32 %v1632_v32, %v1578_v59  ;;  %v1481_v28 = vadd.f32 %v1479_v43, %v1425_v12  ;;  %v6358_v7 = vstv %s4530_s26  ;;  %s1762_s26 = sld [smem:[#allocation13]]  ;;  %p2507_p5 = scmp.ne.s32.totalorder %s2049_s21, %s2506_s27 }
 0x26b   :  { %v1583_v47 = vmul.f32 %v6358_v7, %v6309_v25  ;;  %vm1702_vm5 = vcmp.gt.f32.partialorder %v5039_v63, 0.0  ;;  %2410 = vpow2.f32 %v1734_v26  ;;  %v1424_v2 = vadd.f32 %v4655_v18, %v1376_v17  ;;  %v6359_v18 = vld [vmem:[#allocation83_spill] sm:$0xff]  ;;  %p2512_p7 = scmp.lt.s32.totalorder %s2506_s27, %s2506_s27 }
 0x26c   :  { %v1534_v55 = vmul.f32 %v1533_v35, %v4767_v34  ;;  %v5127_v37 = vsel %vm1702_vm5, %v5039_v63, %v2309_v62  ;;  %v1728_v38 = vadd.f32 %v1727_v58, %v1634_v27  ;;  %v1537_v44 = vadd.f32 %v1535_v45, %v1481_v28 }
 0x26d   :  { %v1639_v4 = vmul.f32 %v1637_v31, %v4774_v53  ;;  %1888 = vrot.lane.b32.xlu0 %v5127_v37, %s6338_s12  ;;  %1910 = vrot.lane.b32.xlu1 %v5111_v33, %s6344_s9  ;;  %v1480_v25 = vadd.f32 %v1478_v30, %v1424_v2  ;;  %v6360_v10 = vmov %v6358_v7  ;;  %v1741_v63 = vstv %s5108_s28  ;;  %p2513_p8 = por %p2512_p7, %p2511_p6 }
 0x26e   :  { %v2407_v57 = vpop.eup %2406  ;;  %v1732_v19 = vmul.f32 1.442695, %v1728_v38  ;;  %v1585_v21 = vadd.f32 %v1583_v47, %v1537_v44  ;;  %v1582_v34 = vmul.f32 %v6360_v10, %v6359_v18  ;;  %v1638_v46 = vmul.f32 %v1637_v31, %v4782_v50 }
 0x26f   :  { %v2313_v48 = vadd.f32 -1.0, %v2407_v57  ;;  %v1536_v16 = vadd.f32 %v1534_v55, %v1480_v25  ;;  %vm1717_vm6 = vcmp.gt.f32.partialorder %v5066_v41, 0.0  ;;  %vm1716_vm7 = vcmp.gt.f32.partialorder %v5088_v36, 0.0  ;;  %p2514_p9 = pnand %p2513_p8, %p2507_p5 }
 0x270   :  { %2412 = vpow2.f32 %v1732_v19  ;;  %v1641_v53 = vadd.f32 %v1639_v4, %v1585_v21  ;;  %vm1731_vm8 = vcmp.gt.f32.partialorder %v1729_v60, 0.0  ;;  %vm1730_vm9 = vcmp.gt.f32.partialorder %v1728_v38, 0.0 }
 0x271   :  { %v2409_v22 = vpop.eup %2408  ;;  %1908 = vrot.lane.b32.xlu0 %v5127_v37, %s6344_s9  ;;  %v5143_v11 = vsel %vm1717_vm6, %v5066_v41, %v2313_v48  ;;  %v1584_v1 = vadd.f32 %v1582_v34, %v1536_v16  ;;  %v1767_v26 = vstv %s2320_s17  ;;  %v1781_v28 = vstv %s2321_s30 }
 0x272   :  { %1924 = vrot.lane.b32.xlu1 %v5143_v11, %s6338_s12  ;;  %v2312_v54 = vadd.f32 -1.0, %v2409_v22  ;;  %v1743_v20 = vadd.f32 %v1741_v63, %v1641_v53  ;;  %v1769_v47 = vmul.f32 %v1767_v26, %v4902_v52  ;;  %v1768_v2 = vmul.f32 %v1767_v26, %v4917_v8 }
 0x273   :  { %v1640_v50 = vadd.f32 %v1638_v46, %v1584_v1  ;;  %v1795_v25 = vstv %s5181_s6  ;;  %v1801_v8 = vstv %s5183_s4 }
 0x274   :  { %v5149_v58 = vsel %vm1716_vm7, %v5088_v36, %v2312_v54  ;;  %v1748_v40 = vmul.f32 1.442695, %v1743_v20  ;;  %vm1745_vm10 = vcmp.gt.f32.partialorder %v1743_v20, 0.0  ;;  %v1803_v54 = vmul.f32 %v1801_v8, %v4965_v29 }
 0x275   :  { %v2411_v23 = vpop.eup %2410  ;;  %1922 = vrot.lane.b32.xlu0 %v5149_v58, %s6338_s12  ;;  %v1742_v24 = vadd.f32 %v1741_v63, %v1640_v50  ;;  %v1815_v50 = vstv %s5191_s5 }
 0x276   :  { %1944 = vrot.lane.b32.xlu1 %v5143_v11, %s6344_s9  ;;  %v2316_v41 = vadd.f32 -1.0, %v2411_v23  ;;  %2414 = vpow2.f32 %v1748_v40  ;;  %v1802_v23 = vmul.f32 %v1801_v8, %v4976_v9  ;;  %v1869_v8 = vstv %s5228_s19 }
 0x277   :  { %v1746_v42 = vmul.f32 1.442695, %v1742_v24  ;;  %vm1744_vm11 = vcmp.gt.f32.partialorder %v1742_v24, 0.0 }
 0x278   :  { %v5157_v15 = vsel %vm1731_vm8, %v1729_v60, %v2316_v41  ;;  %v1763_v60 = vstv %s1762_s26 }
 0x279   :  { %1942 = vrot.lane.b32.xlu0 %v5149_v58, %s6344_s9  ;;  %2416 = vpow2.f32 %v1746_v42 }
 0x27a   :  { %v2413_v36 = vpop.eup %2412  ;;  %1958 = vrot.lane.b32.xlu1 %v5157_v15, %s6338_s12 }
 0x27b   :  { %v2315_v56 = vadd.f32 -1.0, %v2413_v36 }
 0x27d   :  { %v5161_v39 = vsel %vm1730_vm9, %v1728_v38, %v2315_v56 }
 0x27e   :  { %1956 = vrot.lane.b32.xlu0 %v5161_v39, %s6338_s12  ;;  %1978 = vrot.lane.b32.xlu1 %v5157_v15, %s6344_s9 }
 0x280   :  { %v2415_v5 = vpop.eup %2414 }
 0x281   :  { %v2319_v35 = vadd.f32 -1.0, %v2415_v5 }
 0x282   :  { %1976 = vrot.lane.b32.xlu0 %v5161_v39, %s6344_s9 }
 0x283   :  { %v2417_v13 = vpop.eup %2416  ;;  %v5169_v32 = vsel %vm1745_vm10, %v1743_v20, %v2319_v35 }
 0x284   :  { %1992 = vrot.lane.b32.xlu1 %v5169_v32, %s6338_s12  ;;  %v2318_v49 = vadd.f32 -1.0, %v2417_v13 }
 0x286   :  { %v5173_v43 = vsel %vm1744_vm11, %v1742_v24, %v2318_v49  ;;  %v1829_v49 = vstv %s5202_s3 }
 0x287   :  { %1990 = vrot.lane.b32.xlu0 %v5173_v43, %s6338_s12  ;;  %s5281_s12 = sld [smem:[#allocation13 + $0x11]] }
 0x288   :  { %2012 = vrot.lane.b32.xlu1 %v5169_v32, %s6344_s9 }
 0x28b   :  { %2010 = vrot.lane.b32.xlu0 %v5173_v43, %s6344_s9  ;;  %s5309_s9 = sld [smem:[#allocation13 + $0x14]] }
 0x2b8   :  { %v1757_v51 = vpop.permute.xlu1 %1756 }
 0x2b9   :  { %v1755_v59 = vpop.permute.xlu0 %1754 }
 0x2ba   :  { %v1758_v45 = vsel %vm124_vm0, %v1755_v59, %v1757_v51  ;;  %v1759_v14 = vsel %vm124_vm0, %v1757_v51, %v1755_v59  ;;  %v1835_v51 = vstv %s5205_s13 }
 0x2bb   :  { %v1760_v17 = vsel %vm106_vm2, %v1759_v14, 0.0  ;;  %v1765_v62 = vmul.f32 %v1763_v60, %v1758_v45 }
 0x2bc   :  { %v1764_v30 = vmul.f32 %v1763_v60, %v1760_v17  ;;  %v1775_v27 = vpop.permute.xlu1 %1774 }
 0x2bd   :  { %v1773_v7 = vpop.permute.xlu0 %1772  ;;  %v1771_v19 = vadd.f32 %v1769_v47, %v1765_v62 }
 0x2be   :  { %v1776_v55 = vsel %vm213_vm1, %v1773_v7, %v1775_v27  ;;  %v1777_v38 = vsel %vm213_vm1, %v1775_v27, %v1773_v7  ;;  %v1770_v57 = vadd.f32 %v1768_v2, %v1764_v30  ;;  %v1837_v27 = vmul.f32 %v1835_v51, %v5010_v0 }
 0x2bf   :  { %v1779_v4 = vsel %vm117_vm3, %v1777_v38, 0.0  ;;  %v1782_v21 = vmul.f32 %v1781_v28, %v1776_v55  ;;  %v1849_v7 = vstv %s5215_s11  ;;  %v1836_v2 = vmul.f32 %v1835_v51, %v5021_v61 }
 0x2c0   :  { %v1783_v18 = vmul.f32 %v1781_v28, %v1779_v4  ;;  %v1789_v10 = vpop.permute.xlu1 %1788 }
 0x2c1   :  { %v1784_v53 = vadd.f32 %v1782_v21, %v1770_v57 }
 0x2c2   :  { %v1787_v52 = vpop.permute.xlu0 %1786  ;;  %v1785_v34 = vadd.f32 %v1783_v18, %v1771_v19 }
 0x2c3   :  { %v1790_v48 = vsel %vm124_vm0, %v1787_v52, %v1789_v10  ;;  %v1791_v63 = vsel %vm124_vm0, %v1789_v10, %v1787_v52  ;;  %v1863_v10 = vstv %s5225_s20 }
 0x2c4   :  { %v1792_v16 = vsel %vm106_vm2, %v1791_v63, 0.0  ;;  %v1797_v46 = vmul.f32 %v1795_v25, %v1790_v48  ;;  %v1809_v1 = vpop.permute.xlu1 %1808 }
 0x2c5   :  { %v1796_v22 = vmul.f32 %v1795_v25, %v1792_v16 }
 0x2c6   :  { %v1799_v20 = vadd.f32 %v1797_v46, %v1785_v34  ;;  %v1807_v40 = vpop.permute.xlu0 %1806 }
 0x2c7   :  { %v1798_v24 = vadd.f32 %v1796_v22, %v1784_v53  ;;  %v1810_v41 = vsel %vm213_vm1, %v1807_v40, %v1809_v1  ;;  %v1811_v42 = vsel %vm213_vm1, %v1809_v1, %v1807_v40  ;;  %v1871_v1 = vmul.f32 %v1869_v8, %v5064_v6 }
 0x2c8   :  { %v1805_v36 = vadd.f32 %v1803_v54, %v1799_v20  ;;  %v1813_v56 = vsel %vm117_vm3, %v1811_v42, 0.0  ;;  %v1816_v5 = vmul.f32 %v1815_v50, %v1810_v41  ;;  %v1823_v13 = vpop.permute.xlu1 %1822  ;;  %v1883_v20 = vstv %s5238_s7 }
 0x2c9   :  { %v1804_v29 = vadd.f32 %v1802_v23, %v1798_v24  ;;  %v1817_v35 = vmul.f32 %v1815_v50, %v1813_v56  ;;  %v1870_v40 = vmul.f32 %v1869_v8, %v5072_v3 }
 0x2ca   :  { %v1821_v9 = vpop.permute.xlu0 %1820 }
 0x2cb   :  { %v1819_v60 = vadd.f32 %v1817_v35, %v1805_v36  ;;  %v1824_v59 = vsel %vm124_vm0, %v1821_v9, %v1823_v13  ;;  %v1825_v45 = vsel %vm124_vm0, %v1823_v13, %v1821_v9  ;;  %v1818_v17 = vadd.f32 %v1816_v5, %v1804_v29 }
 0x2cc   :  { %v1826_v14 = vsel %vm106_vm2, %v1825_v45, 0.0  ;;  %v1831_v26 = vmul.f32 %v1829_v49, %v1824_v59  ;;  %v1843_v62 = vpop.permute.xlu1 %1842  ;;  %v1897_v35 = vstv %s5255_s16  ;;  %v1903_v9 = vstv %s5258_s14 }
 0x2cd   :  { %v1830_v30 = vmul.f32 %v1829_v49, %v1826_v14 }
 0x2ce   :  { %v1833_v28 = vadd.f32 %v1831_v26, %v1819_v60  ;;  %v1841_v47 = vpop.permute.xlu0 %1840 }
 0x2cf   :  { %v1832_v55 = vadd.f32 %v1830_v30, %v1818_v17  ;;  %v1844_v38 = vsel %vm213_vm1, %v1841_v47, %v1843_v62  ;;  %v1845_v4 = vsel %vm213_vm1, %v1843_v62, %v1841_v47  ;;  %v1905_v17 = vmul.f32 %v1903_v9, %v5111_v33 }
 0x2d0   :  { %v1839_v25 = vadd.f32 %v1837_v27, %v1833_v28  ;;  %v1847_v57 = vsel %vm117_vm3, %v1845_v4, 0.0  ;;  %v1850_v19 = vmul.f32 %v1849_v7, %v1844_v38  ;;  %v1917_v62 = vstv %s2333_s0 }
 0x2d1   :  { %v1838_v0 = vadd.f32 %v1836_v2, %v1832_v55  ;;  %v1851_v21 = vmul.f32 %v1849_v7, %v1847_v57  ;;  %v1904_v28 = vmul.f32 %v1903_v9, %v5127_v37  ;;  %v1937_v37 = vstv %s5272_s2 }
 0x2d2   :  { %v1857_v18 = vpop.permute.xlu1 %1856 }
 0x2d3   :  { %v1855_v52 = vpop.permute.xlu0 %1854  ;;  %v1853_v61 = vadd.f32 %v1851_v21, %v1839_v25  ;;  %v1852_v46 = vadd.f32 %v1850_v19, %v1838_v0  ;;  %v1931_v0 = vstv %s5269_s24 }
 0x2d4   :  { %v1858_v34 = vsel %vm124_vm0, %v1855_v52, %v1857_v18  ;;  %v1859_v48 = vsel %vm124_vm0, %v1857_v18, %v1855_v52 }
 0x2d5   :  { %v1860_v63 = vsel %vm106_vm2, %v1859_v48, 0.0  ;;  %v1865_v16 = vmul.f32 %v1863_v10, %v1858_v34 }
 0x2d6   :  { %v1864_v53 = vmul.f32 %v1863_v10, %v1860_v63  ;;  %v1877_v22 = vpop.permute.xlu1 %1876  ;;  %v1939_v63 = vmul.f32 %v1937_v37, %v5143_v11 }
 0x2d7   :  { %v1867_v54 = vadd.f32 %v1865_v16, %v1853_v61  ;;  %v1875_v50 = vpop.permute.xlu0 %1874 }
 0x2d8   :  { %v1866_v23 = vadd.f32 %v1864_v53, %v1852_v46  ;;  %v1879_v24 = vsel %vm213_vm1, %v1877_v22, %v1875_v50  ;;  %v1878_v6 = vsel %vm213_vm1, %v1875_v50, %v1877_v22  ;;  %v1951_v46 = vstv %s5281_s12 }
 0x2d9   :  { %v1873_v41 = vadd.f32 %v1871_v1, %v1867_v54  ;;  %v1881_v42 = vsel %vm117_vm3, %v1879_v24, 0.0  ;;  %v1884_v5 = vmul.f32 %v1883_v20, %v1878_v6  ;;  %v1938_v22 = vmul.f32 %v1937_v37, %v5149_v58 }
 0x2da   :  { %v1872_v36 = vadd.f32 %v1870_v40, %v1866_v23  ;;  %v1885_v56 = vmul.f32 %v1883_v20, %v1881_v42  ;;  %v1965_v58 = vstv %s5291_s22  ;;  %v2019_v37 = vstv %s5327_s8 }
 0x2db   :  { %v1891_v29 = vpop.permute.xlu1 %1890 }
 0x2dc   :  { %v1887_v3 = vadd.f32 %v1885_v56, %v1873_v41  ;;  %v1886_v14 = vadd.f32 %v1884_v5, %v1872_v36  ;;  %v1971_v56 = vstv %s5298_s18 }
 0x2dd   :  { %v1973_v9 = vmul.f32 %v1971_v56, %v5157_v15 }
 0x2df   :  { %v1889_v13 = vpop.permute.xlu0 %1888  ;;  %v1911_v49 = vpop.permute.xlu1 %1910 }
 0x2e0   :  { %v1892_v51 = vsel %vm124_vm0, %v1889_v13, %v1891_v29  ;;  %v1893_v60 = vsel %vm124_vm0, %v1891_v29, %v1889_v13 }
 0x2e1   :  { %v1894_v59 = vsel %vm106_vm2, %v1893_v60, 0.0  ;;  %v1899_v45 = vmul.f32 %v1897_v35, %v1892_v51  ;;  %v1985_v60 = vstv %s5309_s9 }
 0x2e2   :  { %v1898_v26 = vmul.f32 %v1897_v35, %v1894_v59 }
 0x2e3   :  { %v1901_v30 = vadd.f32 %v1899_v45, %v1887_v3  ;;  %v1909_v27 = vpop.permute.xlu0 %1908  ;;  %v1972_v45 = vmul.f32 %v1971_v56, %v5161_v39  ;;  %v2005_v39 = vstv %s5321_s29 }
 0x2e4   :  { %v1900_v7 = vadd.f32 %v1898_v26, %v1886_v14  ;;  %v1912_v47 = vsel %vm213_vm1, %v1909_v27, %v1911_v49  ;;  %v1913_v2 = vsel %vm213_vm1, %v1911_v49, %v1909_v27  ;;  %v1925_v55 = vpop.permute.xlu1 %1924 }
 0x2e5   :  { %v1907_v38 = vadd.f32 %v1905_v17, %v1901_v30  ;;  %v1915_v33 = vsel %vm117_vm3, %v1913_v2, 0.0  ;;  %v1918_v25 = vmul.f32 %v1917_v62, %v1912_v47  ;;  %v1999_v47 = vstv %s5314_s15 }
 0x2e6   :  { %v1906_v4 = vadd.f32 %v1904_v28, %v1900_v7  ;;  %v1919_v57 = vmul.f32 %v1917_v62, %v1915_v33 }
 0x2e7   :  { %v1923_v19 = vpop.permute.xlu0 %1922 }
 0x2e8   :  { %v1921_v21 = vadd.f32 %v1919_v57, %v1907_v38  ;;  %v1926_v18 = vsel %vm124_vm0, %v1923_v19, %v1925_v55  ;;  %v1927_v10 = vsel %vm124_vm0, %v1925_v55, %v1923_v19  ;;  %v1945_v52 = vpop.permute.xlu1 %1944  ;;  %v1920_v34 = vadd.f32 %v1918_v25, %v1906_v4 }
 0x2e9   :  { %v1928_v8 = vsel %vm106_vm2, %v1927_v10, 0.0  ;;  %v1933_v61 = vmul.f32 %v1931_v0, %v1926_v18 }
 0x2ea   :  { %v1932_v48 = vmul.f32 %v1931_v0, %v1928_v8 }
 0x2eb   :  { %v1935_v16 = vadd.f32 %v1933_v61, %v1921_v21  ;;  %v1943_v53 = vpop.permute.xlu0 %1942  ;;  %v2007_v21 = vmul.f32 %v2005_v39, %v5169_v32  ;;  %v2025_v32 = vstv %s6364_s25 }
 0x2ec   :  { %v1934_v1 = vadd.f32 %v1932_v48, %v1920_v34  ;;  %v1946_v54 = vsel %vm213_vm1, %v1943_v53, %v1945_v52  ;;  %v1947_v20 = vsel %vm213_vm1, %v1945_v52, %v1943_v53  ;;  %v1959_v50 = vpop.permute.xlu1 %1958  ;;  %v2006_v52 = vmul.f32 %v2005_v39, %v5173_v43 }
 0x2ed   :  { %v1941_v40 = vadd.f32 %v1939_v63, %v1935_v16  ;;  %v1949_v11 = vsel %vm117_vm3, %v1947_v20, 0.0  ;;  %v1952_v41 = vmul.f32 %v1951_v46, %v1946_v54 }
 0x2ee   :  { %v1940_v23 = vadd.f32 %v1938_v22, %v1934_v1  ;;  %v1953_v24 = vmul.f32 %v1951_v46, %v1949_v11 }
 0x2f0   :  { %v1955_v42 = vadd.f32 %v1953_v24, %v1941_v40  ;;  %v1957_v36 = vpop.permute.xlu0 %1956  ;;  %v1979_v6 = vpop.permute.xlu1 %1978  ;;  %v1954_v13 = vadd.f32 %v1952_v41, %v1940_v23  ;;  %v2422_v24 = vld [vmem:[#allocation3] sm:$0xff] }
 0x2f1   :  { %v1960_v29 = vsel %vm124_vm0, %v1957_v36, %v1959_v50  ;;  %v1961_v5 = vsel %vm124_vm0, %v1959_v50, %v1957_v36 }
 0x2f2   :  { %v1962_v35 = vsel %vm106_vm2, %v1961_v5, 0.0  ;;  %v1967_v3 = vmul.f32 %v1965_v58, %v1960_v29 }
 0x2f3   :  { %v1966_v49 = vmul.f32 %v1965_v58, %v1962_v35  ;;  %v2423_v58 = vld [vmem:[#allocation3 + $0x8] sm:$0xff] }
 0x2f4   :  { %v1969_v51 = vadd.f32 %v1967_v3, %v1955_v42  ;;  %v1977_v59 = vpop.permute.xlu0 %1976 }
 0x2f5   :  { %v1968_v14 = vadd.f32 %v1966_v49, %v1954_v13  ;;  %v1980_v26 = vsel %vm213_vm1, %v1977_v59, %v1979_v6  ;;  %v1981_v17 = vsel %vm213_vm1, %v1979_v6, %v1977_v59 }
 0x2f6   :  { %v1975_v30 = vadd.f32 %v1973_v9, %v1969_v51  ;;  %v1983_v62 = vsel %vm117_vm3, %v1981_v17, 0.0  ;;  %v1993_v15 = vpop.permute.xlu1 %1992  ;;  %v1986_v7 = vmul.f32 %v1985_v60, %v1980_v26 }
 0x2f7   :  { %v1974_v27 = vadd.f32 %v1972_v45, %v1968_v14  ;;  %v1987_v28 = vmul.f32 %v1985_v60, %v1983_v62 }
 0x2f9   :  { %v1989_v2 = vadd.f32 %v1987_v28, %v1975_v30  ;;  %v1991_v55 = vpop.permute.xlu0 %1990  ;;  %v1988_v0 = vadd.f32 %v1986_v7, %v1974_v27 }
 0x2fa   :  { %v1994_v38 = vsel %vm124_vm0, %v1991_v55, %v1993_v15  ;;  %v1995_v33 = vsel %vm124_vm0, %v1993_v15, %v1991_v55  ;;  %v2013_v57 = vpop.permute.xlu1 %2012 }
 0x2fb   :  { %v1996_v4 = vsel %vm106_vm2, %v1995_v33, 0.0  ;;  %v2001_v25 = vmul.f32 %v1999_v47, %v1994_v38 }
 0x2fc   :  { %v2000_v19 = vmul.f32 %v1999_v47, %v1996_v4 }
 0x2fd   :  { %v2003_v18 = vadd.f32 %v2001_v25, %v1989_v2  ;;  %v2011_v10 = vpop.permute.xlu0 %2010 }
 0x2fe   :  { %v2002_v8 = vadd.f32 %v2000_v19, %v1988_v0  ;;  %v2014_v61 = vsel %vm213_vm1, %v2011_v10, %v2013_v57  ;;  %v2015_v34 = vsel %vm213_vm1, %v2013_v57, %v2011_v10 }
 0x2ff   :  { %v2009_v31 = vadd.f32 %v2007_v21, %v2003_v18  ;;  %v2017_v48 = vsel %vm117_vm3, %v2015_v34, 0.0  ;;  %v2020_v63 = vmul.f32 %v2019_v37, %v2014_v61 }
 0x300   :  { %v2008_v16 = vadd.f32 %v2006_v52, %v2002_v8  ;;  %v2021_v46 = vmul.f32 %v2019_v37, %v2017_v48 }
 0x302   :  { %v2022_v53 = vadd.f32 %v2020_v63, %v2008_v16  ;;  %v2023_v43 = vadd.f32 %v2021_v46, %v2009_v31 }
 0x304   :  { %v2026_v22 = vadd.f32 %v2025_v32, %v2022_v53  ;;  %v2027_v1 = vadd.f32 %v2025_v32, %v2023_v43 }
 0x306   :  { %v2030_v54 = vmul.f32 1.442695, %v2026_v22  ;;  %v2032_v20 = vmul.f32 1.442695, %v2027_v1  ;;  %vm2028_vm0 = vcmp.gt.f32.partialorder %v2026_v22, 0.0  ;;  %vm2029_vm1 = vcmp.gt.f32.partialorder %v2027_v1, 0.0 }
 0x308   :  { %2418 = vpow2.f32 %v2030_v54 }
 0x309   :  { %2420 = vpow2.f32 %v2032_v20 }
 0x312   :  { %v2419_v12 = vpop.eup %2418 }
 0x313   :  { %v2421_v50 = vpop.eup %2420  ;;  %v2343_v40 = vadd.f32 -1.0, %v2419_v12 }
 0x314   :  { %v2344_v44 = vadd.f32 -1.0, %v2421_v50 }
 0x315   :  { %v2036_v11 = vsel %vm2028_vm0, %v2026_v22, %v2343_v40 }
 0x316   :  { %v2037_v23 = vsel %vm2029_vm1, %v2027_v1, %v2344_v44  ;;  %v2038_v41 = vadd.f32 %v2422_v24, %v2036_v11 }
 0x317   :  { %v2039_v42 = vadd.f32 %v2423_v58, %v2037_v23 }
 0x318   :  { %2040 = vst [vmem:[#allocation14] sm:$0xff] %v2038_v41 }
 0x319   :  { %2041 = vst [vmem:[#allocation14 + $0x8] sm:$0xff] %v2039_v42 }
 0x31a   :  { %2517 = shalt.err (!%p2514_p9)
}
 0x31b   :  { %s6365_s17 = sld [smem:[#allocation189_spill]] }
 0x321   :  { %s2518_s30 = scalar_lea.hbm %s6365_s17, 256 }
 0x322   :  { %p2519_p10 = scmp.ne.s32.totalorder %s6365_s17, %s2518_s30  ;;  %p2522_p11 = scmp.lt.u32.totalorder %s2518_s30, %s6365_s17 }
 0x324   :  { %p2524_p12 = pnand %p2522_p11, %p2519_p10 }
 0x326   :  { %2527 = shalt.err (!%p2524_p12)
}
 0x327   :  { %2051 = dma.vmem_to_hbm [thread:$0]  %s2049_s21, 256, %s6365_s17, [#allocation5]  }
 0x328   :  { %2536 = dma.done.wait [#allocation5], 256  }
 0x329   :  { %2537 = vsyncadd [#allocation5], 4294967040 }
 0x32a   :  { %2055 = vsyncpa [#allocation4], 1 }
 0x32b   :  { %2056 = vsyncpa [#allocation5], 1 }
 0x32c   :  { %2057 = vsyncpa [#allocation6], 1 }
 0x32d   :  { %2058 = vsyncpa [#allocation9], 1 }
 0x32e   :  { %2059 = vsyncpa [#allocation12], 1 }

</bundles_post_ra>
